<compile_context>
chip_gen: v7x
topology: tpu7x:2x2x1
jax: 0.10.0
libtpu: 0.0.40
codegen_flags: <defaults>
</compile_context>

<pallas_src>
import math

import jax
import jax.numpy as jnp
import numpy as np
from jax import lax
from jax.experimental import pallas as pl
from jax.experimental.pallas import tpu as pltpu


# ------------------------- model hyper-parameters (small) -------------------------
VOCAB = 32
N_LAYERS = 2
DIM = 128
N_HEADS = 4
HEAD_DIM = DIM // N_HEADS
HIDDEN = 4 * DIM
MAX_LEN = 16
B = 2
N = 16
BN = B * N
PAD_V = 128            # lane-dense padded vocab width for the output head
EPS = 1e-5
NEG_INF = -1e30        # robust additive mask value


def _layernorm(x, gamma, beta):
    mu = jnp.mean(x, axis=-1, keepdims=True)
    var = jnp.mean((x - mu) ** 2, axis=-1, keepdims=True)
    return (x - mu) * lax.rsqrt(var + EPS) * gamma + beta


# ------------------------- fully fused forward kernel -------------------------
def fused_kernel(h_ref, mask_ref, ln_ref, wqkv_ref, wo_ref, w1_ref, w2_ref,
                 fnorm_ref, wout_ref, o_ref):
    h = h_ref[...]                                              # (BN, D) f32 residual stream

    # Precomputed block-diagonal causal mask; broadcast to heads once (not per layer).
    mask_h = jnp.broadcast_to(mask_ref[...], (N_HEADS, BN, BN))  # (H, BN, BN) f32

    dn_proj = (((2,), (1,)), ((0,), (0,)))   # (H, BN, D)  x (H, D, 3hd) -> (H, BN, 3hd)
    dn_qkt = (((2,), (2,)), ((0,), (0,)))    # (H, BN, hd) x (H, BN, hd) -> (H, BN, BN)
    dn_pv = (((2,), (1,)), ((0,), (0,)))     # (H, BN, BN) x (H, BN, hd) -> (H, BN, hd)

    for l in range(N_LAYERS):                # static unroll (N_LAYERS == 2)
        ln = ln_ref[l]                       # (4, D): ln1_g, ln1_b, ln2_g, ln2_b

        # ---------------- attention sub-layer (pre-norm) ----------------
        xn = _layernorm(h, ln[0:1], ln[1:2])                          # f32
        xb = jnp.broadcast_to(xn.astype(jnp.bfloat16), (N_HEADS, BN, DIM))

        # single fused QKV projection per layer: (H, BN, 3*hd)
        qkv = lax.dot_general(xb, wqkv_ref[l], dn_proj,
                              preferred_element_type=jnp.float32)
        q = qkv[:, :, 0:HEAD_DIM].astype(jnp.bfloat16)
        k = qkv[:, :, HEAD_DIM:2 * HEAD_DIM].astype(jnp.bfloat16)
        v = qkv[:, :, 2 * HEAD_DIM:3 * HEAD_DIM].astype(jnp.bfloat16)

        # scores (1/sqrt(head_dim) already folded into the q weights), f32 softmax
        s = lax.dot_general(q, k, dn_qkt, preferred_element_type=jnp.float32)
        s = s + mask_h
        m = jnp.max(s, axis=-1, keepdims=True)
        e = jnp.exp(s - m)
        denom = jnp.sum(e, axis=-1, keepdims=True)
        p = e * pl.reciprocal(denom, approx=True)                     # divide -> EUP

        o = lax.dot_general(p.astype(jnp.bfloat16), v, dn_pv,
                            preferred_element_type=jnp.float32)       # (H, BN, hd) f32
        # lane-concat heads into (BN, D) so the Wo projection is ONE K=128 MXU pass
        o_wide = jnp.concatenate([o[hh] for hh in range(N_HEADS)],
                                 axis=-1).astype(jnp.bfloat16)        # (BN, D)
        attn = jnp.dot(o_wide, wo_ref[l], preferred_element_type=jnp.float32)
        h = h + attn

        # ---------------- feed-forward sub-layer (pre-norm) ----------------
        hn = _layernorm(h, ln[2:3], ln[3:4])
        f = jnp.dot(hn.astype(jnp.bfloat16), w1_ref[l],
                    preferred_element_type=jnp.float32)
        f = jnp.maximum(f, 0.0)                                       # ReLU in f32
        f = jnp.dot(f.astype(jnp.bfloat16), w2_ref[l],
                    preferred_element_type=jnp.float32)
        h = h + f

    # ---------------- final norm + output projection (lane-dense, padded to 128) -------
    fn = fnorm_ref[...]                                               # (2, D)
    xn = _layernorm(h, fn[0:1], fn[1:2])
    o_ref[...] = jnp.dot(xn.astype(jnp.bfloat16), wout_ref[...],
                         preferred_element_type=jnp.float32)


# ------------------------- one-time parameter packing (outside the jitted path) ----------
def pack_params(params):
    layers = params["layers"]
    scale = 1.0 / math.sqrt(HEAD_DIM)

    def split_heads(w_t):                       # (D, H*hd) -> (H, D, hd)
        return w_t.reshape(DIM, N_HEADS, HEAD_DIM).transpose(1, 0, 2)

    # fused per-head QKV weights: (L, H, D, 3*hd), scale folded into q
    wqkv = jnp.stack([
        jnp.concatenate([split_heads(lp[0]) * scale,
                         split_heads(lp[1]),
                         split_heads(lp[2])], axis=-1)
        for lp in layers
    ]).astype(jnp.bfloat16)

    # Wo kept 2-D head-major: (L, D, D) -> single K=128 matmul in-kernel
    wo = jnp.stack([lp[3] for lp in layers]).astype(jnp.bfloat16)
    ln = jnp.stack([jnp.concatenate([lp[4], lp[5], lp[6], lp[7]], axis=0)
                    for lp in layers])                                  # (L, 4, D) f32
    w1 = jnp.stack([lp[8] for lp in layers]).astype(jnp.bfloat16)       # (L, D, HIDDEN)
    w2 = jnp.stack([lp[9] for lp in layers]).astype(jnp.bfloat16)       # (L, HIDDEN, D)
    fnorm = jnp.concatenate([params["norm_g"], params["norm_b"]], axis=0)  # (2, D) f32
    wout = jnp.zeros((DIM, PAD_V), jnp.float32).at[:, :VOCAB].set(params["wout_t"])
    wout = wout.astype(jnp.bfloat16)

    # block-diagonal (per-batch) causal additive mask over flattened rows
    ri = np.arange(BN)[:, None]
    ci = np.arange(BN)[None, :]
    valid = ((ri // N) == (ci // N)) & ((ci % N) <= (ri % N))
    mask = jnp.asarray(np.where(valid, 0.0, NEG_INF), dtype=jnp.float32)  # (BN, BN)

    return {
        "tok_emb": params["tok_emb"].astype(jnp.float32),
        "pos_emb": params["pos_emb"].astype(jnp.float32),
        "mask": mask, "ln": ln, "wqkv": wqkv, "wo": wo,
        "w1": w1, "w2": w2, "fnorm": fnorm, "wout": wout,
    }


# ------------------------- full forward (glue in JAX) -------------------------
@jax.jit
def transformer_forward(tokens, packed):
    # TODO(synk): nn.Embedding gathers stay in plain JAX (tiny, data-dependent gather).
    h = jnp.take(packed["tok_emb"], tokens, axis=0) + packed["pos_emb"][:N][None, :, :]
    h = h.reshape(BN, DIM).astype(jnp.float32)

    vmem = pl.BlockSpec(memory_space=pltpu.MemorySpace.VMEM)
    out = pl.pallas_call(
        fused_kernel,
        out_shape=jax.ShapeDtypeStruct((BN, PAD_V), jnp.float32),
        in_specs=[vmem] * 9,
        out_specs=vmem,
    )(h, packed["mask"], packed["ln"], packed["wqkv"], packed["wo"],
      packed["w1"], packed["w2"], packed["fnorm"], packed["wout"])

    return out[:, :VOCAB].reshape(B, N, VOCAB).astype(jnp.float32)


# ------------------------- pure-JAX f32 reference (for verification) -------------------------
def reference_forward(tokens, params):
    h = jnp.take(params["tok_emb"], tokens, axis=0) + params["pos_emb"][:N][None]
    row = jnp.arange(N)[:, None]
    col = jnp.arange(N)[None, :]
    mask = jnp.where(col > row, -jnp.inf, 0.0)
    for lp in params["layers"]:
        (wq_t, wk_t, wv_t, wo_t, ln1g, ln1b, ln2g, ln2b, w1_t, w2_t) = lp
        xn = _layernorm(h, ln1g[0], ln1b[0])
        q = xn @ wq_t
        k = xn @ wk_t
        v = xn @ wv_t
        qh = q.reshape(B, N, N_HEADS, HEAD_DIM).transpose(0, 2, 1, 3)
        kh = k.reshape(B, N, N_HEADS, HEAD_DIM).transpose(0, 2, 1, 3)
        vh = v.reshape(B, N, N_HEADS, HEAD_DIM).transpose(0, 2, 1, 3)
        s = jnp.einsum("bhqd,bhkd->bhqk", qh, kh) / math.sqrt(HEAD_DIM) + mask
        p = jax.nn.softmax(s, axis=-1)
        a = jnp.einsum("bhqk,bhkd->bhqd", p, vh).transpose(0, 2, 1, 3).reshape(B, N, DIM)
        h = h + a @ wo_t
        hn = _layernorm(h, ln2g[0], ln2b[0])
        h = h + jnp.maximum(hn @ w1_t, 0.0) @ w2_t
    hn = _layernorm(h, params["norm_g"][0], params["norm_b"][0])
    return (hn @ params["wout_t"]).astype(jnp.float32)


# ------------------------- deterministic parameter init -------------------------
def init_params(key):
    def nrm(k, shape, scale):
        return jax.random.normal(k, shape, jnp.float32) * scale

    keys = jax.random.split(key, 6 + N_LAYERS)
    params = {
        "tok_emb": nrm(keys[0], (VOCAB, DIM), 0.02),
        "pos_emb": nrm(keys[1], (MAX_LEN, DIM), 0.02),
        "norm_g": jnp.ones((1, DIM), jnp.float32),
        "norm_b": jnp.zeros((1, DIM), jnp.float32),
        "wout_t": nrm(keys[2], (DIM, VOCAB), 1.0 / math.sqrt(DIM)),
        "layers": [],
    }
    for i in range(N_LAYERS):
        ks = jax.random.split(keys[6 + i], 6)
        layer = (
            nrm(ks[0], (DIM, DIM), 1.0 / math.sqrt(DIM)),        # wq^T
            nrm(ks[1], (DIM, DIM), 1.0 / math.sqrt(DIM)),        # wk^T
            nrm(ks[2], (DIM, DIM), 1.0 / math.sqrt(DIM)),        # wv^T
            nrm(ks[3], (DIM, DIM), 1.0 / math.sqrt(DIM)),        # wo^T
            jnp.ones((1, DIM), jnp.float32),                     # ln1 gamma
            jnp.zeros((1, DIM), jnp.float32),                    # ln1 beta
            jnp.ones((1, DIM), jnp.float32),                     # ln2 gamma
            jnp.zeros((1, DIM), jnp.float32),                    # ln2 beta
            nrm(ks[4], (DIM, HIDDEN), 1.0 / math.sqrt(DIM)),     # ff.w1^T
            nrm(ks[5], (HIDDEN, DIM), 1.0 / math.sqrt(HIDDEN)),  # ff.w2^T
        )
        params["layers"].append(layer)
    return params


if __name__ == "__main__":
    key = jax.random.PRNGKey(0)
    pkey, tkey = jax.random.split(key)
    params = init_params(pkey)
    tokens = jax.random.randint(tkey, (B, N), 0, VOCAB, dtype=jnp.int32)

    # one-time weight packing (stacking / bf16 cast / padding / mask) outside the hot path
    packed = jax.tree_util.tree_map(jax.block_until_ready, pack_params(params))

    out = transformer_forward(tokens, packed)
    out = jax.block_until_ready(out)

    ref = jax.block_until_ready(reference_forward(tokens, params))
    # bf16 matmul operands (f32 accumulation / layernorm / softmax) -> ~1e-2 agreement.
    np.testing.assert_allclose(np.asarray(out), np.asarray(ref), rtol=5e-2, atol=5e-2)

    print("KERNEL_OK")
</pallas_src>

<mosaic_0001>
module attributes {stable_mosaic.version = 11 : i64} {
  func.func @fused_kernel(%arg0: memref<32x128xf32, #tpu.memory_space<vmem>>, %arg1: memref<32x32xf32, #tpu.memory_space<vmem>>, %arg2: memref<2x4x128xf32, #tpu.memory_space<vmem>>, %arg3: memref<2x4x128x96xbf16, #tpu.memory_space<vmem>>, %arg4: memref<2x128x128xbf16, #tpu.memory_space<vmem>>, %arg5: memref<2x128x512xbf16, #tpu.memory_space<vmem>>, %arg6: memref<2x512x128xbf16, #tpu.memory_space<vmem>>, %arg7: memref<2x128xf32, #tpu.memory_space<vmem>>, %arg8: memref<128x128xbf16, #tpu.memory_space<vmem>>, %arg9: memref<32x128xf32, #tpu.memory_space<vmem>>) attributes {dimension_semantics = [], scalar_prefetch = 0 : i64, scratch_operands = 0 : i64, tpu.core_type = #tpu.core_type<tc>} {
    %c0 = arith.constant 0 : index
    %c0_0 = arith.constant 0 : index
    %0 = vector.load %arg0[%c0, %c0_0] : memref<32x128xf32, #tpu.memory_space<vmem>>, vector<32x128xf32>
    %c0_1 = arith.constant 0 : index
    %c0_2 = arith.constant 0 : index
    %1 = vector.load %arg1[%c0_1, %c0_2] : memref<32x32xf32, #tpu.memory_space<vmem>>, vector<32x32xf32>
    %2 = vector.shape_cast %1 : vector<32x32xf32> to vector<1x32x32xf32>
    %3 = vector.broadcast %2 : vector<1x32x32xf32> to vector<4x32x32xf32>
    %c0_3 = arith.constant 0 : index
    %c0_4 = arith.constant 0 : index
    %c0_5 = arith.constant 0 : index
    %4 = vector.load %arg2[%c0_3, %c0_4, %c0_5] : memref<2x4x128xf32, #tpu.memory_space<vmem>>, vector<1x4x128xf32>
    %5 = vector.shape_cast %4 : vector<1x4x128xf32> to vector<4x128xf32>
    %6 = vector.extract_strided_slice %5 {offsets = [0, 0], sizes = [1, 128], strides = [1, 1]} : vector<4x128xf32> to vector<1x128xf32>
    %7 = vector.extract_strided_slice %5 {offsets = [1, 0], sizes = [1, 128], strides = [1, 1]} : vector<4x128xf32> to vector<1x128xf32>
    %cst = arith.constant dense<0.000000e+00> : vector<32xf32>
    %8 = vector.multi_reduction <add>, %0, %cst [1] : vector<32x128xf32> to vector<32xf32>
    %9 = vector.shape_cast %8 : vector<32xf32> to vector<32x1xf32>
    %cst_6 = arith.constant 1.280000e+02 : f32
    %10 = vector.broadcast %cst_6 : f32 to vector<32x1xf32>
    %11 = arith.divf %9, %10 : vector<32x1xf32>
    %12 = vector.broadcast %11 : vector<32x1xf32> to vector<32x128xf32>
    %13 = arith.subf %0, %12 : vector<32x128xf32>
    %14 = arith.mulf %13, %13 : vector<32x128xf32>
    %cst_7 = arith.constant dense<0.000000e+00> : vector<32xf32>
    %15 = vector.multi_reduction <add>, %14, %cst_7 [1] : vector<32x128xf32> to vector<32xf32>
    %16 = vector.shape_cast %15 : vector<32xf32> to vector<32x1xf32>
    %cst_8 = arith.constant 1.280000e+02 : f32
    %17 = vector.broadcast %cst_8 : f32 to vector<32x1xf32>
    %18 = arith.divf %16, %17 : vector<32x1xf32>
    %19 = vector.broadcast %11 : vector<32x1xf32> to vector<32x128xf32>
    %20 = arith.subf %0, %19 : vector<32x128xf32>
    %cst_9 = arith.constant 9.99999974E-6 : f32
    %21 = vector.broadcast %cst_9 : f32 to vector<32x1xf32>
    %22 = arith.addf %18, %21 : vector<32x1xf32>
    %23 = math.rsqrt %22 : vector<32x1xf32>
    %24 = vector.broadcast %23 : vector<32x1xf32> to vector<32x128xf32>
    %25 = arith.mulf %20, %24 : vector<32x128xf32>
    %26 = vector.broadcast %6 : vector<1x128xf32> to vector<32x128xf32>
    %27 = arith.mulf %25, %26 : vector<32x128xf32>
    %28 = vector.broadcast %7 : vector<1x128xf32> to vector<32x128xf32>
    %29 = arith.addf %27, %28 : vector<32x128xf32>
    %30 = arith.truncf %29 : vector<32x128xf32> to vector<32x128xbf16>
    %31 = vector.shape_cast %30 : vector<32x128xbf16> to vector<1x32x128xbf16>
    %32 = vector.broadcast %31 : vector<1x32x128xbf16> to vector<4x32x128xbf16>
    %c0_10 = arith.constant 0 : index
    %c0_11 = arith.constant 0 : index
    %c0_12 = arith.constant 0 : index
    %c0_13 = arith.constant 0 : index
    %33 = vector.load %arg3[%c0_10, %c0_11, %c0_12, %c0_13] : memref<2x4x128x96xbf16, #tpu.memory_space<vmem>>, vector<1x4x128x96xbf16>
    %34 = vector.shape_cast %33 : vector<1x4x128x96xbf16> to vector<4x128x96xbf16>
    %cst_14 = arith.constant dense<0.000000e+00> : vector<4x32x96xf32>
    %35 = tpu.matmul %32, %34, %cst_14 {dimension_numbers = #tpu.dot_dimension_numbers<[2], [1], [1], [2], [0, 0, 0, 1, 1, 2], [0], [0]>} : vector<4x32x128xbf16>, vector<4x128x96xbf16>, vector<4x32x96xf32> -> vector<4x32x96xf32>
    %36 = vector.extract_strided_slice %35 {offsets = [0, 0, 0], sizes = [4, 32, 32], strides = [1, 1, 1]} : vector<4x32x96xf32> to vector<4x32x32xf32>
    %37 = arith.truncf %36 : vector<4x32x32xf32> to vector<4x32x32xbf16>
    %38 = vector.extract_strided_slice %35 {offsets = [0, 0, 32], sizes = [4, 32, 32], strides = [1, 1, 1]} : vector<4x32x96xf32> to vector<4x32x32xf32>
    %39 = arith.truncf %38 : vector<4x32x32xf32> to vector<4x32x32xbf16>
    %40 = vector.extract_strided_slice %35 {offsets = [0, 0, 64], sizes = [4, 32, 32], strides = [1, 1, 1]} : vector<4x32x96xf32> to vector<4x32x32xf32>
    %41 = arith.truncf %40 : vector<4x32x32xf32> to vector<4x32x32xbf16>
    %cst_15 = arith.constant dense<0.000000e+00> : vector<4x32x32xf32>
    %42 = tpu.matmul %37, %39, %cst_15 {dimension_numbers = #tpu.dot_dimension_numbers<[2], [2], [1], [1], [0, 0, 0, 1, 1, 1], [0], [0]>} : vector<4x32x32xbf16>, vector<4x32x32xbf16>, vector<4x32x32xf32> -> vector<4x32x32xf32>
    %43 = arith.addf %42, %3 : vector<4x32x32xf32>
    %cst_16 = arith.constant dense<0xFF800000> : vector<4x32xf32>
    %44 = vector.multi_reduction <maximumf>, %43, %cst_16 [2] : vector<4x32x32xf32> to vector<4x32xf32>
    %45 = vector.shape_cast %44 : vector<4x32xf32> to vector<4x32x1xf32>
    %46 = vector.broadcast %45 : vector<4x32x1xf32> to vector<4x32x32xf32>
    %47 = arith.subf %43, %46 : vector<4x32x32xf32>
    %48 = math.exp %47 : vector<4x32x32xf32>
    %cst_17 = arith.constant dense<0.000000e+00> : vector<4x32xf32>
    %49 = vector.multi_reduction <add>, %48, %cst_17 [2] : vector<4x32x32xf32> to vector<4x32xf32>
    %50 = vector.shape_cast %49 : vector<4x32xf32> to vector<4x32x1xf32>
    %51 = tpu.reciprocal %50 {approx = true} : vector<4x32x1xf32> -> vector<4x32x1xf32>
    %52 = vector.broadcast %51 : vector<4x32x1xf32> to vector<4x32x32xf32>
    %53 = arith.mulf %48, %52 : vector<4x32x32xf32>
    %54 = arith.truncf %53 : vector<4x32x32xf32> to vector<4x32x32xbf16>
    %cst_18 = arith.constant dense<0.000000e+00> : vector<4x32x32xf32>
    %55 = tpu.matmul %54, %41, %cst_18 {dimension_numbers = #tpu.dot_dimension_numbers<[2], [1], [1], [2], [0, 0, 0, 1, 1, 2], [0], [0]>} : vector<4x32x32xbf16>, vector<4x32x32xbf16>, vector<4x32x32xf32> -> vector<4x32x32xf32>
    %56 = vector.extract_strided_slice %55 {offsets = [0, 0, 0], sizes = [1, 32, 32], strides = [1, 1, 1]} : vector<4x32x32xf32> to vector<1x32x32xf32>
    %57 = vector.shape_cast %56 : vector<1x32x32xf32> to vector<32x32xf32>
    %58 = vector.extract_strided_slice %55 {offsets = [1, 0, 0], sizes = [1, 32, 32], strides = [1, 1, 1]} : vector<4x32x32xf32> to vector<1x32x32xf32>
    %59 = vector.shape_cast %58 : vector<1x32x32xf32> to vector<32x32xf32>
    %60 = vector.extract_strided_slice %55 {offsets = [2, 0, 0], sizes = [1, 32, 32], strides = [1, 1, 1]} : vector<4x32x32xf32> to vector<1x32x32xf32>
    %61 = vector.shape_cast %60 : vector<1x32x32xf32> to vector<32x32xf32>
    %62 = vector.extract_strided_slice %55 {offsets = [3, 0, 0], sizes = [1, 32, 32], strides = [1, 1, 1]} : vector<4x32x32xf32> to vector<1x32x32xf32>
    %63 = vector.shape_cast %62 : vector<1x32x32xf32> to vector<32x32xf32>
    %64 = tpu.concatenate %57, %59, %61, %63 in 1 : vector<32x32xf32>, vector<32x32xf32>, vector<32x32xf32>, vector<32x32xf32> -> vector<32x128xf32>
    %65 = arith.truncf %64 : vector<32x128xf32> to vector<32x128xbf16>
    %c0_19 = arith.constant 0 : index
    %c0_20 = arith.constant 0 : index
    %c0_21 = arith.constant 0 : index
    %66 = vector.load %arg4[%c0_19, %c0_20, %c0_21] : memref<2x128x128xbf16, #tpu.memory_space<vmem>>, vector<1x128x128xbf16>
    %67 = vector.shape_cast %66 : vector<1x128x128xbf16> to vector<128x128xbf16>
    %cst_22 = arith.constant dense<0.000000e+00> : vector<32x128xf32>
    %68 = tpu.matmul %65, %67, %cst_22 {dimension_numbers = #tpu.dot_dimension_numbers<[1], [0], [0], [1], [0, 0, 1, 1], [], []>} : vector<32x128xbf16>, vector<128x128xbf16>, vector<32x128xf32> -> vector<32x128xf32>
    %69 = arith.addf %0, %68 : vector<32x128xf32>
    %70 = vector.extract_strided_slice %5 {offsets = [2, 0], sizes = [1, 128], strides = [1, 1]} : vector<4x128xf32> to vector<1x128xf32>
    %71 = vector.extract_strided_slice %5 {offsets = [3, 0], sizes = [1, 128], strides = [1, 1]} : vector<4x128xf32> to vector<1x128xf32>
    %cst_23 = arith.constant dense<0.000000e+00> : vector<32xf32>
    %72 = vector.multi_reduction <add>, %69, %cst_23 [1] : vector<32x128xf32> to vector<32xf32>
    %73 = vector.shape_cast %72 : vector<32xf32> to vector<32x1xf32>
    %cst_24 = arith.constant 1.280000e+02 : f32
    %74 = vector.broadcast %cst_24 : f32 to vector<32x1xf32>
    %75 = arith.divf %73, %74 : vector<32x1xf32>
    %76 = vector.broadcast %75 : vector<32x1xf32> to vector<32x128xf32>
    %77 = arith.subf %69, %76 : vector<32x128xf32>
    %78 = arith.mulf %77, %77 : vector<32x128xf32>
    %cst_25 = arith.constant dense<0.000000e+00> : vector<32xf32>
    %79 = vector.multi_reduction <add>, %78, %cst_25 [1] : vector<32x128xf32> to vector<32xf32>
    %80 = vector.shape_cast %79 : vector<32xf32> to vector<32x1xf32>
    %cst_26 = arith.constant 1.280000e+02 : f32
    %81 = vector.broadcast %cst_26 : f32 to vector<32x1xf32>
    %82 = arith.divf %80, %81 : vector<32x1xf32>
    %83 = vector.broadcast %75 : vector<32x1xf32> to vector<32x128xf32>
    %84 = arith.subf %69, %83 : vector<32x128xf32>
    %cst_27 = arith.constant 9.99999974E-6 : f32
    %85 = vector.broadcast %cst_27 : f32 to vector<32x1xf32>
    %86 = arith.addf %82, %85 : vector<32x1xf32>
    %87 = math.rsqrt %86 : vector<32x1xf32>
    %88 = vector.broadcast %87 : vector<32x1xf32> to vector<32x128xf32>
    %89 = arith.mulf %84, %88 : vector<32x128xf32>
    %90 = vector.broadcast %70 : vector<1x128xf32> to vector<32x128xf32>
    %91 = arith.mulf %89, %90 : vector<32x128xf32>
    %92 = vector.broadcast %71 : vector<1x128xf32> to vector<32x128xf32>
    %93 = arith.addf %91, %92 : vector<32x128xf32>
    %94 = arith.truncf %93 : vector<32x128xf32> to vector<32x128xbf16>
    %c0_28 = arith.constant 0 : index
    %c0_29 = arith.constant 0 : index
    %c0_30 = arith.constant 0 : index
    %95 = vector.load %arg5[%c0_28, %c0_29, %c0_30] : memref<2x128x512xbf16, #tpu.memory_space<vmem>>, vector<1x128x512xbf16>
    %96 = vector.shape_cast %95 : vector<1x128x512xbf16> to vector<128x512xbf16>
    %cst_31 = arith.constant dense<0.000000e+00> : vector<32x512xf32>
    %97 = tpu.matmul %94, %96, %cst_31 {dimension_numbers = #tpu.dot_dimension_numbers<[1], [0], [0], [1], [0, 0, 1, 1], [], []>} : vector<32x128xbf16>, vector<128x512xbf16>, vector<32x512xf32> -> vector<32x512xf32>
    %cst_32 = arith.constant 0.000000e+00 : f32
    %98 = vector.broadcast %cst_32 : f32 to vector<32x512xf32>
    %99 = arith.maximumf %97, %98 : vector<32x512xf32>
    %100 = arith.truncf %99 : vector<32x512xf32> to vector<32x512xbf16>
    %c0_33 = arith.constant 0 : index
    %c0_34 = arith.constant 0 : index
    %c0_35 = arith.constant 0 : index
    %101 = vector.load %arg6[%c0_33, %c0_34, %c0_35] : memref<2x512x128xbf16, #tpu.memory_space<vmem>>, vector<1x512x128xbf16>
    %102 = vector.shape_cast %101 : vector<1x512x128xbf16> to vector<512x128xbf16>
    %cst_36 = arith.constant dense<0.000000e+00> : vector<32x128xf32>
    %103 = tpu.matmul %100, %102, %cst_36 {dimension_numbers = #tpu.dot_dimension_numbers<[1], [0], [0], [1], [0, 0, 1, 1], [], []>} : vector<32x512xbf16>, vector<512x128xbf16>, vector<32x128xf32> -> vector<32x128xf32>
    %104 = arith.addf %69, %103 : vector<32x128xf32>
    %c1 = arith.constant 1 : index
    %c0_37 = arith.constant 0 : index
    %c0_38 = arith.constant 0 : index
    %105 = vector.load %arg2[%c1, %c0_37, %c0_38] : memref<2x4x128xf32, #tpu.memory_space<vmem>>, vector<1x4x128xf32>
    %106 = vector.shape_cast %105 : vector<1x4x128xf32> to vector<4x128xf32>
    %107 = vector.extract_strided_slice %106 {offsets = [0, 0], sizes = [1, 128], strides = [1, 1]} : vector<4x128xf32> to vector<1x128xf32>
    %108 = vector.extract_strided_slice %106 {offsets = [1, 0], sizes = [1, 128], strides = [1, 1]} : vector<4x128xf32> to vector<1x128xf32>
    %cst_39 = arith.constant dense<0.000000e+00> : vector<32xf32>
    %109 = vector.multi_reduction <add>, %104, %cst_39 [1] : vector<32x128xf32> to vector<32xf32>
    %110 = vector.shape_cast %109 : vector<32xf32> to vector<32x1xf32>
    %cst_40 = arith.constant 1.280000e+02 : f32
    %111 = vector.broadcast %cst_40 : f32 to vector<32x1xf32>
    %112 = arith.divf %110, %111 : vector<32x1xf32>
    %113 = vector.broadcast %112 : vector<32x1xf32> to vector<32x128xf32>
    %114 = arith.subf %104, %113 : vector<32x128xf32>
    %115 = arith.mulf %114, %114 : vector<32x128xf32>
    %cst_41 = arith.constant dense<0.000000e+00> : vector<32xf32>
    %116 = vector.multi_reduction <add>, %115, %cst_41 [1] : vector<32x128xf32> to vector<32xf32>
    %117 = vector.shape_cast %116 : vector<32xf32> to vector<32x1xf32>
    %cst_42 = arith.constant 1.280000e+02 : f32
    %118 = vector.broadcast %cst_42 : f32 to vector<32x1xf32>
    %119 = arith.divf %117, %118 : vector<32x1xf32>
    %120 = vector.broadcast %112 : vector<32x1xf32> to vector<32x128xf32>
    %121 = arith.subf %104, %120 : vector<32x128xf32>
    %cst_43 = arith.constant 9.99999974E-6 : f32
    %122 = vector.broadcast %cst_43 : f32 to vector<32x1xf32>
    %123 = arith.addf %119, %122 : vector<32x1xf32>
    %124 = math.rsqrt %123 : vector<32x1xf32>
    %125 = vector.broadcast %124 : vector<32x1xf32> to vector<32x128xf32>
    %126 = arith.mulf %121, %125 : vector<32x128xf32>
    %127 = vector.broadcast %107 : vector<1x128xf32> to vector<32x128xf32>
    %128 = arith.mulf %126, %127 : vector<32x128xf32>
    %129 = vector.broadcast %108 : vector<1x128xf32> to vector<32x128xf32>
    %130 = arith.addf %128, %129 : vector<32x128xf32>
    %131 = arith.truncf %130 : vector<32x128xf32> to vector<32x128xbf16>
    %132 = vector.shape_cast %131 : vector<32x128xbf16> to vector<1x32x128xbf16>
    %133 = vector.broadcast %132 : vector<1x32x128xbf16> to vector<4x32x128xbf16>
    %c1_44 = arith.constant 1 : index
    %c0_45 = arith.constant 0 : index
    %c0_46 = arith.constant 0 : index
    %c0_47 = arith.constant 0 : index
    %134 = vector.load %arg3[%c1_44, %c0_45, %c0_46, %c0_47] : memref<2x4x128x96xbf16, #tpu.memory_space<vmem>>, vector<1x4x128x96xbf16>
    %135 = vector.shape_cast %134 : vector<1x4x128x96xbf16> to vector<4x128x96xbf16>
    %cst_48 = arith.constant dense<0.000000e+00> : vector<4x32x96xf32>
    %136 = tpu.matmul %133, %135, %cst_48 {dimension_numbers = #tpu.dot_dimension_numbers<[2], [1], [1], [2], [0, 0, 0, 1, 1, 2], [0], [0]>} : vector<4x32x128xbf16>, vector<4x128x96xbf16>, vector<4x32x96xf32> -> vector<4x32x96xf32>
    %137 = vector.extract_strided_slice %136 {offsets = [0, 0, 0], sizes = [4, 32, 32], strides = [1, 1, 1]} : vector<4x32x96xf32> to vector<4x32x32xf32>
    %138 = arith.truncf %137 : vector<4x32x32xf32> to vector<4x32x32xbf16>
    %139 = vector.extract_strided_slice %136 {offsets = [0, 0, 32], sizes = [4, 32, 32], strides = [1, 1, 1]} : vector<4x32x96xf32> to vector<4x32x32xf32>
    %140 = arith.truncf %139 : vector<4x32x32xf32> to vector<4x32x32xbf16>
    %141 = vector.extract_strided_slice %136 {offsets = [0, 0, 64], sizes = [4, 32, 32], strides = [1, 1, 1]} : vector<4x32x96xf32> to vector<4x32x32xf32>
    %142 = arith.truncf %141 : vector<4x32x32xf32> to vector<4x32x32xbf16>
    %cst_49 = arith.constant dense<0.000000e+00> : vector<4x32x32xf32>
    %143 = tpu.matmul %138, %140, %cst_49 {dimension_numbers = #tpu.dot_dimension_numbers<[2], [2], [1], [1], [0, 0, 0, 1, 1, 1], [0], [0]>} : vector<4x32x32xbf16>, vector<4x32x32xbf16>, vector<4x32x32xf32> -> vector<4x32x32xf32>
    %144 = arith.addf %143, %3 : vector<4x32x32xf32>
    %cst_50 = arith.constant dense<0xFF800000> : vector<4x32xf32>
    %145 = vector.multi_reduction <maximumf>, %144, %cst_50 [2] : vector<4x32x32xf32> to vector<4x32xf32>
    %146 = vector.shape_cast %145 : vector<4x32xf32> to vector<4x32x1xf32>
    %147 = vector.broadcast %146 : vector<4x32x1xf32> to vector<4x32x32xf32>
    %148 = arith.subf %144, %147 : vector<4x32x32xf32>
    %149 = math.exp %148 : vector<4x32x32xf32>
    %cst_51 = arith.constant dense<0.000000e+00> : vector<4x32xf32>
    %150 = vector.multi_reduction <add>, %149, %cst_51 [2] : vector<4x32x32xf32> to vector<4x32xf32>
    %151 = vector.shape_cast %150 : vector<4x32xf32> to vector<4x32x1xf32>
    %152 = tpu.reciprocal %151 {approx = true} : vector<4x32x1xf32> -> vector<4x32x1xf32>
    %153 = vector.broadcast %152 : vector<4x32x1xf32> to vector<4x32x32xf32>
    %154 = arith.mulf %149, %153 : vector<4x32x32xf32>
    %155 = arith.truncf %154 : vector<4x32x32xf32> to vector<4x32x32xbf16>
    %cst_52 = arith.constant dense<0.000000e+00> : vector<4x32x32xf32>
    %156 = tpu.matmul %155, %142, %cst_52 {dimension_numbers = #tpu.dot_dimension_numbers<[2], [1], [1], [2], [0, 0, 0, 1, 1, 2], [0], [0]>} : vector<4x32x32xbf16>, vector<4x32x32xbf16>, vector<4x32x32xf32> -> vector<4x32x32xf32>
    %157 = vector.extract_strided_slice %156 {offsets = [0, 0, 0], sizes = [1, 32, 32], strides = [1, 1, 1]} : vector<4x32x32xf32> to vector<1x32x32xf32>
    %158 = vector.shape_cast %157 : vector<1x32x32xf32> to vector<32x32xf32>
    %159 = vector.extract_strided_slice %156 {offsets = [1, 0, 0], sizes = [1, 32, 32], strides = [1, 1, 1]} : vector<4x32x32xf32> to vector<1x32x32xf32>
    %160 = vector.shape_cast %159 : vector<1x32x32xf32> to vector<32x32xf32>
    %161 = vector.extract_strided_slice %156 {offsets = [2, 0, 0], sizes = [1, 32, 32], strides = [1, 1, 1]} : vector<4x32x32xf32> to vector<1x32x32xf32>
    %162 = vector.shape_cast %161 : vector<1x32x32xf32> to vector<32x32xf32>
    %163 = vector.extract_strided_slice %156 {offsets = [3, 0, 0], sizes = [1, 32, 32], strides = [1, 1, 1]} : vector<4x32x32xf32> to vector<1x32x32xf32>
    %164 = vector.shape_cast %163 : vector<1x32x32xf32> to vector<32x32xf32>
    %165 = tpu.concatenate %158, %160, %162, %164 in 1 : vector<32x32xf32>, vector<32x32xf32>, vector<32x32xf32>, vector<32x32xf32> -> vector<32x128xf32>
    %166 = arith.truncf %165 : vector<32x128xf32> to vector<32x128xbf16>
    %c1_53 = arith.constant 1 : index
    %c0_54 = arith.constant 0 : index
    %c0_55 = arith.constant 0 : index
    %167 = vector.load %arg4[%c1_53, %c0_54, %c0_55] : memref<2x128x128xbf16, #tpu.memory_space<vmem>>, vector<1x128x128xbf16>
    %168 = vector.shape_cast %167 : vector<1x128x128xbf16> to vector<128x128xbf16>
    %cst_56 = arith.constant dense<0.000000e+00> : vector<32x128xf32>
    %169 = tpu.matmul %166, %168, %cst_56 {dimension_numbers = #tpu.dot_dimension_numbers<[1], [0], [0], [1], [0, 0, 1, 1], [], []>} : vector<32x128xbf16>, vector<128x128xbf16>, vector<32x128xf32> -> vector<32x128xf32>
    %170 = arith.addf %104, %169 : vector<32x128xf32>
    %171 = vector.extract_strided_slice %106 {offsets = [2, 0], sizes = [1, 128], strides = [1, 1]} : vector<4x128xf32> to vector<1x128xf32>
    %172 = vector.extract_strided_slice %106 {offsets = [3, 0], sizes = [1, 128], strides = [1, 1]} : vector<4x128xf32> to vector<1x128xf32>
    %cst_57 = arith.constant dense<0.000000e+00> : vector<32xf32>
    %173 = vector.multi_reduction <add>, %170, %cst_57 [1] : vector<32x128xf32> to vector<32xf32>
    %174 = vector.shape_cast %173 : vector<32xf32> to vector<32x1xf32>
    %cst_58 = arith.constant 1.280000e+02 : f32
    %175 = vector.broadcast %cst_58 : f32 to vector<32x1xf32>
    %176 = arith.divf %174, %175 : vector<32x1xf32>
    %177 = vector.broadcast %176 : vector<32x1xf32> to vector<32x128xf32>
    %178 = arith.subf %170, %177 : vector<32x128xf32>
    %179 = arith.mulf %178, %178 : vector<32x128xf32>
    %cst_59 = arith.constant dense<0.000000e+00> : vector<32xf32>
    %180 = vector.multi_reduction <add>, %179, %cst_59 [1] : vector<32x128xf32> to vector<32xf32>
    %181 = vector.shape_cast %180 : vector<32xf32> to vector<32x1xf32>
    %cst_60 = arith.constant 1.280000e+02 : f32
    %182 = vector.broadcast %cst_60 : f32 to vector<32x1xf32>
    %183 = arith.divf %181, %182 : vector<32x1xf32>
    %184 = vector.broadcast %176 : vector<32x1xf32> to vector<32x128xf32>
    %185 = arith.subf %170, %184 : vector<32x128xf32>
    %cst_61 = arith.constant 9.99999974E-6 : f32
    %186 = vector.broadcast %cst_61 : f32 to vector<32x1xf32>
    %187 = arith.addf %183, %186 : vector<32x1xf32>
    %188 = math.rsqrt %187 : vector<32x1xf32>
    %189 = vector.broadcast %188 : vector<32x1xf32> to vector<32x128xf32>
    %190 = arith.mulf %185, %189 : vector<32x128xf32>
    %191 = vector.broadcast %171 : vector<1x128xf32> to vector<32x128xf32>
    %192 = arith.mulf %190, %191 : vector<32x128xf32>
    %193 = vector.broadcast %172 : vector<1x128xf32> to vector<32x128xf32>
    %194 = arith.addf %192, %193 : vector<32x128xf32>
    %195 = arith.truncf %194 : vector<32x128xf32> to vector<32x128xbf16>
    %c1_62 = arith.constant 1 : index
    %c0_63 = arith.constant 0 : index
    %c0_64 = arith.constant 0 : index
    %196 = vector.load %arg5[%c1_62, %c0_63, %c0_64] : memref<2x128x512xbf16, #tpu.memory_space<vmem>>, vector<1x128x512xbf16>
    %197 = vector.shape_cast %196 : vector<1x128x512xbf16> to vector<128x512xbf16>
    %cst_65 = arith.constant dense<0.000000e+00> : vector<32x512xf32>
    %198 = tpu.matmul %195, %197, %cst_65 {dimension_numbers = #tpu.dot_dimension_numbers<[1], [0], [0], [1], [0, 0, 1, 1], [], []>} : vector<32x128xbf16>, vector<128x512xbf16>, vector<32x512xf32> -> vector<32x512xf32>
    %cst_66 = arith.constant 0.000000e+00 : f32
    %199 = vector.broadcast %cst_66 : f32 to vector<32x512xf32>
    %200 = arith.maximumf %198, %199 : vector<32x512xf32>
    %201 = arith.truncf %200 : vector<32x512xf32> to vector<32x512xbf16>
    %c1_67 = arith.constant 1 : index
    %c0_68 = arith.constant 0 : index
    %c0_69 = arith.constant 0 : index
    %202 = vector.load %arg6[%c1_67, %c0_68, %c0_69] : memref<2x512x128xbf16, #tpu.memory_space<vmem>>, vector<1x512x128xbf16>
    %203 = vector.shape_cast %202 : vector<1x512x128xbf16> to vector<512x128xbf16>
    %cst_70 = arith.constant dense<0.000000e+00> : vector<32x128xf32>
    %204 = tpu.matmul %201, %203, %cst_70 {dimension_numbers = #tpu.dot_dimension_numbers<[1], [0], [0], [1], [0, 0, 1, 1], [], []>} : vector<32x512xbf16>, vector<512x128xbf16>, vector<32x128xf32> -> vector<32x128xf32>
    %205 = arith.addf %170, %204 : vector<32x128xf32>
    %c0_71 = arith.constant 0 : index
    %c0_72 = arith.constant 0 : index
    %206 = vector.load %arg7[%c0_71, %c0_72] : memref<2x128xf32, #tpu.memory_space<vmem>>, vector<2x128xf32>
    %207 = vector.extract_strided_slice %206 {offsets = [0, 0], sizes = [1, 128], strides = [1, 1]} : vector<2x128xf32> to vector<1x128xf32>
    %208 = vector.extract_strided_slice %206 {offsets = [1, 0], sizes = [1, 128], strides = [1, 1]} : vector<2x128xf32> to vector<1x128xf32>
    %cst_73 = arith.constant dense<0.000000e+00> : vector<32xf32>
    %209 = vector.multi_reduction <add>, %205, %cst_73 [1] : vector<32x128xf32> to vector<32xf32>
    %210 = vector.shape_cast %209 : vector<32xf32> to vector<32x1xf32>
    %cst_74 = arith.constant 1.280000e+02 : f32
    %211 = vector.broadcast %cst_74 : f32 to vector<32x1xf32>
    %212 = arith.divf %210, %211 : vector<32x1xf32>
    %213 = vector.broadcast %212 : vector<32x1xf32> to vector<32x128xf32>
    %214 = arith.subf %205, %213 : vector<32x128xf32>
    %215 = arith.mulf %214, %214 : vector<32x128xf32>
    %cst_75 = arith.constant dense<0.000000e+00> : vector<32xf32>
    %216 = vector.multi_reduction <add>, %215, %cst_75 [1] : vector<32x128xf32> to vector<32xf32>
    %217 = vector.shape_cast %216 : vector<32xf32> to vector<32x1xf32>
    %cst_76 = arith.constant 1.280000e+02 : f32
    %218 = vector.broadcast %cst_76 : f32 to vector<32x1xf32>
    %219 = arith.divf %217, %218 : vector<32x1xf32>
    %220 = vector.broadcast %212 : vector<32x1xf32> to vector<32x128xf32>
    %221 = arith.subf %205, %220 : vector<32x128xf32>
    %cst_77 = arith.constant 9.99999974E-6 : f32
    %222 = vector.broadcast %cst_77 : f32 to vector<32x1xf32>
    %223 = arith.addf %219, %222 : vector<32x1xf32>
    %224 = math.rsqrt %223 : vector<32x1xf32>
    %225 = vector.broadcast %224 : vector<32x1xf32> to vector<32x128xf32>
    %226 = arith.mulf %221, %225 : vector<32x128xf32>
    %227 = vector.broadcast %207 : vector<1x128xf32> to vector<32x128xf32>
    %228 = arith.mulf %226, %227 : vector<32x128xf32>
    %229 = vector.broadcast %208 : vector<1x128xf32> to vector<32x128xf32>
    %230 = arith.addf %228, %229 : vector<32x128xf32>
    %231 = arith.truncf %230 : vector<32x128xf32> to vector<32x128xbf16>
    %c0_78 = arith.constant 0 : index
    %c0_79 = arith.constant 0 : index
    %232 = vector.load %arg8[%c0_78, %c0_79] : memref<128x128xbf16, #tpu.memory_space<vmem>>, vector<128x128xbf16>
    %cst_80 = arith.constant dense<0.000000e+00> : vector<32x128xf32>
    %233 = tpu.matmul %231, %232, %cst_80 {dimension_numbers = #tpu.dot_dimension_numbers<[1], [0], [0], [1], [0, 0, 1, 1], [], []>} : vector<32x128xbf16>, vector<128x128xbf16>, vector<32x128xf32> -> vector<32x128xf32>
    %c0_81 = arith.constant 0 : index
    %c0_82 = arith.constant 0 : index
    %234 = vector.load %arg9[%c0_81, %c0_82] : memref<32x128xf32, #tpu.memory_space<vmem>>, vector<32x128xf32>
    tpu.vector_store %arg9[%c0_81, %c0_82], %233 {strides = array<i32>} : memref<32x128xf32, #tpu.memory_space<vmem>>, vector<32x128xf32>,
    return
  }
}

</mosaic_0001>

<bundles_post_ra>
// kernel: transformer_forward.1
= control target key start
LH: loop header
LB: loop body
LE: loop exit
PB: predicated region body
PF: predicated region fallthrough
CT: control target
= control target key end

     0   :  { %s7628_s0 = inlined_call_operand.vmem [shape: f32[32,128], index: 0, kind: input, shape index: {}]   ;;  %s7629_s1 = inlined_call_operand.vmem [shape: f32[32,32], index: 1, kind: input, shape index: {}]   ;;  %s7630_s2 = inlined_call_operand.vmem [shape: f32[2,4,128], index: 2, kind: input, shape index: {}]   ;;  %s7631_s3 = inlined_call_operand.vmem [shape: bf16[2,4,128,96], index: 3, kind: input, shape index: {}]   ;;  %s7632_s4 = inlined_call_operand.vmem [shape: bf16[2,128,128], index: 4, kind: input, shape index: {}]   ;;  %s7633_s5 = inlined_call_operand.vmem [shape: bf16[2,128,512], index: 5, kind: input, shape index: {}]   ;;  %s7634_s6 = inlined_call_operand.vmem [shape: bf16[2,512,128], index: 6, kind: input, shape index: {}]   ;;  %s7635_s7 = inlined_call_operand.vmem [shape: f32[2,128], index: 7, kind: input, shape index: {}]   ;;  %s7636_s8 = inlined_call_operand.vmem [shape: bf16[128,128], index: 8, kind: input, shape index: {}]   ;;  %s7637_s9 = inlined_call_operand.hbm [shape: f32[32,128], index: 9, kind: output, shape index: {}]  }
   0x1   :  { %v34_v0 = vld [vmem:[%s7628_s0] sm:$0xff]  ;;  %v36_v1 = vld [vmem:[%s7628_s0 + $0x10] sm:$0xff]  ;;  %v35_v2 = vld [vmem:[%s7628_s0 + $0x8] sm:$0xff] }
   0x2   :  { %43 = vadd.xlane.f32.xlu0 %v34_v0  ;;  %47 = vadd.xlane.f32.xlu1 %v36_v1  ;;  %v37_v3 = vld [vmem:[%s7628_s0 + $0x18] sm:$0xff]  ;;  %v5669_v4 = vld [vmem:[%s7631_s3] sm:$0xff]  }
   0x3   :  { %v5670_v5 = vld [vmem:[%s7631_s3 + $0x40] sm:$0xff]   ;;  %5238 = vmatprep.subr.bf16.mxu0 %v5669_v4 }
   0x4   :  { %5258 = vmatprep.subr.bf16.mxu1 %v5670_v5  ;;  %5239 = vmatpush3.bf16.msra.mxu0 %v5669_v4 }
   0x5   :  { %5259 = vmatpush3.bf16.msra.mxu1 %v5670_v5 }
   0x6   :  { %45 = vadd.xlane.f32.xlu0 %v35_v2  ;;  %49 = vadd.xlane.f32.xlu1 %v37_v3 }
   0x7   :  { %14 = vsyncpa [#allocation3], 0  ;;  %v5671_v22 = vld [vmem:[%s7631_s3 + $0x8] sm:$0xff]   ;;  %v5673_v24 = vld [vmem:[%s7631_s3 + $0x10] sm:$0xff]   ;;  %v88_v43 = vlaneseq  ;;  %vm572_vm0 = vcmask 261120   ;;  %s6119_s20 = smov 96  }
   0x8   :  { %v5672_v23 = vld [vmem:[%s7631_s3 + $0x48] sm:$0xff]   ;;  %5240 = vmatprep.subr.bf16.mxu0 %v5671_v22  ;;  %v5674_v25 = vld [vmem:[%s7631_s3 + $0x50] sm:$0xff]   ;;  %v5675_v26 = vld [vmem:[%s7631_s3 + $0x18] sm:$0xff]   ;;  %s6120_s29 = smov 64   ;;  %s6121_s17 = smov 32   ;;  %vm1315_vm1 = vcmask 523264  }
   0x9   :  { %5260 = vmatprep.subr.bf16.mxu1 %v5672_v23  ;;  %5241 = vmatpush3.bf16.msra.mxu0 %v5671_v22  ;;  %v5676_v27 = vld [vmem:[%s7631_s3 + $0x58] sm:$0xff]   ;;  %v5677_v28 = vld [vmem:[%s7631_s3 + $0x20] sm:$0xff]   ;;  %v5679_v30 = vld [vmem:[%s7631_s3 + $0x28] sm:$0xff]   ;;  %v6258_v49 = vshrl.u32 %v88_v43, 7  ;;  %vm1320_vm2 = vcmask 785408  }
   0xa   :  { %5261 = vmatpush3.bf16.msra.mxu1 %v5672_v23  ;;  %5242 = vmatprep.subr.bf16.mxu0 %v5673_v24  ;;  %v5678_v29 = vld [vmem:[%s7631_s3 + $0x60] sm:$0xff]   ;;  %v5680_v31 = vld [vmem:[%s7631_s3 + $0x68] sm:$0xff]   ;;  %v5681_v32 = vld [vmem:[%s7631_s3 + $0x30] sm:$0xff]  }
   0xb   :  { %5262 = vmatprep.subr.bf16.mxu1 %v5674_v25  ;;  %v5682_v33 = vld [vmem:[%s7631_s3 + $0x70] sm:$0xff]   ;;  %v5683_v34 = vld [vmem:[%s7631_s3 + $0x38] sm:$0xff]   ;;  %v5685_v36 = vld [vmem:[%s7631_s3 + $0x80] sm:$0xff]   ;;  %v6261_v52 = vsub.s32 0, %v6258_v49  ;;  %v6269_v57 = vsub.s32 1, %v6258_v49 }
   0xc   :  { %v5684_v35 = vld [vmem:[%s7631_s3 + $0x78] sm:$0xff]   ;;  %v5686_v37 = vld [vmem:[%s7631_s3 + $0xc0] sm:$0xff]   ;;  %v5698_v22 = vld [vmem:[%s7631_s3 + $0xf0] sm:$0xff]  }
   0xd   :  { %5243 = vmatpush3.bf16.msra.mxu0 %v5673_v24  ;;  %v42_v53 = vld [vmem:[%s7630_s2] sm:$0xf]  ;;  %v5699_v23 = vld [vmem:[%s7631_s3 + $0xb8] sm:$0xff]  }
   0xe   :  { %5263 = vmatpush3.bf16.msra.mxu1 %v5674_v25  ;;  %5244 = vmatprep.subr.bf16.mxu0 %v5675_v26  ;;  %v91_v56 = vrot.slane %v42_v53, %v6261_v52  ;;  %v99_v62 = vrot.slane %v42_v53, %v6269_v57  ;;  %v5700_v24 = vld [vmem:[%s7631_s3 + $0xf8] sm:$0xff]  }
   0xf   :  { %5264 = vmatprep.subr.bf16.mxu1 %v5676_v27 }
  0x11   :  { %5245 = vmatpush3.bf16.msra.mxu0 %v5675_v26 }
  0x12   :  { %5265 = vmatpush3.bf16.msra.mxu1 %v5676_v27  ;;  %5246 = vmatprep.subr.bf16.mxu0 %v5677_v28 }
  0x13   :  { %5266 = vmatprep.subr.bf16.mxu1 %v5678_v29 }
  0x15   :  { %5247 = vmatpush3.bf16.msra.mxu0 %v5677_v28 }
  0x16   :  { %5267 = vmatpush3.bf16.msra.mxu1 %v5678_v29  ;;  %5248 = vmatprep.subr.bf16.mxu0 %v5679_v30 }
  0x17   :  { %5268 = vmatprep.subr.bf16.mxu1 %v5680_v31 }
  0x19   :  { %5249 = vmatpush3.bf16.msra.mxu0 %v5679_v30 }
  0x1a   :  { %5269 = vmatpush3.bf16.msra.mxu1 %v5680_v31  ;;  %5250 = vmatprep.subr.bf16.mxu0 %v5681_v32 }
  0x1b   :  { %5270 = vmatprep.subr.bf16.mxu1 %v5682_v33 }
  0x1d   :  { %5251 = vmatpush3.bf16.msra.mxu0 %v5681_v32 }
  0x1e   :  { %5271 = vmatpush3.bf16.msra.mxu1 %v5682_v33  ;;  %5252 = vmatprep.subr.bf16.mxu0 %v5683_v34 }
  0x1f   :  { %5272 = vmatprep.subr.bf16.mxu1 %v5684_v35 }
  0x21   :  { %5253 = vmatpush3.bf16.msra.mxu0 %v5683_v34 }
  0x22   :  { %5273 = vmatpush3.bf16.msra.mxu1 %v5684_v35  ;;  %5278 = vmatprep.subr.bf16.mxu0 %v5685_v36 }
  0x23   :  { %5298 = vmatprep.subr.bf16.mxu1 %v5686_v37 }
  0x8f   :  { %v44_v6 = vpop.xlane.xlu0 %43  ;;  %v48_v7 = vpop.xlane.xlu1 %47 }
  0x90   :  { %v52_v8 = vmul.f32 0.0078125, %v44_v6  ;;  %v54_v9 = vmul.f32 0.0078125, %v48_v7 }
  0x92   :  { %v6194_v10 = vsub.f32 %v34_v0, %v52_v8  ;;  %v6196_v11 = vsub.f32 %v36_v1, %v54_v9 }
  0x93   :  { %v46_v12 = vpop.xlane.xlu0 %45  ;;  %v50_v13 = vpop.xlane.xlu1 %49 }
  0x94   :  { %v53_v14 = vmul.f32 0.0078125, %v46_v12  ;;  %v60_v15 = vmul.f32 %v6194_v10, %v6194_v10  ;;  %v55_v16 = vmul.f32 0.0078125, %v50_v13  ;;  %v62_v17 = vmul.f32 %v6196_v11, %v6196_v11  ;;  %v5687_v12 = vld [vmem:[%s7631_s3 + $0x88] sm:$0xff]   ;;  %v5689_v13 = vld [vmem:[%s7631_s3 + $0x90] sm:$0xff]  }
  0x96   :  { %64 = vadd.xlane.f32.xlu0 %v60_v15  ;;  %v6202_v18 = vsub.f32 %v35_v2, %v53_v14  ;;  %v6204_v19 = vsub.f32 %v37_v3, %v55_v16  ;;  %v5690_v14 = vld [vmem:[%s7631_s3 + $0xd0] sm:$0xff]   ;;  %v5691_v15 = vld [vmem:[%s7631_s3 + $0x98] sm:$0xff]  }
  0x97   :  { %v5692_v16 = vld [vmem:[%s7631_s3 + $0xd8] sm:$0xff]  }
  0x98   :  { %v61_v20 = vmul.f32 %v6202_v18, %v6202_v18  ;;  %v63_v21 = vmul.f32 %v6204_v19, %v6204_v19 }
  0x9a   :  { %68 = vadd.xlane.f32.xlu0 %v62_v17  ;;  %66 = vadd.xlane.f32.xlu1 %v61_v20  ;;  %v5693_v17 = vld [vmem:[%s7631_s3 + $0xa0] sm:$0xff]   ;;  %v5696_v20 = vld [vmem:[%s7631_s3 + $0xe8] sm:$0xff]  }
  0x9e   :  { %70 = vadd.xlane.f32.xlu1 %v63_v21  ;;  %v5697_v21 = vld [vmem:[%s7631_s3 + $0xb0] sm:$0xff]  }
 0x123   :  { %v65_v38 = vpop.xlane.xlu0 %64 }
 0x124   :  { %v72_v39 = vmul.f32 0.0078125, %v65_v38 }
 0x126   :  { %v76_v40 = vadd.f32 1e-05, %v72_v39 }
 0x127   :  { %v67_v41 = vpop.xlane.xlu1 %66  ;;  %v69_v42 = vpop.xlane.xlu0 %68 }
 0x128   :  { %5917 = vrsqrt.f32 %v76_v40  ;;  %v73_v44 = vmul.f32 0.0078125, %v67_v41  ;;  %v74_v45 = vmul.f32 0.0078125, %v69_v42 }
 0x12a   :  { %v77_v46 = vadd.f32 1e-05, %v73_v44  ;;  %v78_v47 = vadd.f32 1e-05, %v74_v45 }
 0x12b   :  { %v71_v48 = vpop.xlane.xlu1 %70 }
 0x12c   :  { %5919 = vrsqrt.f32 %v77_v46  ;;  %v75_v50 = vmul.f32 0.0078125, %v71_v48 }
 0x12d   :  { %5921 = vrsqrt.f32 %v78_v47 }
 0x12e   :  { %v79_v51 = vadd.f32 1e-05, %v75_v50 }
 0x130   :  { %5923 = vrsqrt.f32 %v79_v51 }
 0x132   :  { %v5918_v54 = vpop.eup %5917 }
 0x133   :  { %v84_v55 = vmul.f32 %v5918_v54, %v6194_v10 }
 0x135   :  { %v92_v61 = vmul.f32 %v91_v56, %v84_v55 }
 0x136   :  { %v5920_v58 = vpop.eup %5919 }
 0x137   :  { %v5922_v59 = vpop.eup %5921  ;;  %v85_v60 = vmul.f32 %v5920_v58, %v6202_v18  ;;  %v100_v2 = vadd.f32 %v99_v62, %v92_v61  ;;  %v5694_v18 = vld [vmem:[%s7631_s3 + $0xe0] sm:$0xff]  }
 0x138   :  { %v86_v63 = vmul.f32 %v5922_v59, %v6196_v11  ;;  %v5688_v11 = vld [vmem:[%s7631_s3 + $0xc8] sm:$0xff]  }
 0x139   :  { %v93_v0 = vmul.f32 %v91_v56, %v85_v60 }
 0x13a   :  { %v5924_v1 = vpop.eup %5923  ;;  %v94_v5 = vmul.f32 %v91_v56, %v86_v63 }
 0x13b   :  { %v101_v3 = vadd.f32 %v99_v62, %v93_v0  ;;  %v87_v4 = vmul.f32 %v5924_v1, %v6204_v19  ;;  %v5695_v19 = vld [vmem:[%s7631_s3 + $0xa8] sm:$0xff]  }
 0x13c   :  { %v102_v8 = vadd.f32 %v99_v62, %v94_v5 }
 0x13d   :  { %v104_v6 = vpack.c.bf16 %v101_v3, %v100_v2  ;;  %v95_v7 = vmul.f32 %v91_v56, %v87_v4  ;;  %v40_v4 = vld [vmem:[%s7629_s1 + $0x10] sm:$0xff] }
 0x13f   :  { %5254 = vmatprep.mubr.bf16.mxu0 %v104_v6  ;;  %5274 = vmatprep.mubr.bf16.mxu1 %v104_v6  ;;  %v103_v9 = vadd.f32 %v99_v62, %v95_v7 }
 0x141   :  { %v105_v10 = vpack.c.bf16 %v103_v9, %v102_v8 }
 0x143   :  { %5255 = vmatmul.mubr.bf16.vlgmr.msra.gmra.mrb[0].mxu0 %v105_v10  ;;  %5275 = vmatmul.mubr.bf16.vlgmr.msra.gmra.mrb[0].mxu1 %v105_v10 }
 0x144   :  { %5279 = vmatpush3.bf16.msra.mxu0 %v5685_v36  ;;  %5299 = vmatpush3.bf16.msra.mxu1 %v5686_v37 }
 0x145   :  { %5294 = vmatprep.mubr.bf16.mxu0 %v104_v6  ;;  %5314 = vmatprep.mubr.bf16.mxu1 %v104_v6  ;;  %v41_v6 = vld [vmem:[%s7629_s1 + $0x18] sm:$0xff] }
 0x146   :  { %5280 = vmatprep.subr.bf16.mxu0 %v5687_v12  ;;  %5300 = vmatprep.subr.bf16.mxu1 %v5688_v11 }
 0x148   :  { %5281 = vmatpush3.bf16.msra.mxu0 %v5687_v12  ;;  %5301 = vmatpush3.bf16.msra.mxu1 %v5688_v11  ;;  %v39_v11 = vld [vmem:[%s7629_s1 + $0x8] sm:$0xff] }
 0x149   :  { %5282 = vmatprep.subr.bf16.mxu0 %v5689_v13  ;;  %5302 = vmatprep.subr.bf16.mxu1 %v5690_v14 }
 0x14c   :  { %5283 = vmatpush3.bf16.msra.mxu0 %v5689_v13  ;;  %5303 = vmatpush3.bf16.msra.mxu1 %v5690_v14 }
 0x14d   :  { %5284 = vmatprep.subr.bf16.mxu0 %v5691_v15  ;;  %5304 = vmatprep.subr.bf16.mxu1 %v5692_v16 }
 0x150   :  { %5285 = vmatpush3.bf16.msra.mxu0 %v5691_v15  ;;  %5305 = vmatpush3.bf16.msra.mxu1 %v5692_v16 }
 0x151   :  { %5286 = vmatprep.subr.bf16.mxu0 %v5693_v17  ;;  %5306 = vmatprep.subr.bf16.mxu1 %v5694_v18 }
 0x154   :  { %5287 = vmatpush3.bf16.msra.mxu0 %v5693_v17  ;;  %5307 = vmatpush3.bf16.msra.mxu1 %v5694_v18 }
 0x155   :  { %5288 = vmatprep.subr.bf16.mxu0 %v5695_v19  ;;  %5308 = vmatprep.subr.bf16.mxu1 %v5696_v20 }
 0x158   :  { %5289 = vmatpush3.bf16.msra.mxu0 %v5695_v19  ;;  %5309 = vmatpush3.bf16.msra.mxu1 %v5696_v20  ;;  %v38_v19 = vld [vmem:[%s7629_s1] sm:$0xff] }
 0x159   :  { %5290 = vmatprep.subr.bf16.mxu0 %v5697_v21  ;;  %5310 = vmatprep.subr.bf16.mxu1 %v5698_v22 }
 0x15c   :  { %5291 = vmatpush3.bf16.msra.mxu0 %v5697_v21  ;;  %5311 = vmatpush3.bf16.msra.mxu1 %v5698_v22 }
 0x15d   :  { %5292 = vmatprep.subr.bf16.mxu0 %v5699_v23  ;;  %5312 = vmatprep.subr.bf16.mxu1 %v5700_v24 }
 0x160   :  { %5293 = vmatpush3.bf16.msra.mxu0 %v5699_v23  ;;  %5313 = vmatpush3.bf16.msra.mxu1 %v5700_v24 }
 0x163   :  { %5295 = vmatmul.mubr.bf16.vlgmr.msra.gmra.mrb[4].mxu0 %v105_v10  ;;  %5315 = vmatmul.mubr.bf16.vlgmr.msra.gmra.mrb[4].mxu1 %v105_v10 }
 0x216   :  { %v5256_v25 = vpop.f32.mrb[0].mxu0  ;;  %v5276_v26 = vpop.f32.mrb[0].mxu1 }
 0x217   :  { %v252_v27 = vpop.f32.mrb[1].mxu0  ;;  %v349_v28 = vpop.f32.mrb[1].mxu1 }
 0x218   :  { %v5257_v29 = vpop.f32.mrb[2].mxu0  ;;  %v5277_v30 = vpop.f32.mrb[2].mxu1 }
 0x219   :  { %v6317_v31 = vpack.c.bf16 %v5257_v29, %v5256_v25  ;;  %v6319_v32 = vpack.c.bf16 %v5277_v30, %v5276_v26  ;;  %v255_v33 = vpop.f32.mrb[3].mxu0  ;;  %v352_v34 = vpop.f32.mrb[3].mxu1 }
 0x21a   :  { %v6321_v35 = vpack.c.bf16 %v255_v33, %v252_v27  ;;  %v6323_v36 = vpack.c.bf16 %v352_v34, %v349_v28 }
 0x21c   :  { %636 = vrot.lane.b32.xlu1 %v6323_v36, %s6119_s20  ;;  %5330 = vmatprep.mubr.msk.bf16.mxu1 %vm572_vm0, %v6323_v36 }
 0x21d   :  { %568 = vrot.lane.b32.xlu0 %v6321_v35, %s6119_s20  ;;  %5322 = vmatprep.mubr.msk.bf16.mxu0 %vm572_vm0, %v6321_v35 }
 0x220   :  { %570 = vrot.lane.b32.xlu1 %v6317_v31, %s6119_s20 }
 0x224   :  { %638 = vrot.lane.b32.xlu1 %v6319_v32, %s6119_s20 }
 0x236   :  { %v5296_v37 = vpop.f32.mrb[4].mxu0  ;;  %v5316_v38 = vpop.f32.mrb[4].mxu1 }
 0x237   :  { %v446_v39 = vpop.f32.mrb[5].mxu0  ;;  %v543_v40 = vpop.f32.mrb[5].mxu1 }
 0x238   :  { %v5297_v41 = vpop.f32.mrb[6].mxu0  ;;  %v5317_v42 = vpop.f32.mrb[6].mxu1 }
 0x239   :  { %v6337_v43 = vpack.c.bf16 %v5297_v41, %v5296_v37  ;;  %v6339_v44 = vpack.c.bf16 %v5317_v42, %v5316_v38  ;;  %v449_v45 = vpop.f32.mrb[7].mxu0  ;;  %v546_v46 = vpop.f32.mrb[7].mxu1 }
 0x23a   :  { %v6341_v47 = vpack.c.bf16 %v449_v45, %v446_v39  ;;  %v6343_v48 = vpack.c.bf16 %v546_v46, %v543_v40 }
 0x23c   :  { %770 = vrot.lane.b32.xlu1 %v6343_v48, %s6119_s20  ;;  %703 = vrot.lane.b32.xlu0 %v6341_v47, %s6119_s20 }
 0x240   :  { %772 = vrot.lane.b32.xlu1 %v6339_v44, %s6119_s20  ;;  %705 = vrot.lane.b32.xlu0 %v6337_v43, %s6119_s20 }
 0x28e   :  { %v637_v50 = vpop.permute.xlu1 %636 }
 0x28f   :  { %v569_v51 = vpop.permute.xlu0 %568  ;;  %5588 = vmatprep.subr.msk.bf16.mxu1 %vm572_vm0, %v637_v50  ;;  %v647_v53 = vsel %vm572_vm0, %v637_v50, 0 }
 0x290   :  { %5586 = vmatprep.subr.msk.bf16.mxu0 %vm572_vm0, %v569_v51  ;;  %v580_v54 = vsel %vm572_vm0, %v569_v51, 0  ;;  %5327 = vmatpush3.bf16.xpose.msra.mxu1 %v647_v53 }
 0x291   :  { %5319 = vmatpush3.bf16.xpose.msra.mxu0 %v580_v54 }
 0x292   :  { %v571_v55 = vpop.permute.xlu1 %570 }
 0x293   :  { %5587 = vmatprep.subr.msk.bf16.mxu0 %vm572_vm0, %v571_v55  ;;  %v583_v59 = vsel %vm572_vm0, %v571_v55, 0 }
 0x296   :  { %v639_v56 = vpop.permute.xlu1 %638 }
 0x297   :  { %5589 = vmatprep.subr.msk.bf16.mxu1 %vm572_vm0, %v639_v56  ;;  %v650_v58 = vsel %vm572_vm0, %v639_v56, 0 }
 0x298   :  { %5329 = vmatpush3.bf16.xpose.msra.mxu1 %v650_v58 }
 0x299   :  { %5321 = vmatpush3.bf16.xpose.msra.mxu0 %v583_v59 }
 0x29f   :  { %5331 = vmatmul.mubr.msk.bf16.vlgmr.msra.gmra.mrb[8].mxu1 %vm572_vm0, %v6319_v32 }
 0x2a0   :  { %5323 = vmatmul.mubr.msk.bf16.vlgmr.msra.gmra.mrb[8].mxu0 %vm572_vm0, %v6317_v31  ;;  %5346 = vmatprep.mubr.msk.bf16.mxu1 %vm572_vm0, %v6343_v48 }
 0x2a1   :  { %5338 = vmatprep.mubr.msk.bf16.mxu0 %vm572_vm0, %v6341_v47 }
 0x2ae   :  { %v771_v60 = vpop.permute.xlu1 %770  ;;  %v704_v61 = vpop.permute.xlu0 %703 }
 0x2af   :  { %5590 = vmatprep.subr.msk.bf16.mxu0 %vm572_vm0, %v704_v61  ;;  %5592 = vmatprep.subr.msk.bf16.mxu1 %vm572_vm0, %v771_v60  ;;  %v714_v62 = vsel %vm572_vm0, %v704_v61, 0  ;;  %v781_v63 = vsel %vm572_vm0, %v771_v60, 0 }
 0x2b0   :  { %5335 = vmatpush3.bf16.xpose.msra.mxu0 %v714_v62  ;;  %5343 = vmatpush3.bf16.xpose.msra.mxu1 %v781_v63 }
 0x2b2   :  { %v773_v0 = vpop.permute.xlu1 %772  ;;  %v706_v1 = vpop.permute.xlu0 %705 }
 0x2b3   :  { %5591 = vmatprep.subr.msk.bf16.mxu0 %vm572_vm0, %v706_v1  ;;  %5593 = vmatprep.subr.msk.bf16.mxu1 %vm572_vm0, %v773_v0  ;;  %v717_v2 = vsel %vm572_vm0, %v706_v1, 0  ;;  %v784_v3 = vsel %vm572_vm0, %v773_v0, 0 }
 0x2b8   :  { %5337 = vmatpush3.bf16.xpose.msra.mxu0 %v717_v2  ;;  %5345 = vmatpush3.bf16.xpose.msra.mxu1 %v784_v3 }
 0x2bf   :  { %5339 = vmatmul.mubr.msk.bf16.vlgmr.msra.gmra.mrb[12].mxu0 %vm572_vm0, %v6337_v43  ;;  %5347 = vmatmul.mubr.msk.bf16.vlgmr.msra.gmra.mrb[12].mxu1 %vm572_vm0, %v6339_v44 }
 0x372   :  { %v5332_v5 = vpop.f32.mrb[8].mxu1 }
 0x373   :  { %v5324_v7 = vpop.f32.mrb[8].mxu0  ;;  %v686_v8 = vpop.f32.mrb[9].mxu1  ;;  %v6394_v16 = vadd.f32 %v5332_v5, %v40_v4 }
 0x374   :  { %v6387_v9 = vadd.f32 %v5324_v7, %v40_v4  ;;  %v619_v10 = vpop.f32.mrb[9].mxu0  ;;  %v5333_v12 = vpop.f32.mrb[10].mxu1  ;;  %v6413_v26 = vadd.f32 %v686_v8, %v38_v19 }
 0x375   :  { %v5325_v13 = vpop.f32.mrb[10].mxu0  ;;  %v6392_v14 = vadd.f32 %v5333_v12, %v41_v6  ;;  %v689_v15 = vpop.f32.mrb[11].mxu1  ;;  %v6405_v22 = vadd.f32 %v619_v10, %v38_v19  ;;  %v853_v23 = vsel %vm572_vm0, %v6394_v16, -inf }
 0x376   :  { %v622_v17 = vpop.f32.mrb[11].mxu0  ;;  %v841_v18 = vsel %vm572_vm0, %v6387_v9, -inf  ;;  %v6409_v24 = vadd.f32 %v689_v15, %v39_v11  ;;  %v6419_v29 = vadd.f32 %v5325_v13, %v41_v6  ;;  %v847_v30 = vsel %vm572_vm0, %v6413_v26, -inf }
 0x377   :  { %v6401_v20 = vadd.f32 %v622_v17, %v39_v11  ;;  %842 = vmax.xlane.f32.xlu0 %v841_v18  ;;  %v856_v21 = vsel %vm572_vm0, %v6392_v14, -inf  ;;  %v835_v27 = vsel %vm572_vm0, %v6405_v22, -inf }
 0x378   :  { %857 = vmax.xlane.f32.xlu1 %v856_v21  ;;  %v850_v28 = vsel %vm572_vm0, %v6409_v24, -inf  ;;  %v844_v33 = vsel %vm572_vm0, %v6419_v29, -inf }
 0x379   :  { %v838_v25 = vsel %vm572_vm0, %v6401_v20, -inf }
 0x37b   :  { %854 = vmax.xlane.f32.xlu0 %v853_v23 }
 0x37c   :  { %839 = vmax.xlane.f32.xlu1 %v838_v25 }
 0x37f   :  { %836 = vmax.xlane.f32.xlu0 %v835_v27 }
 0x380   :  { %851 = vmax.xlane.f32.xlu1 %v850_v28 }
 0x383   :  { %848 = vmax.xlane.f32.xlu0 %v847_v30 }
 0x387   :  { %845 = vmax.xlane.f32.xlu0 %v844_v33 }
 0x391   :  { %1080 = vrot.lane.b32.xlu1 %v6323_v36, %s6120_s29 }
 0x392   :  { %v5348_v34 = vpop.f32.mrb[12].mxu1  ;;  %v5340_v37 = vpop.f32.mrb[12].mxu0 }
 0x393   :  { %v6427_v38 = vadd.f32 %v5340_v37, %v40_v4  ;;  %v753_v39 = vpop.f32.mrb[13].mxu0  ;;  %v820_v40 = vpop.f32.mrb[13].mxu1  ;;  %v6429_v45 = vadd.f32 %v5348_v34, %v40_v4 }
 0x394   :  { %v5341_v41 = vpop.f32.mrb[14].mxu0  ;;  %v5349_v42 = vpop.f32.mrb[14].mxu1  ;;  %v6435_v36 = vadd.f32 %v753_v39, %v38_v19  ;;  %v6441_v54 = vadd.f32 %v820_v40, %v38_v19 }
 0x395   :  { %v756_v46 = vpop.f32.mrb[15].mxu0  ;;  %v823_v50 = vpop.f32.mrb[15].mxu1  ;;  %1021 = vrot.lane.b32.xlu1 %v6317_v31, %s6120_s29  ;;  %v865_v51 = vsel %vm572_vm0, %v6427_v38, -inf  ;;  %v877_v53 = vsel %vm572_vm0, %v6429_v45, -inf  ;;  %v6447_v56 = vadd.f32 %v5341_v41, %v41_v6 }
 0x396   :  { %866 = vmax.xlane.f32.xlu0 %v865_v51  ;;  %v859_v55 = vsel %vm572_vm0, %v6435_v36, -inf  ;;  %v871_v31 = vsel %vm572_vm0, %v6441_v54, -inf  ;;  %v6457_v59 = vadd.f32 %v756_v46, %v39_v11  ;;  %v6461_v61 = vadd.f32 %v823_v50, %v39_v11 }
 0x397   :  { %v868_v58 = vsel %vm572_vm0, %v6447_v56, -inf }
 0x398   :  { %v874_v62 = vsel %vm572_vm0, %v6461_v61, -inf }
 0x399   :  { %1082 = vrot.lane.b32.xlu1 %v6319_v32, %s6120_s29  ;;  %v6451_v32 = vadd.f32 %v5349_v42, %v41_v6 }
 0x39a   :  { %878 = vmax.xlane.f32.xlu0 %v877_v53 }
 0x39b   :  { %v880_v60 = vsel %vm572_vm0, %v6451_v32, -inf }
 0x39e   :  { %860 = vmax.xlane.f32.xlu0 %v859_v55 }
 0x3a2   :  { %872 = vmax.xlane.f32.xlu0 %v871_v31 }
 0x3b8   :  { %1019 = vrot.lane.b32.xlu0 %v6321_v35, %s6120_s29  ;;  %v862_v35 = vsel %vm572_vm0, %v6457_v59, -inf }
 0x3bc   :  { %1141 = vrot.lane.b32.xlu0 %v6341_v47, %s6120_s29 }
 0x3bd   :  { %869 = vmax.xlane.f32.xlu1 %v868_v58 }
 0x3c1   :  { %881 = vmax.xlane.f32.xlu1 %v880_v60 }
 0x3c5   :  { %863 = vmax.xlane.f32.xlu1 %v862_v35 }
 0x3c9   :  { %875 = vmax.xlane.f32.xlu1 %v874_v62 }
 0x3da   :  { %1202 = vrot.lane.b32.xlu1 %v6343_v48, %s6120_s29 }
 0x404   :  { %v843_v47 = vpop.xlane.xlu0 %842 }
 0x405   :  { %v885_v63 = vsub.f32 %v6387_v9, %v843_v47  ;;  %v858_v0 = vpop.xlane.xlu1 %857 }
 0x406   :  { %v890_v13 = vsub.f32 %v6392_v14, %v858_v0 }
 0x407   :  { %v903_v1 = vmul.f32 1.442695, %v885_v63 }
 0x408   :  { %v855_v2 = vpop.xlane.xlu0 %854 }
 0x409   :  { %5925 = vpow2.f32 %v903_v1  ;;  %v889_v3 = vsub.f32 %v6394_v16, %v855_v2  ;;  %v840_v4 = vpop.xlane.xlu1 %839 }
 0x40a   :  { %v884_v23 = vsub.f32 %v6401_v20, %v840_v4 }
 0x40b   :  { %v911_v5 = vmul.f32 1.442695, %v889_v3 }
 0x40c   :  { %v837_v6 = vpop.xlane.xlu0 %836  ;;  %v901_v28 = vmul.f32 1.442695, %v884_v23 }
 0x40d   :  { %5927 = vpow2.f32 %v911_v5  ;;  %v883_v7 = vsub.f32 %v6405_v22, %v837_v6  ;;  %v852_v8 = vpop.xlane.xlu1 %851  ;;  %v913_v22 = vmul.f32 1.442695, %v890_v13 }
 0x40f   :  { %v899_v10 = vmul.f32 1.442695, %v883_v7 }
 0x410   :  { %v849_v12 = vpop.xlane.xlu0 %848 }
 0x411   :  { %5929 = vpow2.f32 %v899_v10  ;;  %v887_v48 = vsub.f32 %v6413_v26, %v849_v12  ;;  %v1081_v11 = vpop.permute.xlu1 %1080 }
 0x412   :  { %5358 = vmatprep.subr.bf16.mxu1 %v1081_v11 }
 0x413   :  { %v6473_v9 = vpop.eup %5925  ;;  %v907_v15 = vmul.f32 1.442695, %v887_v48  ;;  %5359 = vmatpush3.bf16.msra.mxu1 %v1081_v11 }
 0x414   :  { %v846_v16 = vpop.xlane.xlu0 %845  ;;  %v937_v17 = vsel %vm572_vm0, %v6473_v9, 0.0 }
 0x415   :  { %5931 = vpow2.f32 %v907_v15  ;;  %v886_v18 = vsub.f32 %v6419_v29, %v846_v16  ;;  %938 = vadd.xlane.f32.xlu0 %v937_v17  ;;  %v1022_v19 = vpop.permute.xlu1 %1021  ;;  %v888_v29 = vsub.f32 %v6409_v24, %v852_v8 }
 0x417   :  { %v6479_v21 = vpop.eup %5927  ;;  %v905_v25 = vmul.f32 1.442695, %v886_v18  ;;  %v909_v33 = vmul.f32 1.442695, %v888_v29 }
 0x418   :  { %v949_v14 = vsel %vm572_vm0, %v6479_v21, 0.0 }
 0x419   :  { %5933 = vpow2.f32 %v905_v25  ;;  %950 = vadd.xlane.f32.xlu0 %v949_v14  ;;  %v1083_v26 = vpop.permute.xlu1 %1082 }
 0x41a   :  { %5360 = vmatprep.subr.bf16.mxu1 %v1083_v26  ;;  %5935 = vpow2.f32 %v913_v22 }
 0x41b   :  { %v6484_v27 = vpop.eup %5929  ;;  %5361 = vmatpush3.bf16.msra.mxu1 %v1083_v26  ;;  %5937 = vpow2.f32 %v901_v28 }
 0x41c   :  { %v931_v30 = vsel %vm572_vm0, %v6484_v27, 0.0  ;;  %5939 = vpow2.f32 %v909_v33 }
 0x41d   :  { %932 = vadd.xlane.f32.xlu0 %v931_v30 }
 0x41f   :  { %v6489_v20 = vpop.eup %5931 }
 0x420   :  { %v943_v34 = vsel %vm572_vm0, %v6489_v20, 0.0 }
 0x421   :  { %944 = vadd.xlane.f32.xlu0 %v943_v34 }
 0x423   :  { %v6493_v37 = vpop.eup %5933  ;;  %v867_v39 = vpop.xlane.xlu0 %866 }
 0x424   :  { %v893_v40 = vsub.f32 %v6427_v38, %v867_v39  ;;  %v940_v24 = vsel %vm572_vm0, %v6493_v37, 0.0  ;;  %v6498_v41 = vpop.eup %5935 }
 0x425   :  { %941 = vadd.xlane.f32.xlu1 %v940_v24  ;;  %v952_v51 = vsel %vm572_vm0, %v6498_v41, 0.0  ;;  %v6503_v53 = vpop.eup %5937 }
 0x426   :  { %v919_v42 = vmul.f32 1.442695, %v893_v40  ;;  %v934_v58 = vsel %vm572_vm0, %v6503_v53, 0.0  ;;  %v6508_v60 = vpop.eup %5939 }
 0x427   :  { %v879_v46 = vpop.xlane.xlu0 %878  ;;  %v946_v47 = vsel %vm572_vm0, %v6508_v60, 0.0 }
 0x428   :  { %5941 = vpow2.f32 %v919_v42  ;;  %v897_v50 = vsub.f32 %v6429_v45, %v879_v46 }
 0x429   :  { %953 = vadd.xlane.f32.xlu1 %v952_v51 }
 0x42a   :  { %v927_v55 = vmul.f32 1.442695, %v897_v50 }
 0x42b   :  { %v861_v31 = vpop.xlane.xlu0 %860 }
 0x42c   :  { %5943 = vpow2.f32 %v927_v55  ;;  %v891_v38 = vsub.f32 %v6435_v36, %v861_v31 }
 0x42d   :  { %935 = vadd.xlane.f32.xlu1 %v934_v58 }
 0x42e   :  { %v915_v35 = vmul.f32 1.442695, %v891_v38 }
 0x42f   :  { %v873_v62 = vpop.xlane.xlu0 %872 }
 0x430   :  { %5945 = vpow2.f32 %v915_v35  ;;  %v895_v45 = vsub.f32 %v6441_v54, %v873_v62 }
 0x431   :  { %947 = vadd.xlane.f32.xlu1 %v946_v47 }
 0x432   :  { %v6513_v63 = vpop.eup %5941  ;;  %v923_v0 = vmul.f32 1.442695, %v895_v45 }
 0x433   :  { %v1020_v1 = vpop.permute.xlu0 %1019  ;;  %v961_v36 = vsel %vm572_vm0, %v6513_v63, 0.0 }
 0x434   :  { %5947 = vpow2.f32 %v923_v0  ;;  %962 = vadd.xlane.f32.xlu0 %v961_v36  ;;  %5350 = vmatprep.subr.bf16.mxu0 %v1020_v1 }
 0x435   :  { %5351 = vmatpush3.bf16.msra.mxu0 %v1020_v1 }
 0x436   :  { %v6517_v2 = vpop.eup %5943  ;;  %5352 = vmatprep.subr.bf16.mxu0 %v1022_v19 }
 0x437   :  { %v973_v54 = vsel %vm572_vm0, %v6517_v2, 0.0  ;;  %v6521_v3 = vpop.permute.xlu0 %1141 }
 0x438   :  { %974 = vadd.xlane.f32.xlu0 %v973_v54 }
 0x439   :  { %5353 = vmatpush3.bf16.msra.mxu0 %v1022_v19 }
 0x43a   :  { %v6523_v4 = vpop.eup %5945  ;;  %5366 = vmatprep.subr.bf16.mxu0 %v6521_v3 }
 0x43b   :  { %v955_v5 = vsel %vm572_vm0, %v6523_v4, 0.0 }
 0x43c   :  { %956 = vadd.xlane.f32.xlu0 %v955_v5 }
 0x43e   :  { %v6528_v6 = vpop.eup %5947 }
 0x43f   :  { %v967_v7 = vsel %vm572_vm0, %v6528_v6, 0.0 }
 0x440   :  { %968 = vadd.xlane.f32.xlu0 %v967_v7 }
 0x44a   :  { %v870_v8 = vpop.xlane.xlu1 %869 }
 0x44b   :  { %v894_v10 = vsub.f32 %v6447_v56, %v870_v8 }
 0x44d   :  { %v921_v12 = vmul.f32 1.442695, %v894_v10 }
 0x44e   :  { %v882_v48 = vpop.xlane.xlu1 %881 }
 0x44f   :  { %5949 = vpow2.f32 %v921_v12  ;;  %v898_v11 = vsub.f32 %v6451_v32, %v882_v48 }
 0x451   :  { %v929_v13 = vmul.f32 1.442695, %v898_v11 }
 0x452   :  { %v864_v15 = vpop.xlane.xlu1 %863 }
 0x453   :  { %5951 = vpow2.f32 %v929_v13  ;;  %v892_v16 = vsub.f32 %v6457_v59, %v864_v15 }
 0x455   :  { %v917_v17 = vmul.f32 1.442695, %v892_v16 }
 0x456   :  { %1143 = vrot.lane.b32.xlu0 %v6337_v43, %s6120_s29  ;;  %v876_v18 = vpop.xlane.xlu1 %875 }
 0x457   :  { %5953 = vpow2.f32 %v917_v17  ;;  %v896_v19 = vsub.f32 %v6461_v61, %v876_v18 }
 0x459   :  { %v6538_v22 = vpop.eup %5949  ;;  %v925_v56 = vmul.f32 1.442695, %v896_v19 }
 0x45a   :  { %v1203_v23 = vpop.permute.xlu1 %1202  ;;  %v964_v32 = vsel %vm572_vm0, %v6538_v22, 0.0 }
 0x45b   :  { %5955 = vpow2.f32 %v925_v56  ;;  %965 = vadd.xlane.f32.xlu1 %v964_v32  ;;  %5374 = vmatprep.subr.bf16.mxu1 %v1203_v23 }
 0x45d   :  { %v6542_v25 = vpop.eup %5951 }
 0x45e   :  { %v976_v59 = vsel %vm572_vm0, %v6542_v25, 0.0 }
 0x45f   :  { %977 = vadd.xlane.f32.xlu1 %v976_v59 }
 0x461   :  { %v6546_v43 = vpop.eup %5953 }
 0x462   :  { %v958_v61 = vsel %vm572_vm0, %v6546_v43, 0.0 }
 0x463   :  { %959 = vadd.xlane.f32.xlu1 %v958_v61 }
 0x465   :  { %v6550_v14 = vpop.eup %5955 }
 0x466   :  { %v970_v26 = vsel %vm572_vm0, %v6550_v14, 0.0 }
 0x467   :  { %971 = vadd.xlane.f32.xlu1 %v970_v26 }
 0x478   :  { %1204 = vrot.lane.b32.xlu1 %v6339_v44, %s6120_s29 }
 0x4a2   :  { %v939_v28 = vpop.xlane.xlu0 %938 }
 0x4a6   :  { %v951_v29 = vpop.xlane.xlu0 %950 }
 0x4aa   :  { %v933_v33 = vpop.xlane.xlu0 %932 }
 0x4ae   :  { %v945_v39 = vpop.xlane.xlu0 %944 }
 0x4b2   :  { %v942_v30 = vpop.xlane.xlu1 %941 }
 0x4b3   :  { %5957 = vrcp.f32 %v942_v30 }
 0x4b4   :  { %5959 = vrcp.f32 %v933_v33  ;;  %v5703_v33 = vld [vmem:[%s7632_s4 + $0x10] sm:$0xff]  }
 0x4b5   :  { %5961 = vrcp.f32 %v939_v28 }
 0x4b6   :  { %v954_v34 = vpop.xlane.xlu1 %953 }
 0x4ba   :  { %v936_v40 = vpop.xlane.xlu1 %935 }
 0x4bb   :  { %5963 = vrcp.f32 %v936_v40 }
 0x4bc   :  { %5965 = vrcp.f32 %v954_v34 }
 0x4bd   :  { %5967 = vrcp.f32 %v945_v39  ;;  %v5958_v46 = vpop.eup %5957 }
 0x4be   :  { %5969 = vrcp.f32 %v951_v29  ;;  %v948_v24 = vpop.xlane.xlu1 %947  ;;  %v5960_v50 = vpop.eup %5959  ;;  %v998_v55 = vmul.f32 %v5958_v46, %v6493_v37  ;;  %v5704_v46 = vld [vmem:[%s7632_s4 + $0x18] sm:$0xff]  }
 0x4bf   :  { %5971 = vrcp.f32 %v948_v24  ;;  %v5962_v44 = vpop.eup %5961  ;;  %v995_v58 = vmul.f32 %v5960_v50, %v6484_v27 }
 0x4c0   :  { %v997_v45 = vmul.f32 %v5962_v44, %v6473_v9  ;;  %v5705_v44 = vld [vmem:[%s7632_s4 + $0x20] sm:$0xff]  }
 0x4c1   :  { %v963_v42 = vpop.xlane.xlu0 %962 }
 0x4c2   :  { %v1012_v5 = vpack.c.bf16 %v998_v55, %v997_v45  ;;  %v5707_v55 = vld [vmem:[%s7632_s4 + $0x30] sm:$0xff]  }
 0x4c5   :  { %v5964_v51 = vpop.eup %5963  ;;  %v975_v31 = vpop.xlane.xlu0 %974 }
 0x4c6   :  { %v5966_v38 = vpop.eup %5965  ;;  %v996_v35 = vmul.f32 %v5964_v51, %v6503_v53  ;;  %v5706_v51 = vld [vmem:[%s7632_s4 + $0x28] sm:$0xff]  }
 0x4c7   :  { %v5968_v62 = vpop.eup %5967  ;;  %v1002_v36 = vmul.f32 %v5966_v38, %v6498_v41 }
 0x4c8   :  { %v5970_v47 = vpop.eup %5969  ;;  %v1011_v0 = vpack.c.bf16 %v996_v35, %v995_v58  ;;  %v999_v37 = vmul.f32 %v5968_v62, %v6489_v20 }
 0x4c9   :  { %v5972_v1 = vpop.eup %5971  ;;  %v957_v54 = vpop.xlane.xlu0 %956  ;;  %v1001_v27 = vmul.f32 %v5970_v47, %v6479_v21 }
 0x4ca   :  { %5354 = vmatprep.mubr.msk.bf16.mxu0 %vm572_vm0, %v1011_v0  ;;  %v1000_v7 = vmul.f32 %v5972_v1, %v6508_v60 }
 0x4cb   :  { %5355 = vmatmul.mubr.msk.bf16.vlgmr.msra.gmra.mrb[16].mxu0 %vm572_vm0, %v1012_v5  ;;  %v1014_v8 = vpack.c.bf16 %v1002_v36, %v1001_v27 }
 0x4cc   :  { %5367 = vmatpush3.bf16.msra.mxu0 %v6521_v3  ;;  %v1013_v9 = vpack.c.bf16 %v1000_v7, %v999_v37 }
 0x4cd   :  { %v969_v53 = vpop.xlane.xlu0 %968 }
 0x4ce   :  { %5362 = vmatprep.mubr.msk.bf16.mxu1 %vm572_vm0, %v1013_v9 }
 0x4cf   :  { %5363 = vmatmul.mubr.msk.bf16.vlgmr.msra.gmra.mrb[16].mxu1 %vm572_vm0, %v1014_v8 }
 0x4d0   :  { %5375 = vmatpush3.bf16.msra.mxu1 %v1203_v23 }
 0x4d1   :  { %v1144_v41 = vpop.permute.xlu0 %1143 }
 0x4d2   :  { %5368 = vmatprep.subr.bf16.mxu0 %v1144_v41 }
 0x4d3   :  { %5369 = vmatpush3.bf16.msra.mxu0 %v1144_v41 }
 0x4e8   :  { %v966_v20 = vpop.xlane.xlu1 %965 }
 0x4e9   :  { %5973 = vrcp.f32 %v966_v20 }
 0x4ea   :  { %5975 = vrcp.f32 %v957_v54 }
 0x4eb   :  { %5977 = vrcp.f32 %v963_v42 }
 0x4ec   :  { %v978_v10 = vpop.xlane.xlu1 %977 }
 0x4f0   :  { %v960_v21 = vpop.xlane.xlu1 %959 }
 0x4f1   :  { %5979 = vrcp.f32 %v960_v21 }
 0x4f2   :  { %5981 = vrcp.f32 %v978_v10 }
 0x4f3   :  { %5983 = vrcp.f32 %v969_v53  ;;  %v5974_v3 = vpop.eup %5973 }
 0x4f4   :  { %5985 = vrcp.f32 %v975_v31  ;;  %v972_v60 = vpop.xlane.xlu1 %971  ;;  %v5976_v48 = vpop.eup %5975  ;;  %v1006_v15 = vmul.f32 %v5974_v3, %v6538_v22  ;;  %v5708_v31 = vld [vmem:[%s7632_s4 + $0x38] sm:$0xff]  }
 0x4f5   :  { %5987 = vrcp.f32 %v972_v60  ;;  %v5978_v11 = vpop.eup %5977  ;;  %v1003_v17 = vmul.f32 %v5976_v48, %v6523_v4 }
 0x4f6   :  { %v1005_v56 = vmul.f32 %v5978_v11, %v6513_v63  ;;  %v5701_v63 = vld [vmem:[%s7632_s4] sm:$0xff]  }
 0x4f7   :  { %5382 = vmatprep.subr.bf16.mxu0 %v5701_v63 }
 0x4f8   :  { %v1205_v12 = vpop.permute.xlu1 %1204  ;;  %v1016_v26 = vpack.c.bf16 %v1006_v15, %v1005_v56 }
 0x4f9   :  { %5376 = vmatprep.subr.bf16.mxu1 %v1205_v12 }
 0x4fa   :  { %5377 = vmatpush3.bf16.msra.mxu1 %v1205_v12 }
 0x4fb   :  { %v5980_v13 = vpop.eup %5979 }
 0x4fc   :  { %v5982_v16 = vpop.eup %5981  ;;  %v1004_v18 = vmul.f32 %v5980_v13, %v6546_v43 }
 0x4fd   :  { %v5984_v19 = vpop.eup %5983  ;;  %v1010_v61 = vmul.f32 %v5982_v16, %v6542_v25 }
 0x4fe   :  { %v5986_v23 = vpop.eup %5985  ;;  %v1015_v32 = vpack.c.bf16 %v1004_v18, %v1003_v17  ;;  %v1007_v28 = vmul.f32 %v5984_v19, %v6528_v6  ;;  %v5702_v6 = vld [vmem:[%s7632_s4 + $0x8] sm:$0xff]  }
 0x4ff   :  { %v5988_v59 = vpop.eup %5987  ;;  %v1009_v29 = vmul.f32 %v5986_v23, %v6517_v2 }
 0x500   :  { %5370 = vmatprep.mubr.msk.bf16.mxu0 %vm572_vm0, %v1015_v32  ;;  %v1008_v22 = vmul.f32 %v5988_v59, %v6550_v14 }
 0x501   :  { %5371 = vmatmul.mubr.msk.bf16.vlgmr.msra.gmra.mrb[20].mxu0 %vm572_vm0, %v1016_v26  ;;  %v1018_v43 = vpack.c.bf16 %v1010_v61, %v1009_v29 }
 0x502   :  { %v1017_v4 = vpack.c.bf16 %v1008_v22, %v1007_v28  ;;  %5383 = vmatpush3.bf16.msra.mxu0 %v5701_v63 }
 0x503   :  { %5384 = vmatprep.subr.bf16.mxu0 %v5702_v6 }
 0x504   :  { %5378 = vmatprep.mubr.msk.bf16.mxu1 %vm572_vm0, %v1017_v4 }
 0x505   :  { %5379 = vmatmul.mubr.msk.bf16.vlgmr.msra.gmra.mrb[20].mxu1 %vm572_vm0, %v1018_v43 }
 0x506   :  { %5385 = vmatpush3.bf16.msra.mxu0 %v5702_v6 }
 0x507   :  { %5386 = vmatprep.subr.bf16.mxu0 %v5703_v33 }
 0x50a   :  { %5387 = vmatpush3.bf16.msra.mxu0 %v5703_v33 }
 0x50b   :  { %5388 = vmatprep.subr.bf16.mxu0 %v5704_v46 }
 0x50e   :  { %5389 = vmatpush3.bf16.msra.mxu0 %v5704_v46 }
 0x50f   :  { %5390 = vmatprep.subr.bf16.mxu0 %v5705_v44 }
 0x512   :  { %5391 = vmatpush3.bf16.msra.mxu0 %v5705_v44  ;;  %v5711_v44 = vld [vmem:[%s7633_s5 + $0x4] ss:$16 sps:$4 sm:$0xff]  }
 0x513   :  { %5392 = vmatprep.subr.bf16.mxu0 %v5706_v51  ;;  %1698 = vmatprep.subr.bf16.mxu1 %v5711_v44 }
 0x516   :  { %5393 = vmatpush3.bf16.msra.mxu0 %v5706_v51  ;;  %v5712_v51 = vld [vmem:[%s7633_s5 + $0x8] ss:$16 sps:$4 sm:$0xff]  }
 0x517   :  { %5394 = vmatprep.subr.bf16.mxu0 %v5707_v55 }
 0x51a   :  { %5395 = vmatpush3.bf16.msra.mxu0 %v5707_v55  ;;  %v5714_v55 = vld [vmem:[%s7633_s5 + $0xc] ss:$16 sps:$4 sm:$0xff]  }
 0x51b   :  { %5396 = vmatprep.subr.bf16.mxu0 %v5708_v31 }
 0x51e   :  { %5397 = vmatpush3.bf16.msra.mxu0 %v5708_v31  ;;  %v5717_v31 = vld [vmem:[%s7633_s5 + $0x24] ss:$16 sps:$4 sm:$0xff]  }
 0x51f   :  { %1751 = vmatprep.subr.bf16.mxu0 %v5714_v55 }
 0x59e   :  { %v6587_v25 = vpop.f32.mrb[16].mxu0 }
 0x59f   :  { %v6589_v14 = vpop.f32.mrb[17].mxu0 }
 0x5a0   :  { %v5357_v2 = vpop.f32.mrb[18].mxu0 }
 0x5a1   :  { %v6591_v30 = vpop.f32.mrb[19].mxu0 }
 0x5a2   :  { %v5364_v34 = vpop.f32.mrb[16].mxu1 }
 0x5a3   :  { %v1126_v39 = vpop.f32.mrb[17].mxu1 }
 0x5a4   :  { %v5365_v40 = vpop.f32.mrb[18].mxu1 }
 0x5a5   :  { %v5609_v24 = vpack.i.bf16 %v5365_v40, %v5364_v34  ;;  %v1129_v42 = vpop.f32.mrb[19].mxu1  ;;  %v6086_v34 = vld [vmem:[%s7628_s0 + $0x8] sm:$0xff]  ;;  %v6087_v40 = vld [vmem:[%s7628_s0 + $0x10] sm:$0xff] }
 0x5a6   :  { %v5614_v50 = vpack.i.bf16 %v1129_v42, %v1126_v39  ;;  %v6088_v42 = vld [vmem:[%s7628_s0 + $0x18] sm:$0xff] }
 0x5a7   :  { %5610 = vrot.lane.b32.xlu1 %v5609_v24, %s6121_s17 }
 0x5a8   :  { %5615 = vrot.lane.b32.xlu0 %v5614_v50, %s6121_s17  ;;  %v5709_v50 = vld [vmem:[%s7633_s5] ss:$16 sps:$4 sm:$0xff]  }
 0x5a9   :  { %1699 = vmatpush1.bf16.msra.mxu1 %v5709_v50 }
 0x5aa   :  { %1700 = vmatprep.subr.bf16.mxu1 %v5717_v31 }
 0x5d4   :  { %v5372_v38 = vpop.f32.mrb[20].mxu0 }
 0x5d5   :  { %v1187_v58 = vpop.f32.mrb[21].mxu0 }
 0x5d6   :  { %v5373_v35 = vpop.f32.mrb[22].mxu0 }
 0x5d7   :  { %v5619_v62 = vpack.i.bf16 %v5373_v35, %v5372_v38  ;;  %v1190_v45 = vpop.f32.mrb[23].mxu0  ;;  %v5720_v38 = vld [vmem:[%s7633_s5 + $0x2c] ss:$16 sps:$4 sm:$0xff]   ;;  %v5718_v35 = vld [vmem:[%s7633_s5 + $0x28] ss:$16 sps:$4 sm:$0xff]  }
 0x5d8   :  { %v5624_v47 = vpack.i.bf16 %v1190_v45, %v1187_v58  ;;  %v5380_v0 = vpop.f32.mrb[20].mxu1  ;;  %v5715_v58 = vld [vmem:[%s7633_s5 + $0x20] ss:$16 sps:$4 sm:$0xff]  }
 0x5d9   :  { %v1248_v1 = vpop.f32.mrb[21].mxu1  ;;  %5620 = vrot.lane.b32.xlu1 %v5619_v62, %s6120_s29  ;;  %1701 = vmatpush1.bf16.msra.mxu1 %v5715_v58 }
 0x5da   :  { %v5381_v36 = vpop.f32.mrb[22].mxu1  ;;  %5625 = vrot.lane.b32.xlu0 %v5624_v47, %s6120_s29 }
 0x5db   :  { %v5634_v54 = vpack.i.bf16 %v5381_v36, %v5380_v0  ;;  %v1251_v5 = vpop.f32.mrb[23].mxu1 }
 0x5dc   :  { %v5629_v37 = vpack.i.bf16 %v1251_v5, %v1248_v1 }
 0x5dd   :  { %5635 = vrot.lane.b32.xlu1 %v5634_v54, %s6119_s20 }
 0x5de   :  { %5630 = vrot.lane.b32.xlu0 %v5629_v37, %s6119_s20 }
 0x619   :  { %v5611_v7 = vpop.permute.xlu1 %5610 }
 0x61a   :  { %v5616_v27 = vpop.permute.xlu0 %5615  ;;  %v5613_v9 = vunpack.i.h.bf16 %v5611_v7  ;;  %v5612_v53 = vunpack.i.l.bf16 %v5611_v7 }
 0x61b   :  { %v5618_v41 = vunpack.i.h.bf16 %v5616_v27  ;;  %v5617_v20 = vunpack.i.l.bf16 %v5616_v27 }
 0x61c   :  { %v1314_v48 = vsel %vm572_vm0, %v5357_v2, %v5613_v9  ;;  %v1313_v11 = vsel %vm572_vm0, %v6587_v25, %v5612_v53 }
 0x61d   :  { %v1312_v15 = vsel %vm572_vm0, %v6591_v30, %v5618_v41  ;;  %v1311_v16 = vsel %vm572_vm0, %v6589_v14, %v5617_v20  ;;  %v6085_v14 = vld [vmem:[%s7628_s0] sm:$0xff] }
 0x64b   :  { %v5621_v8 = vpop.permute.xlu1 %5620 }
 0x64c   :  { %v5626_v10 = vpop.permute.xlu0 %5625  ;;  %v5623_v21 = vunpack.i.h.bf16 %v5621_v8  ;;  %v5622_v60 = vunpack.i.l.bf16 %v5621_v8 }
 0x64d   :  { %v5628_v3 = vunpack.i.h.bf16 %v5626_v10  ;;  %v5627_v12 = vunpack.i.l.bf16 %v5626_v10  ;;  %v5723_v10 = vld [vmem:[%s7633_s5 + $0x44] ss:$16 sps:$4 sm:$0xff]  }
 0x64e   :  { %v1319_v56 = vsel %vm1315_vm1, %v1314_v48, %v5623_v21  ;;  %v1318_v23 = vsel %vm1315_vm1, %v1313_v11, %v5622_v60  ;;  %v5726_v21 = vld [vmem:[%s7633_s5 + $0x4c] ss:$16 sps:$4 sm:$0xff]   ;;  %v5721_v60 = vld [vmem:[%s7633_s5 + $0x40] ss:$16 sps:$4 sm:$0xff]   ;;  %1702 = vmatprep.subr.bf16.mxu1 %v5723_v10 }
 0x64f   :  { %v5636_v13 = vpop.permute.xlu1 %5635  ;;  %v1316_v61 = vsel %vm1315_vm1, %v1311_v16, %v5627_v12  ;;  %v1317_v26 = vsel %vm1315_vm1, %v1312_v15, %v5628_v3  ;;  %v5724_v3 = vld [vmem:[%s7633_s5 + $0x48] ss:$16 sps:$4 sm:$0xff]   ;;  %1703 = vmatpush1.bf16.msra.mxu1 %v5721_v60  ;;  %v5729_v12 = vld [vmem:[%s7633_s5 + $0x64] ss:$16 sps:$4 sm:$0xff]   ;;  %v5732_v48 = vld [vmem:[%s7633_s5 + $0x6c] ss:$16 sps:$4 sm:$0xff]  }
 0x650   :  { %v5638_v17 = vunpack.i.h.bf16 %v5636_v13  ;;  %v5637_v18 = vunpack.i.l.bf16 %v5636_v13  ;;  %v5631_v19 = vpop.permute.xlu0 %5630  ;;  %v5727_v11 = vld [vmem:[%s7633_s5 + $0x60] ss:$16 sps:$4 sm:$0xff]   ;;  %v5730_v13 = vld [vmem:[%s7633_s5 + $0x68] ss:$16 sps:$4 sm:$0xff]   ;;  %1704 = vmatprep.subr.bf16.mxu1 %v5729_v12  ;;  %v5735_v15 = vld [vmem:[%s7633_s5 + $0x84] ss:$16 sps:$4 sm:$0xff]  }
 0x651   :  { %v5633_v32 = vunpack.i.h.bf16 %v5631_v19  ;;  %v5632_v59 = vunpack.i.l.bf16 %v5631_v19  ;;  %v5738_v16 = vld [vmem:[%s7633_s5 + $0x8c] ss:$16 sps:$4 sm:$0xff]   ;;  %v5741_v19 = vld [vmem:[%s7633_s5 + $0xa4] ss:$16 sps:$4 sm:$0xff]  }
 0x652   :  { %v1323_v28 = vsel %vm1320_vm2, %v1318_v23, %v5637_v18  ;;  %v1324_v22 = vsel %vm1320_vm2, %v1319_v56, %v5638_v17  ;;  %v5733_v17 = vld [vmem:[%s7633_s5 + $0x80] ss:$16 sps:$4 sm:$0xff]   ;;  %v5736_v18 = vld [vmem:[%s7633_s5 + $0x88] ss:$16 sps:$4 sm:$0xff]   ;;  %v5744_v56 = vld [vmem:[%s7633_s5 + $0xac] ss:$16 sps:$4 sm:$0xff]  }
 0x653   :  { %v1326_v29 = vpack.c.bf16 %v1324_v22, %v1323_v28  ;;  %v1321_v4 = vsel %vm1320_vm2, %v1316_v61, %v5632_v59  ;;  %v1322_v43 = vsel %vm1320_vm2, %v1317_v26, %v5633_v32  ;;  %1705 = vmatpush1.bf16.msra.mxu1 %v5727_v11  ;;  %v5739_v23 = vld [vmem:[%s7633_s5 + $0xa0] ss:$16 sps:$4 sm:$0xff]   ;;  %v5742_v32 = vld [vmem:[%s7633_s5 + $0xa8] ss:$16 sps:$4 sm:$0xff]   ;;  %v5747_v61 = vld [vmem:[%s7633_s5 + $0xc4] ss:$16 sps:$4 sm:$0xff]  }
 0x654   :  { %v1325_v63 = vpack.c.bf16 %v1322_v43, %v1321_v4  ;;  %1706 = vmatprep.subr.bf16.mxu1 %v5735_v15  ;;  %v5745_v59 = vld [vmem:[%s7633_s5 + $0xc0] ss:$16 sps:$4 sm:$0xff]   ;;  %v5748_v26 = vld [vmem:[%s7633_s5 + $0xc8] ss:$16 sps:$4 sm:$0xff]   ;;  %v5750_v28 = vld [vmem:[%s7633_s5 + $0xcc] ss:$16 sps:$4 sm:$0xff]  }
 0x655   :  { %v5753_v22 = vld [vmem:[%s7633_s5 + $0xe4] ss:$16 sps:$4 sm:$0xff]   ;;  %v5751_v4 = vld [vmem:[%s7633_s5 + $0xe0] ss:$16 sps:$4 sm:$0xff]   ;;  %v5754_v43 = vld [vmem:[%s7633_s5 + $0xe8] ss:$16 sps:$4 sm:$0xff]  }
 0x656   :  { %5398 = vmatprep.mubr.bf16.mxu0 %v1325_v63  ;;  %v6122_v63 = vmov 0   ;;  %v5761_v12 = vld [vmem:[%s7634_s6 + $0x48] sm:$0xff]  }
 0x657   :  { %5399 = vmatmul.mubr.bf16.vlgmr.msra.gmra.mrb[24].mxu0 %v1326_v29  ;;  %1707 = vmatpush1.bf16.msra.mxu1 %v5733_v17  ;;  %v5756_v29 = vld [vmem:[%s7633_s5 + $0xec] ss:$16 sps:$4 sm:$0xff]   ;;  %v5766_v17 = vld [vmem:[%s7634_s6 + $0xd0] sm:$0xff]  }
 0x658   :  { %1752 = vmatpush1.bf16.msra.mxu0 %v5712_v51  ;;  %1708 = vmatprep.subr.bf16.mxu1 %v5741_v19  ;;  %v5764_v15 = vld [vmem:[%s7634_s6 + $0x88] sm:$0xff]  }
 0x659   :  { %1753 = vmatprep.subr.bf16.mxu0 %v5720_v38  ;;  %1730 = vmatprep.mubr.bf16.mxu1 %v6122_v63  ;;  %v1490_v38 = vsub.s32 2, %v6258_v49 }
 0x65a   :  { %1783 = vmatprep.mubr.bf16.mxu0 %v6122_v63 }
 0x65b   :  { %1709 = vmatpush1.bf16.msra.mxu1 %v5739_v23  ;;  %v5768_v23 = vld [vmem:[%s7634_s6 + $0x90] sm:$0xff]  }
 0x65c   :  { %1754 = vmatpush1.bf16.msra.mxu0 %v5718_v35  ;;  %1710 = vmatprep.subr.bf16.mxu1 %v5747_v61  ;;  %v6089_v35 = vld [vmem:[%s7630_s2] sm:$0xf]  ;;  %v5771_v61 = vld [vmem:[%s7634_s6 + $0x18] sm:$0xff]  }
 0x65d   :  { %1755 = vmatprep.subr.bf16.mxu0 %v5726_v21 }
 0x65f   :  { %1711 = vmatpush1.bf16.msra.mxu1 %v5745_v59  ;;  %v5770_v59 = vld [vmem:[%s7634_s6 + $0xd8] sm:$0xff]  }
 0x660   :  { %1756 = vmatpush1.bf16.msra.mxu0 %v5724_v3  ;;  %1712 = vmatprep.subr.bf16.mxu1 %v5753_v22  ;;  %v5774_v22 = vld [vmem:[%s7634_s6 + $0xe0] sm:$0xff]  }
 0x661   :  { %1757 = vmatprep.subr.bf16.mxu0 %v5732_v48 }
 0x663   :  { %1713 = vmatpush1.bf16.msra.mxu1 %v5751_v4  ;;  %v5776_v4 = vld [vmem:[%s7634_s6 + $0xa0] sm:$0xff]  }
 0x664   :  { %1758 = vmatpush1.bf16.msra.mxu0 %v5730_v13  ;;  %v5763_v13 = vld [vmem:[%s7634_s6 + $0x8] sm:$0xff]  }
 0x665   :  { %1759 = vmatprep.subr.bf16.mxu0 %v5738_v16  ;;  %v5765_v16 = vld [vmem:[%s7634_s6 + $0x50] sm:$0xff]  }
 0x668   :  { %1760 = vmatpush1.bf16.msra.mxu0 %v5736_v18 }
 0x669   :  { %1761 = vmatprep.subr.bf16.mxu0 %v5744_v56  ;;  %v5767_v56 = vld [vmem:[%s7634_s6 + $0x10] sm:$0xff]  }
 0x66c   :  { %1762 = vmatpush1.bf16.msra.mxu0 %v5742_v32  ;;  %v5769_v32 = vld [vmem:[%s7634_s6 + $0x58] sm:$0xff]  }
 0x66d   :  { %1763 = vmatprep.subr.bf16.mxu0 %v5750_v28  ;;  %v5773_v28 = vld [vmem:[%s7634_s6 + $0x60] sm:$0xff]  }
 0x670   :  { %1764 = vmatpush1.bf16.msra.mxu0 %v5748_v26  ;;  %v5772_v26 = vld [vmem:[%s7634_s6 + $0x98] sm:$0xff]  }
 0x671   :  { %1765 = vmatprep.subr.bf16.mxu0 %v5756_v29  ;;  %v5775_v29 = vld [vmem:[%s7634_s6 + $0x20] sm:$0xff]  }
 0x674   :  { %1766 = vmatpush1.bf16.msra.mxu0 %v5754_v43  ;;  %v5777_v43 = vld [vmem:[%s7634_s6 + $0x68] sm:$0xff]  }
 0x72a   :  { %v5400_v6 = vpop.f32.mrb[24].mxu0 }
 0x72b   :  { %v1425_v25 = vpop.f32.mrb[25].mxu0  ;;  %v6646_v24 = vadd.f32 %v6087_v40, %v5400_v6  ;;  %v5757_v6 = vld [vmem:[%s7634_s6 + $0x40] sm:$0xff]  }
 0x72c   :  { %v6635_v2 = vadd.f32 %v6085_v14, %v1425_v25  ;;  %v5401_v30 = vpop.f32.mrb[26].mxu0  ;;  %v5758_v25 = vld [vmem:[%s7634_s6 + $0xc0] sm:$0xff]   ;;  %5034 = vmatprep.subr.bf16.mxu1 %v5757_v6  ;;  %v5778_v6 = vld [vmem:[%s7634_s6 + $0xe8] sm:$0xff]  }
 0x72d   :  { %v1428_v33 = vpop.f32.mrb[27].mxu0  ;;  %v6653_v46 = vadd.f32 %v6088_v42, %v5401_v30  ;;  %5062 = vmatprep.subr.bf16.mxu0 %v5758_v25  ;;  %v5779_v25 = vld [vmem:[%s7634_s6 + $0x28] sm:$0xff]  }
 0x72e   :  { %v6640_v39 = vadd.f32 %v6086_v34, %v1428_v33  ;;  %1444 = vadd.xlane.f32.xlu0 %v6635_v2 }
 0x730   :  { %1446 = vadd.xlane.f32.xlu1 %v6640_v39 }
 0x732   :  { %1448 = vadd.xlane.f32.xlu0 %v6646_v24 }
 0x736   :  { %1450 = vadd.xlane.f32.xlu0 %v6653_v46 }
 0x7bb   :  { %v1445_v62 = vpop.xlane.xlu0 %1444 }
 0x7bc   :  { %v1452_v45 = vmul.f32 0.0078125, %v1445_v62  ;;  %v1491_v62 = vrot.slane %v6089_v35, %v1490_v38 }
 0x7bd   :  { %v1447_v47 = vpop.xlane.xlu1 %1446 }
 0x7be   :  { %v6681_v0 = vsub.f32 %v6635_v2, %v1452_v45  ;;  %v1453_v1 = vmul.f32 0.0078125, %v1447_v47  ;;  %v1498_v45 = vsub.s32 3, %v6258_v49  ;;  %v5881_v49 = vld [vmem:[%s7634_s6 + $0x148] sm:$0xff]  }
 0x7bf   :  { %v1449_v36 = vpop.xlane.xlu0 %1448 }
 0x7c0   :  { %v6684_v54 = vsub.f32 %v6640_v39, %v1453_v1  ;;  %v1454_v5 = vmul.f32 0.0078125, %v1449_v36  ;;  %v1460_v37 = vmul.f32 %v6681_v0, %v6681_v0 }
 0x7c2   :  { %v6689_v7 = vsub.f32 %v6646_v24, %v1454_v5  ;;  %1464 = vadd.xlane.f32.xlu0 %v1460_v37  ;;  %v1461_v27 = vmul.f32 %v6684_v54, %v6684_v54 }
 0x7c3   :  { %v1451_v9 = vpop.xlane.xlu0 %1450 }
 0x7c4   :  { %v1455_v53 = vmul.f32 0.0078125, %v1451_v9  ;;  %1466 = vadd.xlane.f32.xlu1 %v1461_v27  ;;  %v1462_v8 = vmul.f32 %v6689_v7, %v6689_v7  ;;  %v1499_v27 = vrot.slane %v6089_v35, %v1498_v45 }
 0x7c6   :  { %v6696_v41 = vsub.f32 %v6653_v46, %v1455_v53  ;;  %1468 = vadd.xlane.f32.xlu0 %v1462_v8 }
 0x7c8   :  { %v1463_v20 = vmul.f32 %v6696_v41, %v6696_v41 }
 0x7ca   :  { %1470 = vadd.xlane.f32.xlu1 %v1463_v20 }
 0x84f   :  { %v1465_v14 = vpop.xlane.xlu0 %1464 }
 0x850   :  { %v1472_v30 = vmul.f32 0.0078125, %v1465_v14  ;;  %v5780_v14 = vld [vmem:[%s7634_s6 + $0xa8] sm:$0xff]  }
 0x851   :  { %v1467_v33 = vpop.xlane.xlu1 %1466 }
 0x852   :  { %v1476_v34 = vadd.f32 1e-05, %v1472_v30  ;;  %v1473_v40 = vmul.f32 0.0078125, %v1467_v33  ;;  %v5781_v30 = vld [vmem:[%s7634_s6 + $0x70] sm:$0xff]  }
 0x853   :  { %v1469_v42 = vpop.xlane.xlu0 %1468  ;;  %v5782_v33 = vld [vmem:[%s7634_s6 + $0xf0] sm:$0xff]  }
 0x854   :  { %5989 = vrsqrt.f32 %v1476_v34  ;;  %v1477_v50 = vadd.f32 1e-05, %v1473_v40  ;;  %v1474_v44 = vmul.f32 0.0078125, %v1469_v42  ;;  %v5783_v34 = vld [vmem:[%s7634_s6 + $0x30] sm:$0xff]   ;;  %v5785_v42 = vld [vmem:[%s7634_s6 + $0x78] sm:$0xff]  }
 0x855   :  { %v5784_v40 = vld [vmem:[%s7634_s6 + $0xb0] sm:$0xff]  }
 0x856   :  { %5991 = vrsqrt.f32 %v1477_v50  ;;  %v1478_v51 = vadd.f32 1e-05, %v1474_v44  ;;  %v5786_v50 = vld [vmem:[%s7634_s6 + $0xf8] sm:$0xff]  }
 0x857   :  { %v1471_v55 = vpop.xlane.xlu1 %1470  ;;  %v5787_v44 = vld [vmem:[%s7634_s6 + $0x38] sm:$0xff]  }
 0x858   :  { %5993 = vrsqrt.f32 %v1478_v51  ;;  %v1475_v31 = vmul.f32 0.0078125, %v1471_v55  ;;  %v5788_v51 = vld [vmem:[%s7634_s6 + $0xb8] sm:$0xff]  }
 0x85a   :  { %v1479_v58 = vadd.f32 1e-05, %v1475_v31 }
 0x85c   :  { %5995 = vrsqrt.f32 %v1479_v58 }
 0x85e   :  { %v5990_v47 = vpop.eup %5989 }
 0x85f   :  { %v1484_v1 = vmul.f32 %v5990_v47, %v6681_v0  ;;  %v5759_v0 = vld [vmem:[%s7634_s6] sm:$0xff]  }
 0x860   :  { %v5992_v36 = vpop.eup %5991 }
 0x861   :  { %v1485_v5 = vmul.f32 %v5992_v36, %v6684_v54  ;;  %v1492_v37 = vmul.f32 %v1491_v62, %v1484_v1  ;;  %v5760_v54 = vld [vmem:[%s7634_s6 + $0x80] sm:$0xff]  }
 0x862   :  { %v5994_v9 = vpop.eup %5993 }
 0x863   :  { %v1493_v53 = vmul.f32 %v1491_v62, %v1485_v5  ;;  %v1500_v8 = vadd.f32 %v1499_v27, %v1492_v37  ;;  %v1486_v10 = vmul.f32 %v5994_v9, %v6689_v7  ;;  %v5762_v7 = vld [vmem:[%s7634_s6 + $0xc8] sm:$0xff]  }
 0x865   :  { %v1501_v20 = vadd.f32 %v1499_v27, %v1493_v53  ;;  %v1494_v48 = vmul.f32 %v1491_v62, %v1486_v10 }
 0x866   :  { %v5996_v21 = vpop.eup %5995 }
 0x867   :  { %v1504_v60 = vpack.c.bf16 %v1501_v20, %v1500_v8  ;;  %v1487_v3 = vmul.f32 %v5996_v21, %v6696_v41  ;;  %v1502_v18 = vadd.f32 %v1499_v27, %v1494_v48 }
 0x869   :  { %1731 = vmatmul.mubr.bf16.vlgmr.msra.gmra.mrb[24].mxu1 %v1504_v60  ;;  %1784 = vmatmul.mubr.bf16.vlgmr.msra.gmra.mrb[28].mxu0 %v1504_v60  ;;  %v1495_v41 = vmul.f32 %v1491_v62, %v1487_v3 }
 0x86a   :  { %1740 = vmatprep.mubr.bf16.mxu1 %v6122_v63  ;;  %1793 = vmatprep.mubr.bf16.mxu0 %v6122_v63 }
 0x86b   :  { %v1503_v11 = vadd.f32 %v1499_v27, %v1495_v41  ;;  %5035 = vmatpush3.bf16.msra.mxu1 %v5759_v0  ;;  %5063 = vmatpush3.bf16.msra.mxu0 %v5760_v54 }
 0x86c   :  { %5036 = vmatprep.subr.bf16.mxu1 %v5761_v12  ;;  %5064 = vmatprep.subr.bf16.mxu0 %v5762_v7 }
 0x86d   :  { %v1505_v19 = vpack.c.bf16 %v1503_v11, %v1502_v18 }
 0x86f   :  { %5037 = vmatpush3.bf16.msra.mxu1 %v5763_v13  ;;  %5065 = vmatpush3.bf16.msra.mxu0 %v5764_v15 }
 0x870   :  { %5038 = vmatprep.subr.bf16.mxu1 %v5765_v16  ;;  %5066 = vmatprep.subr.bf16.mxu0 %v5766_v17 }
 0x871   :  { %1741 = vmatmul.mubr.bf16.gmra.mrb[28].mxu1 %v1505_v19  ;;  %1794 = vmatmul.mubr.bf16.gmra.mrb[32].mxu0 %v1505_v19 }
 0x873   :  { %5039 = vmatpush3.bf16.msra.mxu1 %v5767_v56  ;;  %5067 = vmatpush3.bf16.msra.mxu0 %v5768_v23 }
 0x874   :  { %5040 = vmatprep.subr.bf16.mxu1 %v5769_v32  ;;  %5068 = vmatprep.subr.bf16.mxu0 %v5770_v59 }
 0x877   :  { %5041 = vmatpush3.bf16.msra.mxu1 %v5771_v61  ;;  %5069 = vmatpush3.bf16.msra.mxu0 %v5772_v26 }
 0x878   :  { %5042 = vmatprep.subr.bf16.mxu1 %v5773_v28  ;;  %5070 = vmatprep.subr.bf16.mxu0 %v5774_v22 }
 0x87b   :  { %5043 = vmatpush3.bf16.msra.mxu1 %v5775_v29  ;;  %5071 = vmatpush3.bf16.msra.mxu0 %v5776_v4 }
 0x87c   :  { %5044 = vmatprep.subr.bf16.mxu1 %v5777_v43  ;;  %5072 = vmatprep.subr.bf16.mxu0 %v5778_v6 }
 0x87f   :  { %5045 = vmatpush3.bf16.msra.mxu1 %v5779_v25  ;;  %5073 = vmatpush3.bf16.msra.mxu0 %v5780_v14 }
 0x880   :  { %5046 = vmatprep.subr.bf16.mxu1 %v5781_v30  ;;  %5074 = vmatprep.subr.bf16.mxu0 %v5782_v33 }
 0x883   :  { %5047 = vmatpush3.bf16.msra.mxu1 %v5783_v34  ;;  %5075 = vmatpush3.bf16.msra.mxu0 %v5784_v40 }
 0x884   :  { %5048 = vmatprep.subr.bf16.mxu1 %v5785_v42  ;;  %5076 = vmatprep.subr.bf16.mxu0 %v5786_v50 }
 0x887   :  { %5049 = vmatpush3.bf16.msra.mxu1 %v5787_v44  ;;  %5077 = vmatpush3.bf16.msra.mxu0 %v5788_v51 }
 0x93c   :  { %v1732_v55 = vpop.f32.mrb[24].mxu1  ;;  %v1785_v31 = vpop.f32.mrb[28].mxu0 }
 0x93d   :  { %v1734_v58 = vpop.f32.mrb[25].mxu1  ;;  %v1787_v35 = vpop.f32.mrb[29].mxu0  ;;  %v1804_v1 = vmax.f32 %v1732_v55, 0.0  ;;  %v1806_v36 = vmax.f32 %v1785_v31, 0.0 }
 0x93e   :  { %v1736_v62 = vpop.f32.mrb[26].mxu1  ;;  %v1789_v47 = vpop.f32.mrb[30].mxu0  ;;  %v1805_v53 = vmax.f32 %v1734_v58, 0.0  ;;  %v1807_v8 = vmax.f32 %v1787_v35, 0.0 }
 0x93f   :  { %v1808_v5 = vmax.f32 %v1736_v62, 0.0  ;;  %v1810_v37 = vmax.f32 %v1789_v47, 0.0  ;;  %v1738_v27 = vpop.f32.mrb[27].mxu1  ;;  %v1791_v9 = vpop.f32.mrb[31].mxu0 }
 0x940   :  { %v1809_v20 = vmax.f32 %v1738_v27, 0.0  ;;  %v1811_v10 = vmax.f32 %v1791_v9, 0.0 }
 0x941   :  { %v1820_v21 = vpack.c.bf16 %v1808_v5, %v1804_v1  ;;  %v1822_v60 = vpack.c.bf16 %v1810_v37, %v1806_v36 }
 0x942   :  { %v1821_v3 = vpack.c.bf16 %v1809_v20, %v1805_v53  ;;  %v1823_v0 = vpack.c.bf16 %v1811_v10, %v1807_v8 }
 0x944   :  { %v1742_v54 = vpop.f32.mrb[28].mxu1  ;;  %v1795_v12 = vpop.f32.mrb[32].mxu0  ;;  %2116 = vmatprep.mubr.bf16.mxu1 %v1821_v3  ;;  %2165 = vmatprep.mubr.bf16.mxu0 %v1823_v0 }
 0x945   :  { %v1744_v7 = vpop.f32.mrb[29].mxu1  ;;  %v1797_v48 = vpop.f32.mrb[33].mxu0  ;;  %2117 = vmatmul.mubr.bf16.vlgmr.msra.gmra.mrb[32].mxu1 %v1820_v21  ;;  %2166 = vmatmul.mubr.bf16.vlgmr.msra.gmra.mrb[36].mxu0 %v1822_v60  ;;  %v1812_v13 = vmax.f32 %v1742_v54, 0.0  ;;  %v1814_v15 = vmax.f32 %v1795_v12, 0.0 }
 0x946   :  { %v1746_v41 = vpop.f32.mrb[30].mxu1  ;;  %v1799_v11 = vpop.f32.mrb[34].mxu0  ;;  %v1813_v56 = vmax.f32 %v1744_v7, 0.0  ;;  %v1815_v23 = vmax.f32 %v1797_v48, 0.0 }
 0x947   :  { %v1816_v16 = vmax.f32 %v1746_v41, 0.0  ;;  %v1818_v17 = vmax.f32 %v1799_v11, 0.0  ;;  %v1748_v18 = vpop.f32.mrb[31].mxu1  ;;  %v1801_v19 = vpop.f32.mrb[35].mxu0 }
 0x948   :  { %v1817_v32 = vmax.f32 %v1748_v18, 0.0  ;;  %v1819_v59 = vmax.f32 %v1801_v19, 0.0  ;;  %v5789_v18 = vld [vmem:[%s7631_s3 + $0x100] sm:$0xff]  }
 0x949   :  { %v1824_v61 = vpack.c.bf16 %v1816_v16, %v1812_v13  ;;  %v1826_v26 = vpack.c.bf16 %v1818_v17, %v1814_v15  ;;  %v5790_v19 = vld [vmem:[%s7631_s3 + $0x140] sm:$0xff]   ;;  %5402 = vmatprep.subr.bf16.mxu1 %v5789_v18 }
 0x94a   :  { %v1825_v28 = vpack.c.bf16 %v1817_v32, %v1813_v56  ;;  %v1827_v22 = vpack.c.bf16 %v1819_v59, %v1815_v23  ;;  %5422 = vmatprep.subr.bf16.mxu0 %v5790_v19  ;;  %5403 = vmatpush3.bf16.msra.mxu1 %v5789_v18  ;;  %v5791_v56 = vld [vmem:[%s7631_s3 + $0x108] sm:$0xff]   ;;  %v5793_v32 = vld [vmem:[%s7631_s3 + $0x110] sm:$0xff]  }
 0x94b   :  { %5423 = vmatpush3.bf16.msra.mxu0 %v5790_v19  ;;  %v5792_v23 = vld [vmem:[%s7631_s3 + $0x148] sm:$0xff]   ;;  %5404 = vmatprep.subr.bf16.mxu1 %v5791_v56  ;;  %v5794_v59 = vld [vmem:[%s7631_s3 + $0x150] sm:$0xff]   ;;  %v5811_v19 = vld [vmem:[%s7631_s3 + $0x198] sm:$0xff]  }
 0x94c   :  { %2124 = vmatprep.mubr.bf16.mxu1 %v1825_v28  ;;  %2173 = vmatprep.mubr.bf16.mxu0 %v1827_v22  ;;  %v5797_v28 = vld [vmem:[%s7631_s3 + $0x120] sm:$0xff]   ;;  %v5808_v18 = vld [vmem:[%s7631_s3 + $0x1c8] sm:$0xff]  }
 0x94d   :  { %2125 = vmatmul.mubr.bf16.gmra.mrb[36].mxu1 %v1824_v61  ;;  %2174 = vmatmul.mubr.bf16.gmra.mrb[40].mxu0 %v1826_v26  ;;  %v5795_v61 = vld [vmem:[%s7631_s3 + $0x118] sm:$0xff]   ;;  %v5798_v22 = vld [vmem:[%s7631_s3 + $0x160] sm:$0xff]  }
 0x94e   :  { %5424 = vmatprep.subr.bf16.mxu0 %v5792_v23  ;;  %5405 = vmatpush3.bf16.msra.mxu1 %v5791_v56  ;;  %v5796_v26 = vld [vmem:[%s7631_s3 + $0x158] sm:$0xff]  }
 0x94f   :  { %5425 = vmatpush3.bf16.msra.mxu0 %v5792_v23  ;;  %5406 = vmatprep.subr.bf16.mxu1 %v5793_v32  ;;  %v5812_v56 = vld [vmem:[%s7631_s3 + $0x1d8] sm:$0xff]   ;;  %v5813_v23 = vld [vmem:[%s7631_s3 + $0x1a0] sm:$0xff]  }
 0x950   :  { %5426 = vmatprep.subr.bf16.mxu0 %v5794_v59 }
 0x952   :  { %5407 = vmatpush3.bf16.msra.mxu1 %v5793_v32  ;;  %v5814_v32 = vld [vmem:[%s7631_s3 + $0x1e0] sm:$0xff]  }
 0x953   :  { %5427 = vmatpush3.bf16.msra.mxu0 %v5794_v59  ;;  %5408 = vmatprep.subr.bf16.mxu1 %v5795_v61  ;;  %v5815_v59 = vld [vmem:[%s7631_s3 + $0x1a8] sm:$0xff]  }
 0x954   :  { %5428 = vmatprep.subr.bf16.mxu0 %v5796_v26 }
 0x956   :  { %5409 = vmatpush3.bf16.msra.mxu1 %v5795_v61  ;;  %v5816_v61 = vld [vmem:[%s7631_s3 + $0x1e8] sm:$0xff]  }
 0x957   :  { %5429 = vmatpush3.bf16.msra.mxu0 %v5796_v26  ;;  %5410 = vmatprep.subr.bf16.mxu1 %v5797_v28  ;;  %v5817_v26 = vld [vmem:[%s7631_s3 + $0x1b0] sm:$0xff]  }
 0x958   :  { %5430 = vmatprep.subr.bf16.mxu0 %v5798_v22 }
 0x95a   :  { %5411 = vmatpush3.bf16.msra.mxu1 %v5797_v28  ;;  %v5818_v28 = vld [vmem:[%s7631_s3 + $0x1f0] sm:$0xff]  }
 0x95b   :  { %5431 = vmatpush3.bf16.msra.mxu0 %v5798_v22  ;;  %v5819_v22 = vld [vmem:[%s7631_s3 + $0x1b8] sm:$0xff]  }
 0xa18   :  { %v5050_v29 = vpop.f32.mrb[32].mxu1  ;;  %v5078_v4 = vpop.f32.mrb[36].mxu0 }
 0xa19   :  { %v5051_v43 = vpop.f32.mrb[33].mxu1  ;;  %v5079_v6 = vpop.f32.mrb[37].mxu0 }
 0xa1a   :  { %v5052_v25 = vadd.f32 %v5051_v43, %v5050_v29  ;;  %v5080_v14 = vadd.f32 %v5079_v6, %v5078_v4  ;;  %v5053_v30 = vpop.f32.mrb[34].mxu1  ;;  %v5081_v33 = vpop.f32.mrb[38].mxu0  ;;  %v5799_v29 = vld [vmem:[%s7631_s3 + $0x128] sm:$0xff]   ;;  %v5801_v43 = vld [vmem:[%s7631_s3 + $0x130] sm:$0xff]  }
 0xa1b   :  { %v5054_v34 = vpop.f32.mrb[35].mxu1  ;;  %v5082_v40 = vpop.f32.mrb[39].mxu0  ;;  %v5800_v4 = vld [vmem:[%s7631_s3 + $0x168] sm:$0xff]   ;;  %5412 = vmatprep.subr.bf16.mxu1 %v5799_v29  ;;  %v5802_v6 = vld [vmem:[%s7631_s3 + $0x170] sm:$0xff]  }
 0xa1c   :  { %v2168_v42 = vadd.f32 %v5080_v14, %v5052_v25  ;;  %v5055_v50 = vadd.f32 %v5054_v34, %v5053_v30  ;;  %v5083_v44 = vadd.f32 %v5082_v40, %v5081_v33  ;;  %5432 = vmatprep.subr.bf16.mxu0 %v5800_v4  ;;  %5413 = vmatpush3.bf16.msra.mxu1 %v5799_v29  ;;  %v5803_v25 = vld [vmem:[%s7631_s3 + $0x138] sm:$0xff]   ;;  %v5805_v30 = vld [vmem:[%s7631_s3 + $0x180] sm:$0xff]  }
 0xa1d   :  { %5433 = vmatpush3.bf16.msra.mxu0 %v5800_v4  ;;  %5414 = vmatprep.subr.bf16.mxu1 %v5801_v43  ;;  %v5804_v14 = vld [vmem:[%s7631_s3 + $0x178] sm:$0xff]   ;;  %v5806_v33 = vld [vmem:[%s7631_s3 + $0x1c0] sm:$0xff]  }
 0xa1e   :  { %v2171_v51 = vadd.f32 %v5083_v44, %v5055_v50  ;;  %v6886_v55 = vadd.f32 %v2168_v42, %v6635_v2  ;;  %5434 = vmatprep.subr.bf16.mxu0 %v5802_v6  ;;  %v5820_v29 = vld [vmem:[%s7631_s3 + $0x1f8] sm:$0xff]  }
 0xa20   :  { %v5084_v31 = vpop.f32.mrb[40].mxu0  ;;  %2188 = vadd.xlane.f32.xlu0 %v6886_v55  ;;  %v5056_v58 = vpop.f32.mrb[36].mxu1  ;;  %v6890_v35 = vadd.f32 %v2171_v51, %v6640_v39  ;;  %5415 = vmatpush3.bf16.msra.mxu1 %v5801_v43 }
 0xa21   :  { %v5057_v62 = vpop.f32.mrb[37].mxu1  ;;  %v5085_v47 = vpop.f32.mrb[41].mxu0  ;;  %5435 = vmatpush3.bf16.msra.mxu0 %v5802_v6  ;;  %5416 = vmatprep.subr.bf16.mxu1 %v5803_v25 }
 0xa22   :  { %v5058_v1 = vadd.f32 %v5057_v62, %v5056_v58  ;;  %v5086_v36 = vadd.f32 %v5085_v47, %v5084_v31  ;;  %v5087_v5 = vpop.f32.mrb[42].mxu0  ;;  %2190 = vadd.xlane.f32.xlu1 %v6890_v35  ;;  %v5059_v37 = vpop.f32.mrb[38].mxu1  ;;  %5436 = vmatprep.subr.bf16.mxu0 %v5804_v14  ;;  %v4647_v47 = vld [vmem:[%s7630_s2 + $0x4] sm:$0xf] }
 0xa23   :  { %v5060_v27 = vpop.f32.mrb[39].mxu1  ;;  %v5088_v9 = vpop.f32.mrb[43].mxu0 }
 0xa24   :  { %v2176_v53 = vadd.f32 %v5086_v36, %v5058_v1  ;;  %v5061_v2 = vadd.f32 %v5060_v27, %v5059_v37  ;;  %v5089_v8 = vadd.f32 %v5088_v9, %v5087_v5  ;;  %5417 = vmatpush3.bf16.msra.mxu1 %v5803_v25  ;;  %v2235_v37 = vrot.slane %v4647_v47, %v6261_v52 }
 0xa25   :  { %5437 = vmatpush3.bf16.msra.mxu0 %v5804_v14  ;;  %5442 = vmatprep.subr.bf16.mxu1 %v5805_v30 }
 0xa26   :  { %v2179_v20 = vadd.f32 %v5089_v8, %v5061_v2  ;;  %v6894_v10 = vadd.f32 %v2176_v53, %v6646_v24  ;;  %5462 = vmatprep.subr.bf16.mxu0 %v5806_v33 }
 0xa28   :  { %2192 = vadd.xlane.f32.xlu0 %v6894_v10  ;;  %v6898_v39 = vadd.f32 %v2179_v20, %v6653_v46  ;;  %v2243_v20 = vrot.slane %v4647_v47, %v6269_v57 }
 0xa2a   :  { %2194 = vadd.xlane.f32.xlu1 %v6898_v39 }
 0xaad   :  { %v2189_v21 = vpop.xlane.xlu0 %2188 }
 0xaae   :  { %v2196_v60 = vmul.f32 0.0078125, %v2189_v21 }
 0xaaf   :  { %v2191_v3 = vpop.xlane.xlu1 %2190 }
 0xab0   :  { %v6902_v0 = vsub.f32 %v6886_v55, %v2196_v60  ;;  %v2197_v54 = vmul.f32 0.0078125, %v2191_v3 }
 0xab2   :  { %v6905_v12 = vsub.f32 %v6890_v35, %v2197_v54  ;;  %v2204_v24 = vmul.f32 %v6902_v0, %v6902_v0 }
 0xab4   :  { %2208 = vadd.xlane.f32.xlu0 %v2204_v24  ;;  %v2205_v46 = vmul.f32 %v6905_v12, %v6905_v12 }
 0xab5   :  { %v2193_v7 = vpop.xlane.xlu0 %2192 }
 0xab6   :  { %v2198_v48 = vmul.f32 0.0078125, %v2193_v7  ;;  %2210 = vadd.xlane.f32.xlu1 %v2205_v46 }
 0xab7   :  { %v2195_v41 = vpop.xlane.xlu1 %2194 }
 0xab8   :  { %v6912_v11 = vsub.f32 %v6894_v10, %v2198_v48  ;;  %v2199_v13 = vmul.f32 0.0078125, %v2195_v41 }
 0xaba   :  { %v6915_v15 = vsub.f32 %v6898_v39, %v2199_v13  ;;  %v2206_v16 = vmul.f32 %v6912_v11, %v6912_v11 }
 0xabc   :  { %2212 = vadd.xlane.f32.xlu0 %v2206_v16  ;;  %v2207_v17 = vmul.f32 %v6915_v15, %v6915_v15 }
 0xabe   :  { %2214 = vadd.xlane.f32.xlu1 %v2207_v17  ;;  %v5807_v17 = vld [vmem:[%s7631_s3 + $0x188] sm:$0xff]  }
 0xb41   :  { %v2209_v34 = vpop.xlane.xlu0 %2208 }
 0xb42   :  { %v2216_v40 = vmul.f32 0.0078125, %v2209_v34 }
 0xb43   :  { %v2211_v42 = vpop.xlane.xlu1 %2210 }
 0xb44   :  { %v2220_v50 = vadd.f32 1e-05, %v2216_v40  ;;  %v2217_v44 = vmul.f32 0.0078125, %v2211_v42 }
 0xb46   :  { %5997 = vrsqrt.f32 %v2220_v50  ;;  %v2221_v51 = vadd.f32 1e-05, %v2217_v44 }
 0xb48   :  { %5999 = vrsqrt.f32 %v2221_v51 }
 0xb49   :  { %v2213_v31 = vpop.xlane.xlu0 %2212 }
 0xb4a   :  { %v2218_v58 = vmul.f32 0.0078125, %v2213_v31 }
 0xb4b   :  { %v2215_v62 = vpop.xlane.xlu1 %2214 }
 0xb4c   :  { %v2222_v1 = vadd.f32 1e-05, %v2218_v58  ;;  %v2219_v36 = vmul.f32 0.0078125, %v2215_v62 }
 0xb4e   :  { %6001 = vrsqrt.f32 %v2222_v1  ;;  %v2223_v5 = vadd.f32 1e-05, %v2219_v36 }
 0xb50   :  { %v5998_v27 = vpop.eup %5997  ;;  %6003 = vrsqrt.f32 %v2223_v5 }
 0xb51   :  { %v2228_v9 = vmul.f32 %v5998_v27, %v6902_v0 }
 0xb52   :  { %v6000_v53 = vpop.eup %5999 }
 0xb53   :  { %v2229_v2 = vmul.f32 %v6000_v53, %v6905_v12  ;;  %v2236_v8 = vmul.f32 %v2235_v37, %v2228_v9 }
 0xb55   :  { %v2237_v21 = vmul.f32 %v2235_v37, %v2229_v2  ;;  %v2244_v60 = vadd.f32 %v2243_v20, %v2236_v8 }
 0xb57   :  { %v2245_v3 = vadd.f32 %v2243_v20, %v2237_v21 }
 0xb58   :  { %v6002_v54 = vpop.eup %6001 }
 0xb59   :  { %v2230_v24 = vmul.f32 %v6002_v54, %v6912_v11  ;;  %v2248_v46 = vpack.c.bf16 %v2245_v3, %v2244_v60  ;;  %v5809_v11 = vld [vmem:[%s7631_s3 + $0x190] sm:$0xff]  }
 0xb5a   :  { %v6004_v7 = vpop.eup %6003 }
 0xb5b   :  { %v2238_v48 = vmul.f32 %v2235_v37, %v2230_v24  ;;  %v2231_v41 = vmul.f32 %v6004_v7, %v6915_v15  ;;  %5418 = vmatprep.mubr.bf16.mxu1 %v2248_v46  ;;  %5438 = vmatprep.mubr.bf16.mxu0 %v2248_v46  ;;  %v5810_v15 = vld [vmem:[%s7631_s3 + $0x1d0] sm:$0xff]  }
 0xb5d   :  { %v2239_v0 = vmul.f32 %v2235_v37, %v2231_v41  ;;  %v2246_v13 = vadd.f32 %v2243_v20, %v2238_v48 }
 0xb5f   :  { %v2247_v16 = vadd.f32 %v2243_v20, %v2239_v0 }
 0xb61   :  { %v2249_v12 = vpack.c.bf16 %v2247_v16, %v2246_v13 }
 0xb63   :  { %5419 = vmatmul.mubr.bf16.vlgmr.msra.gmra.mrb[40].mxu1 %v2249_v12  ;;  %5439 = vmatmul.mubr.bf16.vlgmr.msra.gmra.mrb[44].mxu0 %v2249_v12 }
 0xb64   :  { %5443 = vmatpush3.bf16.msra.mxu1 %v5805_v30  ;;  %5463 = vmatpush3.bf16.msra.mxu0 %v5806_v33 }
 0xb65   :  { %5458 = vmatprep.mubr.bf16.mxu1 %v2248_v46  ;;  %5478 = vmatprep.mubr.bf16.mxu0 %v2248_v46 }
 0xb66   :  { %5444 = vmatprep.subr.bf16.mxu1 %v5807_v17  ;;  %5464 = vmatprep.subr.bf16.mxu0 %v5808_v18 }
 0xb68   :  { %5445 = vmatpush3.bf16.msra.mxu1 %v5807_v17  ;;  %5465 = vmatpush3.bf16.msra.mxu0 %v5808_v18  ;;  %v6090_v18 = vld [vmem:[%s7629_s1 + $0x10] sm:$0xff] }
 0xb69   :  { %5446 = vmatprep.subr.bf16.mxu1 %v5809_v11  ;;  %5466 = vmatprep.subr.bf16.mxu0 %v5810_v15 }
 0xb6c   :  { %5447 = vmatpush3.bf16.msra.mxu1 %v5809_v11  ;;  %5467 = vmatpush3.bf16.msra.mxu0 %v5810_v15 }
 0xb6d   :  { %5448 = vmatprep.subr.bf16.mxu1 %v5811_v19  ;;  %5468 = vmatprep.subr.bf16.mxu0 %v5812_v56 }
 0xb70   :  { %5449 = vmatpush3.bf16.msra.mxu1 %v5811_v19  ;;  %5469 = vmatpush3.bf16.msra.mxu0 %v5812_v56  ;;  %v6091_v56 = vld [vmem:[%s7629_s1] sm:$0xff] }
 0xb71   :  { %5450 = vmatprep.subr.bf16.mxu1 %v5813_v23  ;;  %5470 = vmatprep.subr.bf16.mxu0 %v5814_v32 }
 0xb74   :  { %5451 = vmatpush3.bf16.msra.mxu1 %v5813_v23  ;;  %5471 = vmatpush3.bf16.msra.mxu0 %v5814_v32 }
 0xb75   :  { %5452 = vmatprep.subr.bf16.mxu1 %v5815_v59  ;;  %5472 = vmatprep.subr.bf16.mxu0 %v5816_v61 }
 0xb78   :  { %5453 = vmatpush3.bf16.msra.mxu1 %v5815_v59  ;;  %5473 = vmatpush3.bf16.msra.mxu0 %v5816_v61  ;;  %v6092_v61 = vld [vmem:[%s7629_s1 + $0x8] sm:$0xff] }
 0xb79   :  { %5454 = vmatprep.subr.bf16.mxu1 %v5817_v26  ;;  %5474 = vmatprep.subr.bf16.mxu0 %v5818_v28 }
 0xb7c   :  { %5455 = vmatpush3.bf16.msra.mxu1 %v5817_v26  ;;  %5475 = vmatpush3.bf16.msra.mxu0 %v5818_v28 }
 0xb7d   :  { %5456 = vmatprep.subr.bf16.mxu1 %v5819_v22  ;;  %5476 = vmatprep.subr.bf16.mxu0 %v5820_v29 }
 0xb80   :  { %5457 = vmatpush3.bf16.msra.mxu1 %v5819_v22  ;;  %5477 = vmatpush3.bf16.msra.mxu0 %v5820_v29  ;;  %v6093_v22 = vld [vmem:[%s7629_s1 + $0x18] sm:$0xff] }
 0xb83   :  { %5459 = vmatmul.mubr.bf16.vlgmr.msra.gmra.mrb[44].mxu1 %v2249_v12  ;;  %5479 = vmatmul.mubr.bf16.vlgmr.msra.gmra.mrb[48].mxu0 %v2249_v12 }
 0xc36   :  { %v5420_v4 = vpop.f32.mrb[40].mxu1  ;;  %v5440_v43 = vpop.f32.mrb[44].mxu0 }
 0xc37   :  { %v2397_v6 = vpop.f32.mrb[41].mxu1  ;;  %v2494_v25 = vpop.f32.mrb[45].mxu0 }
 0xc38   :  { %v5421_v14 = vpop.f32.mrb[42].mxu1  ;;  %v5441_v30 = vpop.f32.mrb[46].mxu0 }
 0xc39   :  { %v7026_v33 = vpack.c.bf16 %v5421_v14, %v5420_v4  ;;  %v7028_v34 = vpack.c.bf16 %v5441_v30, %v5440_v43  ;;  %v2400_v40 = vpop.f32.mrb[43].mxu1  ;;  %v2497_v42 = vpop.f32.mrb[47].mxu0 }
 0xc3a   :  { %v7030_v50 = vpack.c.bf16 %v2400_v40, %v2397_v6  ;;  %v7032_v44 = vpack.c.bf16 %v2497_v42, %v2494_v25 }
 0xc3b   :  { %2715 = vrot.lane.b32.xlu1 %v7026_v33, %s6119_s20 }
 0xc3c   :  { %2713 = vrot.lane.b32.xlu0 %v7030_v50, %s6119_s20  ;;  %5486 = vmatprep.mubr.msk.bf16.mxu1 %vm572_vm0, %v7030_v50 }
 0xc3f   :  { %2780 = vrot.lane.b32.xlu1 %v7032_v44, %s6119_s20 }
 0xc43   :  { %2782 = vrot.lane.b32.xlu1 %v7028_v34, %s6119_s20 }
 0xc56   :  { %v5460_v51 = vpop.f32.mrb[44].mxu1  ;;  %v5480_v31 = vpop.f32.mrb[48].mxu0 }
 0xc57   :  { %v2591_v58 = vpop.f32.mrb[45].mxu1  ;;  %v2688_v62 = vpop.f32.mrb[49].mxu0 }
 0xc58   :  { %v5461_v47 = vpop.f32.mrb[46].mxu1  ;;  %v5481_v1 = vpop.f32.mrb[50].mxu0 }
 0xc59   :  { %v7044_v36 = vpack.c.bf16 %v5461_v47, %v5460_v51  ;;  %v7046_v5 = vpack.c.bf16 %v5481_v1, %v5480_v31  ;;  %v2594_v37 = vpop.f32.mrb[47].mxu1  ;;  %v2691_v27 = vpop.f32.mrb[51].mxu0 }
 0xc5a   :  { %v7048_v9 = vpack.c.bf16 %v2594_v37, %v2591_v58  ;;  %v7050_v53 = vpack.c.bf16 %v2691_v27, %v2688_v62 }
 0xc5c   :  { %2914 = vrot.lane.b32.xlu1 %v7050_v53, %s6119_s20  ;;  %2847 = vrot.lane.b32.xlu0 %v7048_v9, %s6119_s20 }
 0xc5d   :  { %5502 = vmatprep.mubr.msk.bf16.mxu0 %vm572_vm0, %v7048_v9 }
 0xc60   :  { %2916 = vrot.lane.b32.xlu1 %v7046_v5, %s6119_s20  ;;  %2849 = vrot.lane.b32.xlu0 %v7044_v36, %s6119_s20 }
 0xcad   :  { %v2716_v20 = vpop.permute.xlu1 %2715 }
 0xcae   :  { %v2714_v2 = vpop.permute.xlu0 %2713  ;;  %v2727_v21 = vsel %vm572_vm0, %v2716_v20, 0 }
 0xcaf   :  { %v2724_v8 = vsel %vm572_vm0, %v2714_v2, 0  ;;  %5594 = vmatprep.subr.msk.bf16.mxu1 %vm572_vm0, %v2714_v2 }
 0xcb0   :  { %5483 = vmatpush3.bf16.xpose.msra.mxu1 %v2724_v8 }
 0xcb1   :  { %5595 = vmatprep.subr.msk.bf16.mxu1 %vm572_vm0, %v2716_v20  ;;  %v2781_v60 = vpop.permute.xlu1 %2780 }
 0xcb2   :  { %v2791_v3 = vsel %vm572_vm0, %v2781_v60, 0 }
 0xcb5   :  { %v2783_v54 = vpop.permute.xlu1 %2782 }
 0xcb6   :  { %v2794_v24 = vsel %vm572_vm0, %v2783_v54, 0 }
 0xcb8   :  { %5485 = vmatpush3.bf16.xpose.msra.mxu1 %v2727_v21 }
 0xcb9   :  { %5596 = vmatprep.subr.msk.bf16.mxu1 %vm572_vm0, %v2781_v60 }
 0xcbf   :  { %5487 = vmatmul.mubr.msk.bf16.vlgmr.msra.gmra.mrb[48].mxu1 %vm572_vm0, %v7026_v33 }
 0xcc0   :  { %5491 = vmatpush3.bf16.xpose.msra.mxu1 %v2791_v3  ;;  %5494 = vmatprep.mubr.msk.bf16.mxu1 %vm572_vm0, %v7032_v44 }
 0xcc1   :  { %5597 = vmatprep.subr.msk.bf16.mxu1 %vm572_vm0, %v2783_v54 }
 0xcc8   :  { %5493 = vmatpush3.bf16.xpose.msra.mxu1 %v2794_v24 }
 0xcce   :  { %v2915_v46 = vpop.permute.xlu1 %2914  ;;  %v2848_v7 = vpop.permute.xlu0 %2847 }
 0xccf   :  { %v2925_v48 = vsel %vm572_vm0, %v2915_v46, 0  ;;  %v2858_v41 = vsel %vm572_vm0, %v2848_v7, 0  ;;  %5598 = vmatprep.subr.msk.bf16.mxu0 %vm572_vm0, %v2848_v7  ;;  %5600 = vmatprep.subr.msk.bf16.mxu1 %vm572_vm0, %v2915_v46 }
 0xcd0   :  { %5495 = vmatmul.mubr.msk.bf16.vlgmr.msra.gmra.mrb[52].mxu1 %vm572_vm0, %v7028_v34  ;;  %5499 = vmatpush3.bf16.xpose.msra.mxu0 %v2858_v41 }
 0xcd1   :  { %5507 = vmatpush3.bf16.xpose.msra.mxu1 %v2925_v48  ;;  %5510 = vmatprep.mubr.msk.bf16.mxu1 %vm572_vm0, %v7050_v53 }
 0xcd2   :  { %v2917_v0 = vpop.permute.xlu1 %2916  ;;  %v2850_v13 = vpop.permute.xlu0 %2849 }
 0xcd3   :  { %5599 = vmatprep.subr.msk.bf16.mxu0 %vm572_vm0, %v2850_v13  ;;  %5601 = vmatprep.subr.msk.bf16.mxu1 %vm572_vm0, %v2917_v0  ;;  %v2861_v16 = vsel %vm572_vm0, %v2850_v13, 0  ;;  %v2928_v12 = vsel %vm572_vm0, %v2917_v0, 0 }
 0xcd8   :  { %5501 = vmatpush3.bf16.xpose.msra.mxu0 %v2861_v16 }
 0xcd9   :  { %5509 = vmatpush3.bf16.xpose.msra.mxu1 %v2928_v12 }
 0xcdf   :  { %5503 = vmatmul.mubr.msk.bf16.vlgmr.msra.gmra.mrb[52].mxu0 %vm572_vm0, %v7044_v36 }
 0xce0   :  { %5511 = vmatmul.mubr.msk.bf16.vlgmr.msra.gmra.mrb[56].mxu1 %vm572_vm0, %v7046_v5 }
 0xd92   :  { %v5488_v17 = vpop.f32.mrb[48].mxu1 }
 0xd93   :  { %v7093_v11 = vadd.f32 %v6090_v18, %v5488_v17  ;;  %v2763_v15 = vpop.f32.mrb[49].mxu1 }
 0xd94   :  { %v5489_v19 = vpop.f32.mrb[50].mxu1  ;;  %v7098_v23 = vadd.f32 %v6091_v56, %v2763_v15 }
 0xd95   :  { %v2766_v32 = vpop.f32.mrb[51].mxu1  ;;  %v2985_v59 = vsel %vm572_vm0, %v7093_v11, -inf  ;;  %v7112_v29 = vadd.f32 %v6093_v22, %v5489_v19 }
 0xd96   :  { %v7105_v26 = vadd.f32 %v6092_v61, %v2766_v32  ;;  %2986 = vmax.xlane.f32.xlu0 %v2985_v59  ;;  %v2979_v4 = vsel %vm572_vm0, %v7098_v23, -inf }
 0xd97   :  { %v2988_v43 = vsel %vm572_vm0, %v7112_v29, -inf }
 0xd98   :  { %v2982_v28 = vsel %vm572_vm0, %v7105_v26, -inf }
 0xd99   :  { %2983 = vmax.xlane.f32.xlu1 %v2982_v28 }
 0xd9a   :  { %2980 = vmax.xlane.f32.xlu0 %v2979_v4 }
 0xd9e   :  { %2989 = vmax.xlane.f32.xlu0 %v2988_v43 }
 0xda3   :  { %v5496_v6 = vpop.f32.mrb[52].mxu1 }
 0xda4   :  { %v7118_v25 = vadd.f32 %v6090_v18, %v5496_v6  ;;  %v2830_v14 = vpop.f32.mrb[53].mxu1 }
 0xda5   :  { %v5497_v30 = vpop.f32.mrb[54].mxu1  ;;  %v7120_v40 = vadd.f32 %v6091_v56, %v2830_v14 }
 0xda6   :  { %v7122_v42 = vadd.f32 %v6093_v22, %v5497_v30  ;;  %v2833_v51 = vpop.f32.mrb[55].mxu1  ;;  %v2997_v31 = vsel %vm572_vm0, %v7118_v25, -inf }
 0xda7   :  { %2998 = vmax.xlane.f32.xlu0 %v2997_v31  ;;  %v7126_v58 = vadd.f32 %v6092_v61, %v2833_v51  ;;  %v2991_v47 = vsel %vm572_vm0, %v7120_v40, -inf }
 0xda8   :  { %v3000_v62 = vsel %vm572_vm0, %v7122_v42, -inf }
 0xda9   :  { %3001 = vmax.xlane.f32.xlu1 %v3000_v62  ;;  %v2994_v1 = vsel %vm572_vm0, %v7126_v58, -inf }
 0xdab   :  { %2992 = vmax.xlane.f32.xlu0 %v2991_v47 }
 0xdad   :  { %2995 = vmax.xlane.f32.xlu1 %v2994_v1 }
 0xdb2   :  { %v5504_v37 = vpop.f32.mrb[52].mxu0 }
 0xdb3   :  { %v7134_v27 = vadd.f32 %v6090_v18, %v5504_v37  ;;  %v2897_v2 = vpop.f32.mrb[53].mxu0  ;;  %v5512_v8 = vpop.f32.mrb[56].mxu1 }
 0xdb4   :  { %v5505_v20 = vpop.f32.mrb[54].mxu0  ;;  %v2964_v21 = vpop.f32.mrb[57].mxu1  ;;  %v7136_v60 = vadd.f32 %v6091_v56, %v2897_v2  ;;  %v7144_v41 = vadd.f32 %v6090_v18, %v5512_v8 }
 0xdb5   :  { %v7138_v3 = vadd.f32 %v6093_v22, %v5505_v20  ;;  %v2900_v54 = vpop.f32.mrb[55].mxu0  ;;  %v5513_v24 = vpop.f32.mrb[58].mxu1  ;;  %v3009_v46 = vsel %vm572_vm0, %v7134_v27, -inf  ;;  %v7148_v13 = vadd.f32 %v6091_v56, %v2964_v21 }
 0xdb6   :  { %v2967_v7 = vpop.f32.mrb[59].mxu1  ;;  %3010 = vmax.xlane.f32.xlu0 %v3009_v46  ;;  %v3003_v0 = vsel %vm572_vm0, %v7136_v60, -inf  ;;  %v3021_v16 = vsel %vm572_vm0, %v7144_v41, -inf  ;;  %v7164_v17 = vadd.f32 %v6092_v61, %v2900_v54  ;;  %v7166_v18 = vadd.f32 %v6093_v22, %v5513_v24 }
 0xdb7   :  { %v3012_v48 = vsel %vm572_vm0, %v7138_v3, -inf  ;;  %v3015_v12 = vsel %vm572_vm0, %v7148_v13, -inf }
 0xdb8   :  { %3013 = vmax.xlane.f32.xlu1 %v3012_v48  ;;  %v3006_v15 = vsel %vm572_vm0, %v7164_v17, -inf }
 0xdba   :  { %3004 = vmax.xlane.f32.xlu0 %v3003_v0 }
 0xdbe   :  { %3022 = vmax.xlane.f32.xlu0 %v3021_v16 }
 0xdc2   :  { %3016 = vmax.xlane.f32.xlu0 %v3015_v12 }
 0xdc9   :  { %3224 = vrot.lane.b32.xlu1 %v7032_v44, %s6120_s29  ;;  %v7170_v44 = vadd.f32 %v6092_v61, %v2967_v7 }
 0xdcd   :  { %3165 = vrot.lane.b32.xlu1 %v7026_v33, %s6120_s29  ;;  %v3024_v33 = vsel %vm572_vm0, %v7166_v18, -inf }
 0xdd1   :  { %3226 = vrot.lane.b32.xlu1 %v7028_v34, %s6120_s29  ;;  %v3018_v34 = vsel %vm572_vm0, %v7170_v44, -inf }
 0xdd8   :  { %3163 = vrot.lane.b32.xlu0 %v7030_v50, %s6120_s29 }
 0xddc   :  { %3285 = vrot.lane.b32.xlu0 %v7048_v9, %s6120_s29 }
 0xdf5   :  { %3007 = vmax.xlane.f32.xlu1 %v3006_v15 }
 0xdf9   :  { %3025 = vmax.xlane.f32.xlu1 %v3024_v33 }
 0xdfd   :  { %3019 = vmax.xlane.f32.xlu1 %v3018_v34 }
 0xe0e   :  { %3346 = vrot.lane.b32.xlu1 %v7050_v53, %s6120_s29 }
 0xe23   :  { %v2987_v50 = vpop.xlane.xlu0 %2986 }
 0xe24   :  { %v3029_v9 = vsub.f32 %v7093_v11, %v2987_v50 }
 0xe26   :  { %v3047_v19 = vmul.f32 1.442695, %v3029_v9  ;;  %v2984_v56 = vpop.xlane.xlu1 %2983 }
 0xe27   :  { %v2981_v32 = vpop.xlane.xlu0 %2980  ;;  %v3028_v61 = vsub.f32 %v7105_v26, %v2984_v56 }
 0xe28   :  { %6005 = vpow2.f32 %v3047_v19  ;;  %v3027_v59 = vsub.f32 %v7098_v23, %v2981_v32 }
 0xe29   :  { %v3045_v43 = vmul.f32 1.442695, %v3028_v61 }
 0xe2a   :  { %v3043_v28 = vmul.f32 1.442695, %v3027_v59 }
 0xe2b   :  { %v2990_v22 = vpop.xlane.xlu0 %2989 }
 0xe2c   :  { %6007 = vpow2.f32 %v3043_v28  ;;  %v3030_v4 = vsub.f32 %v7112_v29, %v2990_v22 }
 0xe2e   :  { %v3049_v6 = vmul.f32 1.442695, %v3030_v4 }
 0xe30   :  { %6009 = vpow2.f32 %v3049_v6 }
 0xe31   :  { %6011 = vpow2.f32 %v3045_v43 }
 0xe32   :  { %v7182_v53 = vpop.eup %6005 }
 0xe33   :  { %v3081_v11 = vsel %vm572_vm0, %v7182_v53, 0.0 }
 0xe34   :  { %v2999_v14 = vpop.xlane.xlu0 %2998  ;;  %3082 = vadd.xlane.f32.xlu0 %v3081_v11 }
 0xe35   :  { %v3033_v23 = vsub.f32 %v7118_v25, %v2999_v14 }
 0xe36   :  { %v7187_v30 = vpop.eup %6007  ;;  %v3002_v26 = vpop.xlane.xlu1 %3001 }
 0xe37   :  { %v3055_v51 = vmul.f32 1.442695, %v3033_v23  ;;  %v3034_v31 = vsub.f32 %v7122_v42, %v3002_v26  ;;  %v3075_v29 = vsel %vm572_vm0, %v7187_v30, 0.0 }
 0xe38   :  { %v2993_v62 = vpop.xlane.xlu0 %2992  ;;  %3076 = vadd.xlane.f32.xlu0 %v3075_v29 }
 0xe39   :  { %6013 = vpow2.f32 %v3055_v51  ;;  %v3057_v47 = vmul.f32 1.442695, %v3034_v31  ;;  %v3031_v1 = vsub.f32 %v7120_v40, %v2993_v62 }
 0xe3a   :  { %v7193_v37 = vpop.eup %6009  ;;  %v2996_v2 = vpop.xlane.xlu1 %2995 }
 0xe3b   :  { %6015 = vpow2.f32 %v3057_v47  ;;  %v3051_v25 = vmul.f32 1.442695, %v3031_v1  ;;  %v3032_v8 = vsub.f32 %v7126_v58, %v2996_v2  ;;  %v3084_v20 = vsel %vm572_vm0, %v7193_v37, 0.0  ;;  %v7198_v42 = vpop.eup %6011 }
 0xe3c   :  { %3085 = vadd.xlane.f32.xlu1 %v3084_v20  ;;  %v3078_v54 = vsel %vm572_vm0, %v7198_v42, 0.0 }
 0xe3d   :  { %6017 = vpow2.f32 %v3051_v25  ;;  %v3053_v21 = vmul.f32 1.442695, %v3032_v8 }
 0xe3f   :  { %6019 = vpow2.f32 %v3053_v21 }
 0xe40   :  { %3079 = vadd.xlane.f32.xlu1 %v3078_v54 }
 0xe43   :  { %v7202_v40 = vpop.eup %6013  ;;  %v3011_v24 = vpop.xlane.xlu0 %3010 }
 0xe44   :  { %v3037_v46 = vsub.f32 %v7134_v27, %v3011_v24  ;;  %v3093_v58 = vsel %vm572_vm0, %v7202_v40, 0.0 }
 0xe45   :  { %v7207_v7 = vpop.eup %6015  ;;  %v3014_v48 = vpop.xlane.xlu1 %3013  ;;  %3094 = vadd.xlane.f32.xlu0 %v3093_v58 }
 0xe46   :  { %v3063_v0 = vmul.f32 1.442695, %v3037_v46  ;;  %v3038_v16 = vsub.f32 %v7138_v3, %v3014_v48  ;;  %v3096_v12 = vsel %vm572_vm0, %v7207_v7, 0.0 }
 0xe47   :  { %v7212_v15 = vpop.eup %6017  ;;  %3097 = vadd.xlane.f32.xlu1 %v3096_v12  ;;  %v3005_v33 = vpop.xlane.xlu0 %3004 }
 0xe48   :  { %6021 = vpow2.f32 %v3063_v0  ;;  %v3065_v34 = vmul.f32 1.442695, %v3038_v16  ;;  %v3035_v27 = vsub.f32 %v7136_v60, %v3005_v33  ;;  %v3087_v50 = vsel %vm572_vm0, %v7212_v15, 0.0 }
 0xe49   :  { %v7217_v9 = vpop.eup %6019  ;;  %v3225_v19 = vpop.permute.xlu1 %3224  ;;  %3088 = vadd.xlane.f32.xlu0 %v3087_v50 }
 0xe4a   :  { %6023 = vpow2.f32 %v3065_v34  ;;  %v3059_v3 = vmul.f32 1.442695, %v3035_v27  ;;  %5522 = vmatprep.subr.bf16.mxu1 %v3225_v19  ;;  %v3090_v56 = vsel %vm572_vm0, %v7217_v9, 0.0 }
 0xe4b   :  { %5523 = vmatpush3.bf16.msra.mxu1 %v3225_v19  ;;  %3091 = vadd.xlane.f32.xlu1 %v3090_v56  ;;  %v3023_v32 = vpop.xlane.xlu0 %3022 }
 0xe4c   :  { %6025 = vpow2.f32 %v3059_v3  ;;  %v3041_v59 = vsub.f32 %v7144_v41, %v3023_v32 }
 0xe4d   :  { %v3166_v60 = vpop.permute.xlu1 %3165 }
 0xe4e   :  { %v3071_v61 = vmul.f32 1.442695, %v3041_v59 }
 0xe4f   :  { %v3017_v28 = vpop.xlane.xlu0 %3016 }
 0xe50   :  { %6027 = vpow2.f32 %v3071_v61  ;;  %v3039_v22 = vsub.f32 %v7148_v13, %v3017_v28 }
 0xe51   :  { %v3227_v4 = vpop.permute.xlu1 %3226 }
 0xe52   :  { %v7223_v43 = vpop.eup %6021  ;;  %v3067_v6 = vmul.f32 1.442695, %v3039_v22  ;;  %5524 = vmatprep.subr.bf16.mxu1 %v3227_v4 }
 0xe53   :  { %5525 = vmatpush3.bf16.msra.mxu1 %v3227_v4  ;;  %v3164_v11 = vpop.permute.xlu0 %3163  ;;  %v3105_v14 = vsel %vm572_vm0, %v7223_v43, 0.0 }
 0xe54   :  { %v7227_v23 = vpop.eup %6023  ;;  %6029 = vpow2.f32 %v3067_v6  ;;  %3106 = vadd.xlane.f32.xlu0 %v3105_v14  ;;  %5514 = vmatprep.subr.bf16.mxu0 %v3164_v11 }
 0xe55   :  { %5515 = vmatpush3.bf16.msra.mxu0 %v3164_v11  ;;  %v3108_v41 = vsel %vm572_vm0, %v7227_v23, 0.0 }
 0xe56   :  { %v7231_v13 = vpop.eup %6025  ;;  %3109 = vadd.xlane.f32.xlu1 %v3108_v41  ;;  %5516 = vmatprep.subr.bf16.mxu0 %v3166_v60 }
 0xe57   :  { %v3099_v26 = vsel %vm572_vm0, %v7231_v13, 0.0  ;;  %v3286_v51 = vpop.permute.xlu0 %3285 }
 0xe58   :  { %3100 = vadd.xlane.f32.xlu0 %v3099_v26 }
 0xe59   :  { %5517 = vmatpush3.bf16.msra.mxu0 %v3166_v60 }
 0xe5a   :  { %v7235_v31 = vpop.eup %6027  ;;  %5530 = vmatprep.subr.bf16.mxu0 %v3286_v51 }
 0xe5b   :  { %v3117_v29 = vsel %vm572_vm0, %v7235_v31, 0.0 }
 0xe5c   :  { %3118 = vadd.xlane.f32.xlu0 %v3117_v29 }
 0xe5e   :  { %v7239_v62 = vpop.eup %6029 }
 0xe5f   :  { %v3111_v47 = vsel %vm572_vm0, %v7239_v62, 0.0 }
 0xe60   :  { %3112 = vadd.xlane.f32.xlu0 %v3111_v47 }
 0xe76   :  { %3287 = vrot.lane.b32.xlu0 %v7044_v36, %s6120_s29 }
 0xe82   :  { %v3008_v1 = vpop.xlane.xlu1 %3007 }
 0xe83   :  { %v3036_v2 = vsub.f32 %v7164_v17, %v3008_v1 }
 0xe85   :  { %v3061_v25 = vmul.f32 1.442695, %v3036_v2 }
 0xe86   :  { %v3026_v8 = vpop.xlane.xlu1 %3025 }
 0xe87   :  { %6031 = vpow2.f32 %v3061_v25  ;;  %v3042_v20 = vsub.f32 %v7166_v18, %v3026_v8 }
 0xe89   :  { %v3073_v21 = vmul.f32 1.442695, %v3042_v20 }
 0xe8a   :  { %v3020_v54 = vpop.xlane.xlu1 %3019 }
 0xe8b   :  { %6033 = vpow2.f32 %v3073_v21  ;;  %v3040_v24 = vsub.f32 %v7170_v44, %v3020_v54 }
 0xe8d   :  { %v3069_v46 = vmul.f32 1.442695, %v3040_v24 }
 0xe8e   :  { %v3347_v58 = vpop.permute.xlu1 %3346 }
 0xe8f   :  { %6035 = vpow2.f32 %v3069_v46  ;;  %5538 = vmatprep.subr.bf16.mxu1 %v3347_v58 }
 0xe91   :  { %v7248_v48 = vpop.eup %6031 }
 0xe92   :  { %v3102_v36 = vsel %vm572_vm0, %v7248_v48, 0.0 }
 0xe93   :  { %3103 = vadd.xlane.f32.xlu1 %v3102_v36 }
 0xe95   :  { %v7252_v17 = vpop.eup %6033 }
 0xe96   :  { %v3120_v18 = vsel %vm572_vm0, %v7252_v17, 0.0 }
 0xe97   :  { %3121 = vadd.xlane.f32.xlu1 %v3120_v18 }
 0xe99   :  { %v7256_v0 = vpop.eup %6035 }
 0xe9a   :  { %v3114_v44 = vsel %vm572_vm0, %v7256_v0, 0.0 }
 0xe9b   :  { %3115 = vadd.xlane.f32.xlu1 %v3114_v44 }
 0xeac   :  { %3348 = vrot.lane.b32.xlu1 %v7046_v5, %s6120_s29 }
 0xec1   :  { %v3083_v16 = vpop.xlane.xlu0 %3082 }
 0xec5   :  { %v3077_v12 = vpop.xlane.xlu0 %3076 }
 0xec9   :  { %v3086_v33 = vpop.xlane.xlu1 %3085 }
 0xeca   :  { %6037 = vrcp.f32 %v3086_v33 }
 0xecb   :  { %6039 = vrcp.f32 %v3077_v12 }
 0xecc   :  { %6041 = vrcp.f32 %v3083_v16 }
 0xecd   :  { %v3080_v34 = vpop.xlane.xlu1 %3079 }
 0xece   :  { %6043 = vrcp.f32 %v3080_v34 }
 0xed2   :  { %v3095_v27 = vpop.xlane.xlu0 %3094 }
 0xed4   :  { %v3098_v50 = vpop.xlane.xlu1 %3097  ;;  %v6038_v19 = vpop.eup %6037 }
 0xed5   :  { %v6040_v3 = vpop.eup %6039  ;;  %6045 = vrcp.f32 %v3098_v50  ;;  %v3142_v60 = vmul.f32 %v6038_v19, %v7193_v37 }
 0xed6   :  { %v3089_v56 = vpop.xlane.xlu0 %3088  ;;  %v6042_v32 = vpop.eup %6041  ;;  %v3139_v61 = vmul.f32 %v6040_v3, %v7187_v30 }
 0xed7   :  { %6047 = vrcp.f32 %v3089_v56  ;;  %v3141_v22 = vmul.f32 %v6042_v32, %v7182_v53 }
 0xed8   :  { %v6044_v59 = vpop.eup %6043  ;;  %6049 = vrcp.f32 %v3095_v27  ;;  %v3092_v5 = vpop.xlane.xlu1 %3091 }
 0xed9   :  { %6051 = vrcp.f32 %v3092_v5  ;;  %v3140_v28 = vmul.f32 %v6044_v59, %v7198_v42  ;;  %v3156_v6 = vpack.c.bf16 %v3142_v60, %v3141_v22 }
 0xedb   :  { %v3155_v4 = vpack.c.bf16 %v3140_v28, %v3139_v61 }
 0xedd   :  { %5518 = vmatprep.mubr.msk.bf16.mxu0 %vm572_vm0, %v3155_v4  ;;  %v5824_v4 = vld [vmem:[%s7632_s4 + $0x58] sm:$0xff]  }
 0xede   :  { %5519 = vmatmul.mubr.msk.bf16.vlgmr.msra.gmra.mrb[56].mxu0 %vm572_vm0, %v3156_v6 }
 0xedf   :  { %5531 = vmatpush3.bf16.msra.mxu0 %v3286_v51  ;;  %v6046_v11 = vpop.eup %6045 }
 0xee0   :  { %v3146_v29 = vmul.f32 %v6046_v11, %v7207_v7  ;;  %v5825_v11 = vld [vmem:[%s7632_s4 + $0x60] sm:$0xff]  }
 0xee1   :  { %v6048_v14 = vpop.eup %6047  ;;  %v3107_v41 = vpop.xlane.xlu0 %3106 }
 0xee2   :  { %v6050_v37 = vpop.eup %6049  ;;  %v3143_v30 = vmul.f32 %v6048_v14, %v7212_v15  ;;  %v5826_v14 = vld [vmem:[%s7632_s4 + $0x68] sm:$0xff]  }
 0xee3   :  { %v6052_v26 = vpop.eup %6051  ;;  %v3145_v53 = vmul.f32 %v6050_v37, %v7202_v40  ;;  %v3110_v7 = vpop.xlane.xlu1 %3109 }
 0xee4   :  { %v3144_v42 = vmul.f32 %v6052_v26, %v7217_v9  ;;  %6053 = vrcp.f32 %v3110_v7 }
 0xee5   :  { %v3101_v47 = vpop.xlane.xlu0 %3100  ;;  %v3158_v2 = vpack.c.bf16 %v3146_v29, %v3145_v53 }
 0xee6   :  { %v3157_v1 = vpack.c.bf16 %v3144_v42, %v3143_v30  ;;  %6055 = vrcp.f32 %v3101_v47  ;;  %v5828_v30 = vld [vmem:[%s7632_s4 + $0x78] sm:$0xff]  }
 0xee7   :  { %6057 = vrcp.f32 %v3107_v41  ;;  %v5827_v41 = vld [vmem:[%s7632_s4 + $0x70] sm:$0xff]  }
 0xee8   :  { %5526 = vmatprep.mubr.msk.bf16.mxu1 %vm572_vm0, %v3157_v1 }
 0xee9   :  { %5527 = vmatmul.mubr.msk.bf16.vlgmr.msra.gmra.mrb[60].mxu1 %vm572_vm0, %v3158_v2  ;;  %v3119_v51 = vpop.xlane.xlu0 %3118 }
 0xeea   :  { %5539 = vmatpush3.bf16.msra.mxu1 %v3347_v58 }
 0xeed   :  { %v3113_v25 = vpop.xlane.xlu0 %3112 }
 0xeee   :  { %v6054_v9 = vpop.eup %6053 }
 0xeef   :  { %v3150_v46 = vmul.f32 %v6054_v9, %v7227_v23 }
 0xef0   :  { %v6056_v21 = vpop.eup %6055 }
 0xef1   :  { %v3288_v8 = vpop.permute.xlu0 %3287  ;;  %v6058_v54 = vpop.eup %6057  ;;  %v3147_v36 = vmul.f32 %v6056_v21, %v7231_v13 }
 0xef2   :  { %5532 = vmatprep.subr.bf16.mxu0 %v3288_v8  ;;  %v3149_v44 = vmul.f32 %v6058_v54, %v7223_v43 }
 0xef3   :  { %5533 = vmatpush3.bf16.msra.mxu0 %v3288_v8 }
 0xef4   :  { %v3160_v12 = vpack.c.bf16 %v3150_v46, %v3149_v44 }
 0xf20   :  { %v3104_v15 = vpop.xlane.xlu1 %3103 }
 0xf21   :  { %6059 = vrcp.f32 %v3104_v15 }
 0xf24   :  { %v3122_v40 = vpop.xlane.xlu1 %3121 }
 0xf25   :  { %6061 = vrcp.f32 %v3122_v40 }
 0xf26   :  { %6063 = vrcp.f32 %v3113_v25 }
 0xf27   :  { %6065 = vrcp.f32 %v3119_v51 }
 0xf28   :  { %v3116_v20 = vpop.xlane.xlu1 %3115 }
 0xf29   :  { %6067 = vrcp.f32 %v3116_v20 }
 0xf2b   :  { %v6060_v24 = vpop.eup %6059 }
 0xf2c   :  { %v3349_v58 = vpop.permute.xlu1 %3348  ;;  %v3148_v18 = vmul.f32 %v6060_v24, %v7248_v48 }
 0xf2d   :  { %5540 = vmatprep.subr.bf16.mxu1 %v3349_v58 }
 0xf2e   :  { %5541 = vmatpush3.bf16.msra.mxu1 %v3349_v58  ;;  %v3159_v16 = vpack.c.bf16 %v3148_v18, %v3147_v36 }
 0xf2f   :  { %v6062_v33 = vpop.eup %6061 }
 0xf30   :  { %5534 = vmatprep.mubr.msk.bf16.mxu0 %vm572_vm0, %v3159_v16  ;;  %v6064_v34 = vpop.eup %6063  ;;  %v3154_v23 = vmul.f32 %v6062_v33, %v7252_v17 }
 0xf31   :  { %5535 = vmatmul.mubr.msk.bf16.vlgmr.msra.gmra.mrb[60].mxu0 %vm572_vm0, %v3160_v12  ;;  %v6066_v27 = vpop.eup %6065  ;;  %v3151_v13 = vmul.f32 %v6064_v34, %v7239_v62  ;;  %v5822_v62 = vld [vmem:[%s7632_s4 + $0x48] sm:$0xff]  }
 0xf32   :  { %v3153_v43 = vmul.f32 %v6066_v27, %v7235_v31  ;;  %v5821_v31 = vld [vmem:[%s7632_s4 + $0x40] sm:$0xff]  }
 0xf33   :  { %v6068_v50 = vpop.eup %6067  ;;  %5546 = vmatprep.subr.bf16.mxu0 %v5821_v31 }
 0xf34   :  { %v3152_v48 = vmul.f32 %v6068_v50, %v7256_v0  ;;  %v3162_v3 = vpack.c.bf16 %v3154_v23, %v3153_v43  ;;  %5547 = vmatpush3.bf16.msra.mxu0 %v5821_v31  ;;  %v5823_v0 = vld [vmem:[%s7632_s4 + $0x50] sm:$0xff]  }
 0xf35   :  { %5548 = vmatprep.subr.bf16.mxu0 %v5822_v62 }
 0xf36   :  { %v3161_v19 = vpack.c.bf16 %v3152_v48, %v3151_v13 }
 0xf38   :  { %5542 = vmatprep.mubr.msk.bf16.mxu1 %vm572_vm0, %v3161_v19  ;;  %5549 = vmatpush3.bf16.msra.mxu0 %v5822_v62 }
 0xf39   :  { %5543 = vmatmul.mubr.msk.bf16.vlgmr.msra.gmra.mrb[64].mxu1 %vm572_vm0, %v3162_v3  ;;  %5550 = vmatprep.subr.bf16.mxu0 %v5823_v0 }
 0xf3a   :  { %3874 = vmatprep.mubr.bf16.mxu1 %v6122_v63 }
 0xf3c   :  { %5551 = vmatpush3.bf16.msra.mxu0 %v5823_v0 }
 0xf3d   :  { %5552 = vmatprep.subr.bf16.mxu0 %v5824_v4 }
 0xf40   :  { %5553 = vmatpush3.bf16.msra.mxu0 %v5824_v4 }
 0xf41   :  { %5554 = vmatprep.subr.bf16.mxu0 %v5825_v11 }
 0xf44   :  { %5555 = vmatpush3.bf16.msra.mxu0 %v5825_v11 }
 0xf45   :  { %5556 = vmatprep.subr.bf16.mxu0 %v5826_v14 }
 0xf48   :  { %5557 = vmatpush3.bf16.msra.mxu0 %v5826_v14 }
 0xf49   :  { %5558 = vmatprep.subr.bf16.mxu0 %v5827_v41 }
 0xf4c   :  { %5559 = vmatpush3.bf16.msra.mxu0 %v5827_v41  ;;  %v5834_v41 = vld [vmem:[%s7633_s5 + $0x10c] ss:$16 sps:$4 sm:$0xff]  }
 0xf4d   :  { %5560 = vmatprep.subr.bf16.mxu0 %v5828_v30 }
 0xf50   :  { %5561 = vmatpush3.bf16.msra.mxu0 %v5828_v30 }
 0xf51   :  { %3895 = vmatprep.subr.bf16.mxu0 %v5834_v41 }
 0xfb1   :  { %v7287_v56 = vpop.f32.mrb[56].mxu0 }
 0xfb2   :  { %v7289_v32 = vpop.f32.mrb[57].mxu0 }
 0xfb3   :  { %v7291_v59 = vpop.f32.mrb[58].mxu0 }
 0xfb4   :  { %v7293_v17 = vpop.f32.mrb[59].mxu0 }
 0xfbc   :  { %v5528_v60 = vpop.f32.mrb[60].mxu1 }
 0xfbd   :  { %v3270_v5 = vpop.f32.mrb[61].mxu1 }
 0xfbe   :  { %v5529_v61 = vpop.f32.mrb[62].mxu1 }
 0xfbf   :  { %v5639_v28 = vpack.i.bf16 %v5529_v61, %v5528_v60  ;;  %v3273_v22 = vpop.f32.mrb[63].mxu1 }
 0xfc0   :  { %v5644_v6 = vpack.i.bf16 %v3273_v22, %v3270_v5 }
 0xfc1   :  { %5640 = vrot.lane.b32.xlu1 %v5639_v28, %s6121_s17 }
 0xfc2   :  { %5645 = vrot.lane.b32.xlu0 %v5644_v6, %s6121_s17 }
0x1004   :  { %v5536_v37 = vpop.f32.mrb[60].mxu0 }
0x1005   :  { %v3331_v26 = vpop.f32.mrb[61].mxu0 }
0x1006   :  { %v5537_v29 = vpop.f32.mrb[62].mxu0 }
0x1007   :  { %v5649_v42 = vpack.i.bf16 %v5537_v29, %v5536_v37  ;;  %v3334_v53 = vpop.f32.mrb[63].mxu0  ;;  %v5840_v37 = vld [vmem:[%s7633_s5 + $0x12c] ss:$16 sps:$4 sm:$0xff]   ;;  %v5838_v29 = vld [vmem:[%s7633_s5 + $0x128] ss:$16 sps:$4 sm:$0xff]  }
0x1008   :  { %v5654_v47 = vpack.i.bf16 %v3334_v53, %v3331_v26  ;;  %v5835_v26 = vld [vmem:[%s7633_s5 + $0x120] ss:$16 sps:$4 sm:$0xff]  }
0x1009   :  { %5650 = vrot.lane.b32.xlu1 %v5649_v42, %s6120_s29 }
0x100a   :  { %5655 = vrot.lane.b32.xlu0 %v5654_v47, %s6120_s29 }
0x100c   :  { %v5544_v1 = vpop.f32.mrb[64].mxu1 }
0x100d   :  { %v3392_v2 = vpop.f32.mrb[65].mxu1 }
0x100e   :  { %v5545_v51 = vpop.f32.mrb[66].mxu1 }
0x100f   :  { %v5664_v25 = vpack.i.bf16 %v5545_v51, %v5544_v1  ;;  %v3395_v8 = vpop.f32.mrb[67].mxu1 }
0x1010   :  { %v5659_v7 = vpack.i.bf16 %v3395_v8, %v3392_v2 }
0x1011   :  { %5665 = vrot.lane.b32.xlu1 %v5664_v25, %s6119_s20 }
0x1012   :  { %5660 = vrot.lane.b32.xlu0 %v5659_v7, %s6119_s20 }
0x1033   :  { %v5641_v15 = vpop.permute.xlu1 %5640 }
0x1034   :  { %v5646_v40 = vpop.permute.xlu0 %5645  ;;  %v5643_v20 = vunpack.i.h.bf16 %v5641_v15  ;;  %v5642_v21 = vunpack.i.l.bf16 %v5641_v15 }
0x1035   :  { %v5648_v24 = vunpack.i.h.bf16 %v5646_v40  ;;  %v5647_v46 = vunpack.i.l.bf16 %v5646_v40 }
0x1036   :  { %v3458_v16 = vsel %vm572_vm0, %v7291_v59, %v5643_v20  ;;  %v3457_v12 = vsel %vm572_vm0, %v7287_v56, %v5642_v21 }
0x1037   :  { %v3456_v34 = vsel %vm572_vm0, %v7293_v17, %v5648_v24  ;;  %v3455_v27 = vsel %vm572_vm0, %v7289_v32, %v5647_v46  ;;  %v5843_v24 = vld [vmem:[%s7633_s5 + $0x144] ss:$16 sps:$4 sm:$0xff]   ;;  %v5846_v46 = vld [vmem:[%s7633_s5 + $0x14c] ss:$16 sps:$4 sm:$0xff]  }
0x107b   :  { %v5651_v9 = vpop.permute.xlu1 %5650 }
0x107c   :  { %v5656_v54 = vpop.permute.xlu0 %5655  ;;  %v5653_v58 = vunpack.i.h.bf16 %v5651_v9  ;;  %v5652_v36 = vunpack.i.l.bf16 %v5651_v9 }
0x107d   :  { %v5658_v18 = vunpack.i.h.bf16 %v5656_v54  ;;  %v5657_v44 = vunpack.i.l.bf16 %v5656_v54 }
0x107e   :  { %v3462_v48 = vsel %vm1315_vm1, %v3458_v16, %v5653_v58  ;;  %v3461_v43 = vsel %vm1315_vm1, %v3457_v12, %v5652_v36  ;;  %v5841_v58 = vld [vmem:[%s7633_s5 + $0x140] ss:$16 sps:$4 sm:$0xff]   ;;  %v5844_v36 = vld [vmem:[%s7633_s5 + $0x148] ss:$16 sps:$4 sm:$0xff]  }
0x107f   :  { %v3459_v59 = vsel %vm1315_vm1, %v3455_v27, %v5657_v44  ;;  %v3460_v56 = vsel %vm1315_vm1, %v3456_v34, %v5658_v18  ;;  %v5849_v18 = vld [vmem:[%s7633_s5 + $0x164] ss:$16 sps:$4 sm:$0xff]   ;;  %v5852_v44 = vld [vmem:[%s7633_s5 + $0x16c] ss:$16 sps:$4 sm:$0xff]   ;;  %v5847_v16 = vld [vmem:[%s7633_s5 + $0x160] ss:$16 sps:$4 sm:$0xff]  }
0x1080   :  { %v5850_v12 = vld [vmem:[%s7633_s5 + $0x168] ss:$16 sps:$4 sm:$0xff]   ;;  %v5858_v34 = vld [vmem:[%s7633_s5 + $0x18c] ss:$16 sps:$4 sm:$0xff]   ;;  %v5853_v27 = vld [vmem:[%s7633_s5 + $0x180] ss:$16 sps:$4 sm:$0xff]  }
0x1083   :  { %v5666_v33 = vpop.permute.xlu1 %5665 }
0x1084   :  { %v5668_v50 = vunpack.i.h.bf16 %v5666_v33  ;;  %v5667_v23 = vunpack.i.l.bf16 %v5666_v33  ;;  %v5661_v13 = vpop.permute.xlu0 %5660  ;;  %v5855_v33 = vld [vmem:[%s7633_s5 + $0x184] ss:$16 sps:$4 sm:$0xff]  }
0x1085   :  { %v5663_v19 = vunpack.i.h.bf16 %v5661_v13  ;;  %v5662_v3 = vunpack.i.l.bf16 %v5661_v13  ;;  %v5864_v13 = vld [vmem:[%s7633_s5 + $0x1ac] ss:$16 sps:$4 sm:$0xff]  }
0x1086   :  { %v3465_v31 = vsel %vm1320_vm2, %v3461_v43, %v5667_v23  ;;  %v3466_v17 = vsel %vm1320_vm2, %v3462_v48, %v5668_v50  ;;  %v5856_v50 = vld [vmem:[%s7633_s5 + $0x188] ss:$16 sps:$4 sm:$0xff]   ;;  %v5861_v23 = vld [vmem:[%s7633_s5 + $0x1a4] ss:$16 sps:$4 sm:$0xff]   ;;  %v5859_v48 = vld [vmem:[%s7633_s5 + $0x1a0] ss:$16 sps:$4 sm:$0xff]  }
0x1087   :  { %v3468_v62 = vpack.c.bf16 %v3466_v17, %v3465_v31  ;;  %v3463_v32 = vsel %vm1320_vm2, %v3459_v59, %v5662_v3  ;;  %v3464_v0 = vsel %vm1320_vm2, %v3460_v56, %v5663_v19  ;;  %v5862_v43 = vld [vmem:[%s7633_s5 + $0x1a8] ss:$16 sps:$4 sm:$0xff]   ;;  %v5867_v19 = vld [vmem:[%s7633_s5 + $0x1c4] ss:$16 sps:$4 sm:$0xff]   ;;  %v5870_v3 = vld [vmem:[%s7633_s5 + $0x1cc] ss:$16 sps:$4 sm:$0xff]  }
0x1088   :  { %v3467_v60 = vpack.c.bf16 %v3464_v0, %v3463_v32  ;;  %v5865_v59 = vld [vmem:[%s7633_s5 + $0x1c0] ss:$16 sps:$4 sm:$0xff]   ;;  %v5868_v56 = vld [vmem:[%s7633_s5 + $0x1c8] ss:$16 sps:$4 sm:$0xff]   ;;  %v5873_v31 = vld [vmem:[%s7633_s5 + $0x1e4] ss:$16 sps:$4 sm:$0xff]  }
0x1089   :  { %v5876_v17 = vld [vmem:[%s7633_s5 + $0x1ec] ss:$16 sps:$4 sm:$0xff]   ;;  %v5874_v32 = vld [vmem:[%s7633_s5 + $0x1e8] ss:$16 sps:$4 sm:$0xff]   ;;  %v5877_v0 = vld [vmem:[%s7634_s6 + $0x140] sm:$0xff]  }
0x108a   :  { %5562 = vmatprep.mubr.bf16.mxu0 %v3467_v60  ;;  %v5878_v60 = vld [vmem:[%s7634_s6 + $0x1c0] sm:$0xff]  }
0x108b   :  { %5563 = vmatmul.mubr.bf16.vlgmr.msra.gmra.mrb[64].mxu0 %v3468_v62  ;;  %v5871_v62 = vld [vmem:[%s7633_s5 + $0x1e0] ss:$16 sps:$4 sm:$0xff]  }
0x108c   :  { %3927 = vmatprep.mubr.bf16.mxu0 %v6122_v63 }
0x115e   :  { %v5564_v5 = vpop.f32.mrb[64].mxu0 }
0x115f   :  { %v3568_v61 = vpop.f32.mrb[65].mxu0  ;;  %v7350_v11 = vadd.f32 %v5564_v5, %v6894_v10  ;;  %v5832_v10 = vld [vmem:[%s7633_s5 + $0x108] ss:$16 sps:$4 sm:$0xff]  }
0x1160   :  { %v7343_v28 = vadd.f32 %v3568_v61, %v6886_v55  ;;  %v5565_v22 = vpop.f32.mrb[66].mxu0  ;;  %v5829_v55 = vld [vmem:[%s7633_s5 + $0x100] ss:$16 sps:$4 sm:$0xff]   ;;  %3896 = vmatpush1.bf16.msra.mxu0 %v5832_v10 }
0x1161   :  { %v3571_v4 = vpop.f32.mrb[67].mxu0  ;;  %v7355_v14 = vadd.f32 %v5565_v22, %v6898_v39  ;;  %v5837_v39 = vld [vmem:[%s7633_s5 + $0x124] ss:$16 sps:$4 sm:$0xff]   ;;  %3897 = vmatprep.subr.bf16.mxu0 %v5840_v37 }
0x1162   :  { %v7346_v6 = vadd.f32 %v3571_v4, %v6890_v35  ;;  %3587 = vadd.xlane.f32.xlu0 %v7343_v28  ;;  %v5831_v35 = vld [vmem:[%s7633_s5 + $0x104] ss:$16 sps:$4 sm:$0xff]  }
0x1163   :  { %3842 = vmatprep.subr.bf16.mxu1 %v5831_v35 }
0x1164   :  { %3589 = vadd.xlane.f32.xlu1 %v7346_v6  ;;  %3843 = vmatpush1.bf16.msra.mxu1 %v5829_v55 }
0x1165   :  { %3844 = vmatprep.subr.bf16.mxu1 %v5837_v39  ;;  %3898 = vmatpush1.bf16.msra.mxu0 %v5838_v29 }
0x1166   :  { %3591 = vadd.xlane.f32.xlu0 %v7350_v11  ;;  %3899 = vmatprep.subr.bf16.mxu0 %v5846_v46 }
0x1168   :  { %3845 = vmatpush1.bf16.msra.mxu1 %v5835_v26 }
0x1169   :  { %3846 = vmatprep.subr.bf16.mxu1 %v5843_v24  ;;  %3900 = vmatpush1.bf16.msra.mxu0 %v5844_v36 }
0x116a   :  { %3593 = vadd.xlane.f32.xlu0 %v7355_v14  ;;  %3901 = vmatprep.subr.bf16.mxu0 %v5852_v44  ;;  %v5884_v44 = vld [vmem:[%s7634_s6 + $0x188] sm:$0xff]  }
0x116c   :  { %3847 = vmatpush1.bf16.msra.mxu1 %v5841_v58 }
0x116d   :  { %3848 = vmatprep.subr.bf16.mxu1 %v5849_v18  ;;  %3902 = vmatpush1.bf16.msra.mxu0 %v5850_v12  ;;  %v5883_v18 = vld [vmem:[%s7634_s6 + $0x108] sm:$0xff]  }
0x116e   :  { %3903 = vmatprep.subr.bf16.mxu0 %v5858_v34  ;;  %v5887_v34 = vld [vmem:[%s7634_s6 + $0x110] sm:$0xff]  }
0x1170   :  { %3849 = vmatpush1.bf16.msra.mxu1 %v5847_v16  ;;  %v5885_v16 = vld [vmem:[%s7634_s6 + $0x150] sm:$0xff]  }
0x1171   :  { %3850 = vmatprep.subr.bf16.mxu1 %v5855_v33  ;;  %3904 = vmatpush1.bf16.msra.mxu0 %v5856_v50  ;;  %v5889_v50 = vld [vmem:[%s7634_s6 + $0x158] sm:$0xff]  }
0x1172   :  { %3905 = vmatprep.subr.bf16.mxu0 %v5864_v13  ;;  %v5891_v13 = vld [vmem:[%s7634_s6 + $0x118] sm:$0xff]  }
0x1174   :  { %3851 = vmatpush1.bf16.msra.mxu1 %v5853_v27  ;;  %v5888_v27 = vld [vmem:[%s7634_s6 + $0x190] sm:$0xff]  }
0x1175   :  { %3852 = vmatprep.subr.bf16.mxu1 %v5861_v23  ;;  %3906 = vmatpush1.bf16.msra.mxu0 %v5862_v43  ;;  %v5890_v23 = vld [vmem:[%s7634_s6 + $0x1d8] sm:$0xff]   ;;  %v5893_v43 = vld [vmem:[%s7634_s6 + $0x160] sm:$0xff]  }
0x1176   :  { %3907 = vmatprep.subr.bf16.mxu0 %v5870_v3  ;;  %v5895_v3 = vld [vmem:[%s7634_s6 + $0x120] sm:$0xff]  }
0x1178   :  { %3853 = vmatpush1.bf16.msra.mxu1 %v5859_v48  ;;  %v5892_v48 = vld [vmem:[%s7634_s6 + $0x198] sm:$0xff]  }
0x1179   :  { %3854 = vmatprep.subr.bf16.mxu1 %v5867_v19  ;;  %3908 = vmatpush1.bf16.msra.mxu0 %v5868_v56  ;;  %v5894_v19 = vld [vmem:[%s7634_s6 + $0x1e0] sm:$0xff]   ;;  %v5897_v56 = vld [vmem:[%s7634_s6 + $0x168] sm:$0xff]  }
0x117a   :  { %3909 = vmatprep.subr.bf16.mxu0 %v5876_v17  ;;  %v5899_v17 = vld [vmem:[%s7634_s6 + $0x128] sm:$0xff]  }
0x117c   :  { %3855 = vmatpush1.bf16.msra.mxu1 %v5865_v59  ;;  %v5896_v59 = vld [vmem:[%s7634_s6 + $0x1a0] sm:$0xff]  }
0x117d   :  { %3856 = vmatprep.subr.bf16.mxu1 %v5873_v31  ;;  %3910 = vmatpush1.bf16.msra.mxu0 %v5874_v32  ;;  %v5898_v31 = vld [vmem:[%s7634_s6 + $0x1e8] sm:$0xff]   ;;  %v5901_v32 = vld [vmem:[%s7634_s6 + $0x170] sm:$0xff]  }
0x117e   :  { %5200 = vmatprep.subr.bf16.mxu0 %v5878_v60  ;;  %v5903_v60 = vld [vmem:[%s7634_s6 + $0x130] sm:$0xff]  }
0x1180   :  { %3857 = vmatpush1.bf16.msra.mxu1 %v5871_v62  ;;  %v5900_v62 = vld [vmem:[%s7634_s6 + $0x1a8] sm:$0xff]  }
0x1181   :  { %5172 = vmatprep.subr.bf16.mxu1 %v5877_v0  ;;  %v5902_v0 = vld [vmem:[%s7634_s6 + $0x1f0] sm:$0xff]  }
0x11ef   :  { %v3588_v30 = vpop.xlane.xlu0 %3587 }
0x11f0   :  { %v3595_v42 = vmul.f32 0.0078125, %v3588_v30  ;;  %v6094_v30 = vld [vmem:[%s7630_s2 + $0x4] sm:$0xf] }
0x11f1   :  { %v3590_v53 = vpop.xlane.xlu1 %3589 }
0x11f2   :  { %v7383_v47 = vsub.f32 %v7343_v28, %v3595_v42  ;;  %v3596_v1 = vmul.f32 0.0078125, %v3590_v53  ;;  %v3634_v42 = vrot.slane %v6094_v30, %v1490_v38 }
0x11f3   :  { %v3592_v2 = vpop.xlane.xlu0 %3591 }
0x11f4   :  { %v7386_v51 = vsub.f32 %v7346_v6, %v3596_v1  ;;  %v3597_v25 = vmul.f32 0.0078125, %v3592_v2  ;;  %v3603_v8 = vmul.f32 %v7383_v47, %v7383_v47 }
0x11f6   :  { %v7391_v7 = vsub.f32 %v7350_v11, %v3597_v25  ;;  %3607 = vadd.xlane.f32.xlu0 %v3603_v8  ;;  %v3604_v15 = vmul.f32 %v7386_v51, %v7386_v51 }
0x11f7   :  { %v3594_v40 = vpop.xlane.xlu0 %3593 }
0x11f8   :  { %v3598_v9 = vmul.f32 0.0078125, %v3594_v40  ;;  %3609 = vadd.xlane.f32.xlu1 %v3604_v15  ;;  %v3605_v20 = vmul.f32 %v7391_v7, %v7391_v7  ;;  %v3642_v15 = vrot.slane %v6094_v30, %v1498_v45  ;;  %v5882_v45 = vld [vmem:[%s7634_s6 + $0x1c8] sm:$0xff]  }
0x11fa   :  { %v7398_v21 = vsub.f32 %v7355_v14, %v3598_v9  ;;  %3611 = vadd.xlane.f32.xlu0 %v3605_v20 }
0x11fc   :  { %v3606_v54 = vmul.f32 %v7398_v21, %v7398_v21 }
0x11fe   :  { %3613 = vadd.xlane.f32.xlu1 %v3606_v54 }
0x1283   :  { %v3608_v5 = vpop.xlane.xlu0 %3607 }
0x1284   :  { %v3615_v61 = vmul.f32 0.0078125, %v3608_v5  ;;  %v5904_v5 = vld [vmem:[%s7634_s6 + $0x1b0] sm:$0xff]  }
0x1285   :  { %v3610_v22 = vpop.xlane.xlu1 %3609 }
0x1286   :  { %v3619_v4 = vadd.f32 1e-05, %v3615_v61  ;;  %v3616_v55 = vmul.f32 0.0078125, %v3610_v22  ;;  %v5905_v61 = vld [vmem:[%s7634_s6 + $0x178] sm:$0xff]  }
0x1287   :  { %v3612_v35 = vpop.xlane.xlu0 %3611  ;;  %v5906_v22 = vld [vmem:[%s7634_s6 + $0x1f8] sm:$0xff]  }
0x1288   :  { %6069 = vrsqrt.f32 %v3619_v4  ;;  %v3620_v10 = vadd.f32 1e-05, %v3616_v55  ;;  %v3617_v41 = vmul.f32 0.0078125, %v3612_v35  ;;  %v5907_v4 = vld [vmem:[%s7634_s6 + $0x138] sm:$0xff]  }
0x1289   :  { %v5908_v55 = vld [vmem:[%s7634_s6 + $0x1b8] sm:$0xff]  }
0x128a   :  { %6071 = vrsqrt.f32 %v3620_v10  ;;  %v3621_v39 = vadd.f32 1e-05, %v3617_v41 }
0x128b   :  { %v3614_v37 = vpop.xlane.xlu1 %3613 }
0x128c   :  { %6073 = vrsqrt.f32 %v3621_v39  ;;  %v3618_v26 = vmul.f32 0.0078125, %v3614_v37 }
0x128e   :  { %v3622_v29 = vadd.f32 1e-05, %v3618_v26 }
0x1290   :  { %6075 = vrsqrt.f32 %v3622_v29 }
0x1292   :  { %v6070_v53 = vpop.eup %6069 }
0x1293   :  { %v3627_v1 = vmul.f32 %v6070_v53, %v7383_v47  ;;  %v5879_v47 = vld [vmem:[%s7634_s6 + $0x100] sm:$0xff]  }
0x1294   :  { %v6072_v2 = vpop.eup %6071 }
0x1295   :  { %v3628_v25 = vmul.f32 %v6072_v2, %v7386_v51  ;;  %v3635_v8 = vmul.f32 %v3634_v42, %v3627_v1  ;;  %v5880_v51 = vld [vmem:[%s7634_s6 + $0x180] sm:$0xff]  }
0x1296   :  { %v6074_v40 = vpop.eup %6073 }
0x1297   :  { %v3636_v9 = vmul.f32 %v3634_v42, %v3628_v25  ;;  %v3643_v20 = vadd.f32 %v3642_v15, %v3635_v8  ;;  %v3629_v24 = vmul.f32 %v6074_v40, %v7391_v7 }
0x1299   :  { %v3644_v54 = vadd.f32 %v3642_v15, %v3636_v9  ;;  %v3637_v7 = vmul.f32 %v3634_v42, %v3629_v24 }
0x129a   :  { %v6076_v46 = vpop.eup %6075 }
0x129b   :  { %v3647_v58 = vpack.c.bf16 %v3644_v54, %v3643_v20  ;;  %v3630_v38 = vmul.f32 %v6076_v46, %v7398_v21  ;;  %v3645_v12 = vadd.f32 %v3642_v15, %v3637_v7 }
0x129d   :  { %3875 = vmatmul.mubr.bf16.vlgmr.msra.gmra.mrb[68].mxu1 %v3647_v58  ;;  %3928 = vmatmul.mubr.bf16.vlgmr.msra.gmra.mrb[68].mxu0 %v3647_v58  ;;  %v3638_v21 = vmul.f32 %v3634_v42, %v3630_v38 }
0x129e   :  { %3884 = vmatprep.mubr.bf16.mxu1 %v6122_v63  ;;  %3937 = vmatprep.mubr.bf16.mxu0 %v6122_v63  ;;  %v5886_v63 = vld [vmem:[%s7634_s6 + $0x1d0] sm:$0xff]  }
0x129f   :  { %v3646_v36 = vadd.f32 %v3642_v15, %v3638_v21  ;;  %5173 = vmatpush3.bf16.msra.mxu1 %v5879_v47  ;;  %5201 = vmatpush3.bf16.msra.mxu0 %v5880_v51 }
0x12a0   :  { %5174 = vmatprep.subr.bf16.mxu1 %v5881_v49  ;;  %5202 = vmatprep.subr.bf16.mxu0 %v5882_v45 }
0x12a1   :  { %v3648_v33 = vpack.c.bf16 %v3646_v36, %v3645_v12 }
0x12a3   :  { %5175 = vmatpush3.bf16.msra.mxu1 %v5883_v18  ;;  %5203 = vmatpush3.bf16.msra.mxu0 %v5884_v44 }
0x12a4   :  { %5176 = vmatprep.subr.bf16.mxu1 %v5885_v16  ;;  %5204 = vmatprep.subr.bf16.mxu0 %v5886_v63 }
0x12a5   :  { %3885 = vmatmul.mubr.bf16.gmra.mrb[72].mxu1 %v3648_v33  ;;  %3938 = vmatmul.mubr.bf16.gmra.mrb[72].mxu0 %v3648_v33 }
0x12a7   :  { %5177 = vmatpush3.bf16.msra.mxu1 %v5887_v34  ;;  %5205 = vmatpush3.bf16.msra.mxu0 %v5888_v27 }
0x12a8   :  { %5178 = vmatprep.subr.bf16.mxu1 %v5889_v50  ;;  %5206 = vmatprep.subr.bf16.mxu0 %v5890_v23 }
0x12ab   :  { %5179 = vmatpush3.bf16.msra.mxu1 %v5891_v13  ;;  %5207 = vmatpush3.bf16.msra.mxu0 %v5892_v48 }
0x12ac   :  { %5180 = vmatprep.subr.bf16.mxu1 %v5893_v43  ;;  %5208 = vmatprep.subr.bf16.mxu0 %v5894_v19 }
0x12af   :  { %5181 = vmatpush3.bf16.msra.mxu1 %v5895_v3  ;;  %5209 = vmatpush3.bf16.msra.mxu0 %v5896_v59 }
0x12b0   :  { %5182 = vmatprep.subr.bf16.mxu1 %v5897_v56  ;;  %5210 = vmatprep.subr.bf16.mxu0 %v5898_v31 }
0x12b3   :  { %5183 = vmatpush3.bf16.msra.mxu1 %v5899_v17  ;;  %5211 = vmatpush3.bf16.msra.mxu0 %v5900_v62 }
0x12b4   :  { %5184 = vmatprep.subr.bf16.mxu1 %v5901_v32  ;;  %5212 = vmatprep.subr.bf16.mxu0 %v5902_v0 }
0x12b7   :  { %5185 = vmatpush3.bf16.msra.mxu1 %v5903_v60  ;;  %5213 = vmatpush3.bf16.msra.mxu0 %v5904_v5 }
0x12b8   :  { %5186 = vmatprep.subr.bf16.mxu1 %v5905_v61  ;;  %5214 = vmatprep.subr.bf16.mxu0 %v5906_v22 }
0x12bb   :  { %5187 = vmatpush3.bf16.msra.mxu1 %v5907_v4  ;;  %5215 = vmatpush3.bf16.msra.mxu0 %v5908_v55 }
0x1370   :  { %v3876_v35 = vpop.f32.mrb[68].mxu1  ;;  %v3929_v10 = vpop.f32.mrb[68].mxu0 }
0x1371   :  { %v3878_v41 = vpop.f32.mrb[69].mxu1  ;;  %v3931_v39 = vpop.f32.mrb[69].mxu0  ;;  %v3948_v29 = vmax.f32 %v3876_v35, 0.0  ;;  %v3950_v30 = vmax.f32 %v3929_v10, 0.0 }
0x1372   :  { %v3880_v37 = vpop.f32.mrb[70].mxu1  ;;  %v3933_v26 = vpop.f32.mrb[70].mxu0  ;;  %v3949_v25 = vmax.f32 %v3878_v41, 0.0  ;;  %v3951_v8 = vmax.f32 %v3931_v39, 0.0 }
0x1373   :  { %v3952_v42 = vmax.f32 %v3880_v37, 0.0  ;;  %v3954_v53 = vmax.f32 %v3933_v26, 0.0  ;;  %v3882_v1 = vpop.f32.mrb[71].mxu1  ;;  %v3935_v2 = vpop.f32.mrb[71].mxu0 }
0x1374   :  { %v3953_v15 = vmax.f32 %v3882_v1, 0.0  ;;  %v3955_v40 = vmax.f32 %v3935_v2, 0.0 }
0x1375   :  { %v3964_v9 = vpack.c.bf16 %v3952_v42, %v3948_v29  ;;  %v3966_v20 = vpack.c.bf16 %v3954_v53, %v3950_v30 }
0x1376   :  { %v3965_v54 = vpack.c.bf16 %v3953_v15, %v3949_v25  ;;  %v3967_v24 = vpack.c.bf16 %v3955_v40, %v3951_v8 }
0x1378   :  { %v3886_v46 = vpop.f32.mrb[72].mxu1  ;;  %v3939_v58 = vpop.f32.mrb[72].mxu0  ;;  %4261 = vmatprep.mubr.bf16.mxu1 %v3965_v54  ;;  %4310 = vmatprep.mubr.bf16.mxu0 %v3967_v24 }
0x1379   :  { %v3888_v38 = vpop.f32.mrb[73].mxu1  ;;  %v3941_v47 = vpop.f32.mrb[73].mxu0  ;;  %4262 = vmatmul.mubr.bf16.vlgmr.msra.gmra.mrb[76].mxu1 %v3964_v9  ;;  %4311 = vmatmul.mubr.bf16.vlgmr.msra.gmra.mrb[76].mxu0 %v3966_v20  ;;  %v3956_v45 = vmax.f32 %v3886_v46, 0.0  ;;  %v3958_v7 = vmax.f32 %v3939_v58, 0.0 }
0x137a   :  { %v3890_v51 = vpop.f32.mrb[74].mxu1  ;;  %v3943_v49 = vpop.f32.mrb[74].mxu0  ;;  %v3957_v16 = vmax.f32 %v3888_v38, 0.0  ;;  %v3959_v63 = vmax.f32 %v3941_v47, 0.0 }
0x137b   :  { %v3960_v21 = vmax.f32 %v3890_v51, 0.0  ;;  %v3962_v36 = vmax.f32 %v3943_v49, 0.0  ;;  %v3892_v18 = vpop.f32.mrb[75].mxu1  ;;  %v3945_v44 = vpop.f32.mrb[75].mxu0 }
0x137c   :  { %v3961_v12 = vmax.f32 %v3892_v18, 0.0  ;;  %v3963_v33 = vmax.f32 %v3945_v44, 0.0  ;;  %v5913_v18 = vld [vmem:[%s7636_s8 + $0x20] sm:$0xff]   ;;  %v5914_v44 = vld [vmem:[%s7636_s8 + $0x28] sm:$0xff]  }
0x137d   :  { %v3968_v34 = vpack.c.bf16 %v3960_v21, %v3956_v45  ;;  %v3970_v27 = vpack.c.bf16 %v3962_v36, %v3958_v7  ;;  %v5909_v45 = vld [vmem:[%s7636_s8] sm:$0xff]   ;;  %v5910_v7 = vld [vmem:[%s7636_s8 + $0x8] sm:$0xff]   ;;  %v5911_v21 = vld [vmem:[%s7636_s8 + $0x10] sm:$0xff]  }
0x137e   :  { %v3969_v50 = vpack.c.bf16 %v3961_v12, %v3957_v16  ;;  %v3971_v23 = vpack.c.bf16 %v3963_v33, %v3959_v63  ;;  %5566 = vmatprep.subr.bf16.mxu1 %v5909_v45  ;;  %v5912_v36 = vld [vmem:[%s7636_s8 + $0x18] sm:$0xff]   ;;  %v5915_v16 = vld [vmem:[%s7636_s8 + $0x30] sm:$0xff]  }
0x137f   :  { %5567 = vmatpush3.bf16.msra.mxu1 %v5909_v45  ;;  %v5916_v63 = vld [vmem:[%s7636_s8 + $0x38] sm:$0xff]  }
0x1380   :  { %4269 = vmatprep.mubr.bf16.mxu1 %v3969_v50  ;;  %4318 = vmatprep.mubr.bf16.mxu0 %v3971_v23 }
0x1381   :  { %4270 = vmatmul.mubr.bf16.gmra.mrb[80].mxu1 %v3968_v34  ;;  %4319 = vmatmul.mubr.bf16.gmra.mrb[80].mxu0 %v3970_v27 }
0x1382   :  { %5568 = vmatprep.subr.bf16.mxu1 %v5910_v7 }
0x1383   :  { %5569 = vmatpush3.bf16.msra.mxu1 %v5910_v7 }
0x1384   :  { %5570 = vmatprep.subr.bf16.mxu1 %v5911_v21 }
0x1387   :  { %5571 = vmatpush3.bf16.msra.mxu1 %v5911_v21 }
0x1388   :  { %5572 = vmatprep.subr.bf16.mxu1 %v5912_v36 }
0x138b   :  { %5573 = vmatpush3.bf16.msra.mxu1 %v5912_v36 }
0x138c   :  { %5574 = vmatprep.subr.bf16.mxu1 %v5913_v18 }
0x138f   :  { %5575 = vmatpush3.bf16.msra.mxu1 %v5913_v18 }
0x1390   :  { %5576 = vmatprep.subr.bf16.mxu1 %v5914_v44 }
0x1393   :  { %5577 = vmatpush3.bf16.msra.mxu1 %v5914_v44 }
0x1394   :  { %5578 = vmatprep.subr.bf16.mxu1 %v5915_v16 }
0x1397   :  { %5579 = vmatpush3.bf16.msra.mxu1 %v5915_v16 }
0x1398   :  { %5580 = vmatprep.subr.bf16.mxu1 %v5916_v63 }
0x139b   :  { %5581 = vmatpush3.bf16.msra.mxu1 %v5916_v63 }
0x144c   :  { %v5188_v13 = vpop.f32.mrb[76].mxu1  ;;  %v5216_v48 = vpop.f32.mrb[76].mxu0 }
0x144d   :  { %v5189_v43 = vpop.f32.mrb[77].mxu1  ;;  %v5217_v19 = vpop.f32.mrb[77].mxu0 }
0x144e   :  { %v5190_v3 = vadd.f32 %v5189_v43, %v5188_v13  ;;  %v5218_v59 = vadd.f32 %v5217_v19, %v5216_v48  ;;  %v5191_v56 = vpop.f32.mrb[78].mxu1  ;;  %v5219_v31 = vpop.f32.mrb[78].mxu0  ;;  %v4331_v19 = vld [vmem:[%s7635_s7] sm:$0x3]  ;;  %s6123_s7 = smov [#allocation2]  }
0x144f   :  { %v5192_v17 = vpop.f32.mrb[79].mxu1  ;;  %v5220_v62 = vpop.f32.mrb[79].mxu0  ;;  %s4516_s8 = sshll.u32 %s6123_s7, 4  ;;  %s4517_s8 = int_to_ptr.vmem [resolvable:$true] %s4516_s8 }
0x1450   :  { %v4313_v32 = vadd.f32 %v5218_v59, %v5190_v3  ;;  %v5193_v0 = vadd.f32 %v5192_v17, %v5191_v56  ;;  %v5221_v60 = vadd.f32 %v5220_v62, %v5219_v31  ;;  %v4379_v31 = vrot.slane %v4331_v19, %v6261_v52  ;;  %s6095_s15 = scalar_lea.vmem %s4517_s8, 512  ;;  %p6100_p1 = scmp.lt.s32.totalorder %s4517_s8, %s4517_s8 }
0x1451   :  { %p6096_p0 = scmp.ne.s32.totalorder %s4517_s8, %s6095_s15  ;;  %p6101_p2 = scmp.lt.s32.totalorder %s6095_s15, %s6095_s15 }
0x1452   :  { %v4316_v5 = vadd.f32 %v5221_v60, %v5193_v0  ;;  %v4327_v61 = vadd.f32 %v4313_v32, %v7343_v28 }
0x1453   :  { %p6102_p3 = por %p6101_p2, %p6100_p1 }
0x1454   :  { %v5222_v22 = vpop.f32.mrb[80].mxu0  ;;  %4332 = vadd.xlane.f32.xlu0 %v4327_v61  ;;  %v5194_v4 = vpop.f32.mrb[80].mxu1  ;;  %v4328_v55 = vadd.f32 %v4316_v5, %v7346_v6  ;;  %v4387_v5 = vrot.slane %v4331_v19, %v6269_v57 }
0x1455   :  { %v5195_v35 = vpop.f32.mrb[81].mxu1  ;;  %v5223_v10 = vpop.f32.mrb[81].mxu0  ;;  %p6103_p4 = pnand %p6102_p3, %p6096_p0 }
0x1456   :  { %v5196_v41 = vadd.f32 %v5195_v35, %v5194_v4  ;;  %v5224_v39 = vadd.f32 %v5223_v10, %v5222_v22  ;;  %v5225_v37 = vpop.f32.mrb[82].mxu0  ;;  %4334 = vadd.xlane.f32.xlu1 %v4328_v55  ;;  %v5197_v26 = vpop.f32.mrb[82].mxu1 }
0x1457   :  { %v5198_v29 = vpop.f32.mrb[83].mxu1  ;;  %v5226_v30 = vpop.f32.mrb[83].mxu0 }
0x1458   :  { %v4321_v42 = vadd.f32 %v5224_v39, %v5196_v41  ;;  %v5199_v53 = vadd.f32 %v5198_v29, %v5197_v26  ;;  %v5227_v1 = vadd.f32 %v5226_v30, %v5225_v37 }
0x145a   :  { %v4324_v2 = vadd.f32 %v5227_v1, %v5199_v53  ;;  %v4329_v28 = vadd.f32 %v4321_v42, %v7350_v11 }
0x145c   :  { %4336 = vadd.xlane.f32.xlu0 %v4329_v28  ;;  %v4330_v25 = vadd.f32 %v4324_v2, %v7355_v14 }
0x145e   :  { %4338 = vadd.xlane.f32.xlu1 %v4330_v25 }
0x14e1   :  { %v4333_v6 = vpop.xlane.xlu0 %4332 }
0x14e2   :  { %v4340_v8 = vmul.f32 0.0078125, %v4333_v6 }
0x14e3   :  { %v4335_v15 = vpop.xlane.xlu1 %4334 }
0x14e4   :  { %v4344_v40 = vsub.f32 %v4327_v61, %v4340_v8  ;;  %v4341_v9 = vmul.f32 0.0078125, %v4335_v15 }
0x14e6   :  { %v4345_v20 = vsub.f32 %v4328_v55, %v4341_v9  ;;  %v4348_v54 = vmul.f32 %v4344_v40, %v4344_v40 }
0x14e8   :  { %4352 = vadd.xlane.f32.xlu0 %v4348_v54  ;;  %v4349_v24 = vmul.f32 %v4345_v20, %v4345_v20 }
0x14e9   :  { %v4337_v46 = vpop.xlane.xlu0 %4336 }
0x14ea   :  { %v4342_v58 = vmul.f32 0.0078125, %v4337_v46  ;;  %4354 = vadd.xlane.f32.xlu1 %v4349_v24 }
0x14eb   :  { %v4339_v38 = vpop.xlane.xlu1 %4338 }
0x14ec   :  { %v4346_v47 = vsub.f32 %v4329_v28, %v4342_v58  ;;  %v4343_v51 = vmul.f32 0.0078125, %v4339_v38 }
0x14ee   :  { %v4347_v11 = vsub.f32 %v4330_v25, %v4343_v51  ;;  %v4350_v49 = vmul.f32 %v4346_v47, %v4346_v47 }
0x14f0   :  { %4356 = vadd.xlane.f32.xlu0 %v4350_v49  ;;  %v4351_v14 = vmul.f32 %v4347_v11, %v4347_v11 }
0x14f2   :  { %4358 = vadd.xlane.f32.xlu1 %v4351_v14 }
0x1575   :  { %v4353_v12 = vpop.xlane.xlu0 %4352 }
0x1576   :  { %v4360_v33 = vmul.f32 0.0078125, %v4353_v12 }
0x1577   :  { %v4355_v34 = vpop.xlane.xlu1 %4354 }
0x1578   :  { %v4364_v27 = vadd.f32 1e-05, %v4360_v33  ;;  %v4361_v50 = vmul.f32 0.0078125, %v4355_v34 }
0x157a   :  { %6077 = vrsqrt.f32 %v4364_v27  ;;  %v4365_v23 = vadd.f32 1e-05, %v4361_v50 }
0x157c   :  { %6079 = vrsqrt.f32 %v4365_v23 }
0x157d   :  { %v4357_v13 = vpop.xlane.xlu0 %4356 }
0x157e   :  { %v4362_v48 = vmul.f32 0.0078125, %v4357_v13 }
0x157f   :  { %v4359_v43 = vpop.xlane.xlu1 %4358 }
0x1580   :  { %v4366_v3 = vadd.f32 1e-05, %v4362_v48  ;;  %v4363_v59 = vmul.f32 0.0078125, %v4359_v43 }
0x1582   :  { %6081 = vrsqrt.f32 %v4366_v3  ;;  %v4367_v56 = vadd.f32 1e-05, %v4363_v59 }
0x1584   :  { %v6078_v17 = vpop.eup %6077  ;;  %6083 = vrsqrt.f32 %v4367_v56 }
0x1585   :  { %v4372_v62 = vmul.f32 %v6078_v17, %v4344_v40 }
0x1586   :  { %v6080_v32 = vpop.eup %6079 }
0x1587   :  { %v4373_v0 = vmul.f32 %v6080_v32, %v4345_v20  ;;  %v4380_v60 = vmul.f32 %v4379_v31, %v4372_v62 }
0x1589   :  { %v4381_v61 = vmul.f32 %v4379_v31, %v4373_v0  ;;  %v4388_v22 = vadd.f32 %v4387_v5, %v4380_v60 }
0x158b   :  { %v4389_v4 = vadd.f32 %v4387_v5, %v4381_v61 }
0x158c   :  { %v6082_v55 = vpop.eup %6081 }
0x158d   :  { %v4374_v35 = vmul.f32 %v6082_v55, %v4346_v47  ;;  %v4392_v10 = vpack.c.bf16 %v4389_v4, %v4388_v22 }
0x158e   :  { %v6084_v41 = vpop.eup %6083 }
0x158f   :  { %v4382_v39 = vmul.f32 %v4379_v31, %v4374_v35  ;;  %v4375_v37 = vmul.f32 %v6084_v41, %v4347_v11  ;;  %5582 = vmatprep.mubr.bf16.mxu1 %v4392_v10 }
0x1591   :  { %v4383_v26 = vmul.f32 %v4379_v31, %v4375_v37  ;;  %v4390_v52 = vadd.f32 %v4387_v5, %v4382_v39 }
0x1593   :  { %v4391_v29 = vadd.f32 %v4387_v5, %v4383_v26 }
0x1595   :  { %v4393_v30 = vpack.c.bf16 %v4391_v29, %v4390_v52 }
0x1597   :  { %5583 = vmatmul.mubr.bf16.vlgmr.msra.gmra.mrb[84].mxu1 %v4393_v30 }
0x166a   :  { %v5584_v42 = vpop.f32.mrb[84].mxu1 }
0x166b   :  { %4509 = vst [vmem:[#allocation2 + $0x10] sm:$0xff] %v5584_v42  ;;  %v4492_v57 = vpop.f32.mrb[85].mxu1 }
0x166c   :  { %4507 = vst [vmem:[#allocation2] sm:$0xff] %v4492_v57  ;;  %v5585_v53 = vpop.f32.mrb[86].mxu1 }
0x166d   :  { %4510 = vst [vmem:[#allocation2 + $0x18] sm:$0xff] %v5585_v53  ;;  %v4495_v1 = vpop.f32.mrb[87].mxu1 }
0x166e   :  { %4508 = vst [vmem:[#allocation2 + $0x8] sm:$0xff] %v4495_v1 }
0x166f   :  { %6106 = shalt.err (!%p6103_p4)
}
0x1670   :  { %s6107_s18 = scalar_lea.hbm %s7637_s9, 512 }
0x1671   :  { %p6108_p5 = scmp.ne.s32.totalorder %s7637_s9, %s6107_s18  ;;  %p6111_p6 = scmp.lt.u32.totalorder %s6107_s18, %s7637_s9 }
0x1673   :  { %p6113_p7 = pnand %p6111_p6, %p6108_p5 }
0x1675   :  { %6116 = shalt.err (!%p6113_p7)
}
0x1676   :  { %s6124_s3 = smov 128   ;;  %s6125_s17 = smov 8  }
0x1677   :  { %4522 = dma.vmem_to_hbm [thread:$0]  %s4517_s8, 512, %s7637_s9, [#allocation3], %s6124_s3, %s6124_s3, %s6125_s17  }
0x1678   :  { %6117 = dma.done.wait [#allocation3], 512  }
0x1679   :  { %6118 = vsyncadd [#allocation3], 4294966784 }
0x167a   :  { %4526 = vsyncpa [#allocation3], 1 }

</bundles_post_ra>
